<compile_context>
chip_gen: v5e
topology: v5e:2x2
jax: 0.10.0
libtpu: 0.0.40
codegen_flags: <defaults>
</compile_context>

<pallas_src>
import functools

import numpy as np
import jax
import jax.numpy as jnp
from jax.experimental import pallas as pl
from jax.experimental.pallas import tpu as pltpu

_BN_EPS = 1e-5   # torch BatchNorm default


# ---------------------------------------------------------------------------
# Host-side constant builders (plain numpy, run once)
# ---------------------------------------------------------------------------
def _slots_nat(N, Hp, Wp):
    # pool-output slots in natural (n, p, q) order
    return [(n, p, q) for n in range(N) for p in range(Hp) for q in range(Wp)]


def _slots_pq_major(N, Hp, Wp):
    # pool-output slots with (p, q) major, batch minor: each (p, q) slab is a
    # contiguous run of N lanes -> lets the MLP consume it with one matmul.
    return [(n, p, q) for p in range(Hp) for q in range(Wp) for n in range(N)]


def _conv_out_coords(N, Hin, Win, slots):
    """All conv-output coords (k=2, s=1, p=1 => Ho = Hin+1), ordered as 4
    pool-partner blocks (one per (a, b) in the 2x2 pool window, each listing
    `slots` as (n, 2p+a, 2q+b)), followed by the odd-edge coords (they only
    feed the BatchNorm statistics)."""
    Ho, Wo = Hin + 1, Win + 1
    Hp, Wp = Ho // 2, Wo // 2
    coords = []
    for a in range(2):
        for b in range(2):
            coords += [(n, 2 * p + a, 2 * q + b) for (n, p, q) in slots]
    coords += [(n, 2 * Hp, j) for n in range(N) for j in range(Wo)]
    coords += [(n, i, 2 * Wp) for n in range(N) for i in range(2 * Hp)]
    assert len(coords) == N * Ho * Wo
    return coords


def _im2col_idx_T(coords, N, H, W):
    """[8, M] gather indices into the zero-padded, flattened image
    [N, H+2, W+2].  Rows 0..3 are the 2x2 taps, rows 4..7 pad the contraction
    dim to 8 and point at a guaranteed-zero pad cell."""
    idx = np.zeros((8, len(coords)), np.int32)       # index 0 -> xpad[0,0,0] == 0
    for m, (n, i, j) in enumerate(coords):
        for t in range(4):
            di, dj = divmod(t, 2)
            idx[t, m] = (n * (H + 2) + i + di) * (W + 2) + (j + dj)
    return idx


def _select_T(coords, N, Hin, Win):
    """0/1 matrix S[t, m_in, m_out] = 1 iff input slot m_in (natural (n,p,q)
    order over the Hin x Win pooled grid) is the tap-t source of conv-output
    coord m_out.  Conv zero padding => all-zero column."""
    M_in = N * Hin * Win
    S = np.zeros((4, M_in, len(coords)), np.float32)
    for m_out, (n, i, j) in enumerate(coords):
        for t in range(4):
            di, dj = divmod(t, 2)
            si, sj = i - 1 + di, j - 1 + dj
            if 0 <= si < Hin and 0 <= sj < Win:
                S[t, (n * Hin + si) * Win + sj, m_out] = 1.0
    return S


def _static_dims(N, H, W):
    H1, W1 = (H + 1) // 2, (W + 1) // 2
    H2, W2 = (H1 + 1) // 2, (W1 + 1) // 2
    H3, W3 = (H2 + 1) // 2, (W2 + 1) // 2
    return dict(m1=N * (H + 1) * (W + 1), l1=N * H1 * W1,
                m2=N * (H1 + 1) * (W1 + 1), l2=N * H2 * W2,
                m3=N * (H2 + 1) * (W2 + 1), l3=N * H3 * W3,
                n_pq=H3 * W3, nb=N)


# ---------------------------------------------------------------------------
# The single fused kernel
# ---------------------------------------------------------------------------
def _cnn_kernel(x2_ref, w1_ref, g1_ref, b1_ref,
                w2_ref, s2_ref, g2_ref, b2_ref,
                w3_ref, s3_ref, g3_ref, b3_ref,
                wi_ref, bi_ref, wh_ref, gm_ref, bm_ref,
                wo_ref, bo_ref, out_ref,
                *, m1, l1, m2, l2, m3, l3, n_pq, nb):
    f32 = jnp.float32

    def bn_relu(y, count, g, b):
        # training-mode BatchNorm (biased variance) + ReLU over the lane
        # (position) axis; channels live on sublanes.  sum / sum-of-squares
        # are fused into ONE cross-lane reduction via a sublane concat.
        c = y.shape[0]
        stats = jnp.sum(jnp.concatenate([y, y * y], axis=0),
                        axis=1, keepdims=True) * (1.0 / float(count))   # [2c, 1]
        mean = stats[0:c]
        var = jnp.maximum(stats[c:2 * c] - mean * mean, 0.0)
        scale = g * jax.lax.rsqrt(var + _BN_EPS)
        shift = b - mean * scale
        return jnp.maximum(y * scale + shift, 0.0)

    def pool4(y, l):
        # MaxPool2d(2): the 4 pool partners are 4 contiguous lane blocks
        # (the odd conv edge beyond 4*l only feeds the BN statistics).
        return jnp.maximum(jnp.maximum(y[:, 0:l], y[:, l:2 * l]),
                           jnp.maximum(y[:, 2 * l:3 * l], y[:, 3 * l:4 * l]))

    def conv_bn_pool(pin, w_ref, s_ref, g, b, count, l):
        # Conv2d(k=2,s=1,p=1):  z_t = W_t^T @ pin      (4 small-K MXU matmuls)
        #                       y   = z @ S            (bf16 select matmul(s))
        # S is a constant 0/1 matrix: tap shift + conv zero-padding + pool-
        # friendly output ordering.  Conv bias dropped (BN cancels it exactly).
        zs = [jnp.dot(w_ref[t], pin,
                      preferred_element_type=f32).astype(jnp.bfloat16)
              for t in range(4)]
        if len(s_ref.shape) == 2:
            # taps K-concatenated (lane offsets 128-aligned): one K=4*M_in matmul
            y = jnp.dot(jnp.concatenate(zs, axis=1), s_ref[...],
                        preferred_element_type=f32)
        else:
            # tap lane-width not 128-aligned: 4 small select matmuls instead of
            # an unaligned lane concat.
            y = None
            for t in range(4):
                term = jnp.dot(zs[t], s_ref[t], preferred_element_type=f32)
                y = term if y is None else y + term
        return pool4(bn_relu(y, count, g, b), l)

    # ---- ConvBlock 1: im2col columns arrive pre-gathered as [8 taps, m1] ----
    y1 = jnp.dot(w1_ref[...], x2_ref[...], preferred_element_type=f32)  # [16, m1]
    p1 = pool4(bn_relu(y1, m1, g1_ref[...], b1_ref[...]), l1)           # [16, l1]

    # ---- ConvBlock 2 / 3 ----
    p2 = conv_bn_pool(p1, w2_ref, s2_ref, g2_ref[...], b2_ref[...], m2, l2)  # [32, l2]
    p3 = conv_bn_pool(p2, w3_ref, s3_ref, g3_ref[...], b3_ref[...], m3, l3)  # [64, l3]

    # ---- MLP input layer: x.view(B,-1) is folded into wi's column order.
    #      p3 lanes are (p,q)-major / batch-minor, so stacking the n_pq slabs
    #      along sublanes gives a [n_pq*64, nb] operand for ONE matmul. ----
    p3s = jnp.concatenate([p3[:, g * nb:(g + 1) * nb] for g in range(n_pq)],
                          axis=0)                                       # [n_pq*64, nb]
    h = jnp.dot(wi_ref[...], p3s, preferred_element_type=f32) + bi_ref[...]

    # ---- hidden layer: Linear (bias BN-cancelled) -> BatchNorm1d -> ReLU
    #      -> Dropout(p=0) = identity ----
    a = bn_relu(jnp.dot(wh_ref[...], h, preferred_element_type=f32), nb,
                gm_ref[...], bm_ref[...])

    # ---- output layer + Softmax (MLP) + F.softmax (CNN.forward) ----
    o = jnp.dot(wo_ref[...], a, preferred_element_type=f32) + bo_ref[...]   # [10, nb]
    e1 = jnp.exp(o - jnp.max(o, axis=0, keepdims=True))
    s1 = e1 * pl.reciprocal(jnp.sum(e1, axis=0, keepdims=True), approx=True)
    e2 = jnp.exp(s1)                      # s1 in (0, 1]: no max-subtract needed
    out_ref[...] = e2 / jnp.sum(e2, axis=0, keepdims=True)   # exact final norm


# ---------------------------------------------------------------------------
# Wrapper
# ---------------------------------------------------------------------------
def cnn_forward(kp, x):
    """kp: prepared params/constants; x: [N, 1, H, W] float32 -> [N, 10]."""
    N, C, H, W = x.shape
    assert C == 1
    dims = _static_dims(N, H, W)

    # Block-1 im2col (+ pool-partner ordering) as one pad + one static gather,
    # already in the lane-dense [8 taps, positions] layout (tiny XLA op).
    xpad = jnp.pad(x.reshape(N, H, W), ((0, 0), (1, 1), (1, 1)))
    x2 = xpad.reshape(-1)[kp["idx1"]]                         # [8, m1]

    ins = (x2, kp["w1"], kp["g1"], kp["b1"],
           kp["w2"], kp["s2"], kp["g2"], kp["b2"],
           kp["w3"], kp["s3"], kp["g3"], kp["b3"],
           kp["wi"], kp["bi"], kp["wh"], kp["gm"], kp["bm"],
           kp["wo"], kp["bo"])

    out_dim = kp["wo"].shape[0]
    hid = kp["wh"].shape[0]
    c1, c2, c3 = kp["w1"].shape[0], kp["w2"].shape[1], kp["w3"].shape[1]
    flops = 2 * (c1 * 8 * dims["m1"]
                 + 4 * c2 * c1 * dims["l1"] + c2 * 4 * dims["l1"] * dims["m2"]
                 + 4 * c3 * c2 * dims["l2"] + c3 * 4 * dims["l2"] * dims["m3"]
                 + hid * dims["n_pq"] * c3 * N + hid * hid * N + out_dim * hid * N)
    bytes_accessed = (sum(int(np.prod(a.shape)) * a.dtype.itemsize for a in ins)
                      + N * out_dim * 4)
    transcendentals = 2 * N * out_dim + 2 * (c1 + c2 + c3 + hid)

    kernel = functools.partial(_cnn_kernel, **dims)
    out_t = pl.pallas_call(
        kernel,
        out_shape=jax.ShapeDtypeStruct((out_dim, N), jnp.float32),
        in_specs=[pl.BlockSpec(memory_space=pltpu.MemorySpace.VMEM)] * len(ins),
        out_specs=pl.BlockSpec(memory_space=pltpu.MemorySpace.VMEM),
        cost_estimate=pl.CostEstimate(flops=flops,
                                      transcendentals=transcendentals,
                                      bytes_accessed=bytes_accessed),
    )(*ins)
    return out_t.T      # [N, out_dim], matching the PyTorch module


# ---------------------------------------------------------------------------
# Parameters (torch-equivalent shapes / init) and host-side preparation
# ---------------------------------------------------------------------------
def init_params(key):
    k1, k2, k3, ki, kh, ko = jax.random.split(key, 6)

    def conv_w(k, cin, cout):
        # torch xavier_normal_ on [cout, cin, 2, 2]: fan_in=4*cin, fan_out=4*cout
        std = (2.0 / (4 * cin + 4 * cout)) ** 0.5
        w = std * jax.random.normal(k, (2, 2, cin, cout), jnp.float32)
        return w.reshape(4, cin, cout)        # tap-major: t = 2*di + dj
        # conv bias omitted: exactly cancelled by training-mode BatchNorm2d

    def linear_w(k, din, dout):
        std = (2.0 / (din + dout)) ** 0.5
        return std * jax.random.normal(k, (din, dout), jnp.float32)

    cones = lambda c: jnp.ones((c, 1), jnp.float32)
    czeros = lambda c: jnp.zeros((c, 1), jnp.float32)

    pre_hidden, hidden, out_dim = 64 * 2 * 2, 32, 10   # 16x16 -> 8 -> 4 -> 2
    return {
        "w1": conv_w(k1, 1, 16), "g1": cones(16), "b1": czeros(16),
        "w2": conv_w(k2, 16, 32), "g2": cones(32), "b2": czeros(32),
        "w3": conv_w(k3, 32, 64), "g3": cones(64), "b3": czeros(64),
        "wi": linear_w(ki, pre_hidden, hidden), "bi": czeros(hidden),
        "wh": linear_w(kh, hidden, hidden),   # hidden bias: zero init + BN-cancelled
        "gm": cones(hidden), "bm": czeros(hidden),
        "wo": linear_w(ko, hidden, out_dim), "bo": czeros(out_dim),
    }


def prepare_inputs(params, N, H, W):
    """Host-side, run once: build gather / selection constants, transpose the
    weights into the lane-dense layout and fold the NCHW flatten into wi."""
    H1, W1 = (H + 1) // 2, (W + 1) // 2
    H2, W2 = (H1 + 1) // 2, (W1 + 1) // 2
    H3, W3 = (H2 + 1) // 2, (W2 + 1) // 2

    coords1 = _conv_out_coords(N, H, W, _slots_nat(N, H1, W1))
    coords2 = _conv_out_coords(N, H1, W1, _slots_nat(N, H2, W2))
    coords3 = _conv_out_coords(N, H2, W2, _slots_pq_major(N, H3, W3))

    idx1 = _im2col_idx_T(coords1, N, H, W)                     # [8, m1]
    s2 = _select_T(coords2, N, H1, W1)                         # [4, l1, m2]
    s3 = _select_T(coords3, N, H2, W2)                         # [4, l2, m3]
    if (N * H1 * W1) % 128 == 0:                               # K-concatenated form
        s2 = s2.reshape(4 * N * H1 * W1, -1)
    if (N * H2 * W2) % 128 == 0:
        s3 = s3.reshape(4 * N * H2 * W2, -1)

    # block-1 conv weight: [cout, 8]  (4 real taps + 4 zero rows matching the
    # padded im2col contraction dim)
    c1 = params["w1"].shape[2]
    w1 = np.zeros((c1, 8), np.float32)
    w1[:, :4] = np.asarray(params["w1"]).reshape(4, c1).T

    # per-tap transposed conv weights: [4, cout, cin]
    w2 = np.ascontiguousarray(np.transpose(np.asarray(params["w2"]), (0, 2, 1)))
    w3 = np.ascontiguousarray(np.transpose(np.asarray(params["w3"]), (0, 2, 1)))

    # fold x.view(B,-1)'s NCHW (c, p, q) order into the input-layer weight and
    # transpose it:  wiT[j, pq*c3 + c] = wi[c*(H3*W3) + pq, j]
    wi = np.asarray(params["wi"])
    hid = wi.shape[1]
    c3 = params["w3"].shape[2]
    wiT = wi.reshape(c3, H3 * W3, hid).transpose(1, 0, 2).reshape(-1, hid).T

    return {"idx1": jnp.asarray(idx1),
            "w1": jnp.asarray(w1), "g1": params["g1"], "b1": params["b1"],
            "w2": jnp.asarray(w2), "s2": jnp.asarray(s2, dtype=jnp.bfloat16),
            "g2": params["g2"], "b2": params["b2"],
            "w3": jnp.asarray(w3), "s3": jnp.asarray(s3, dtype=jnp.bfloat16),
            "g3": params["g3"], "b3": params["b3"],
            "wi": jnp.asarray(np.ascontiguousarray(wiT)), "bi": params["bi"],
            "wh": jnp.asarray(np.asarray(params["wh"]).T),
            "gm": params["gm"], "bm": params["bm"],
            "wo": jnp.asarray(np.asarray(params["wo"]).T), "bo": params["bo"]}


# ---------------------------------------------------------------------------
if __name__ == "__main__":
    key = jax.random.PRNGKey(0)
    kx, kparam = jax.random.split(key)

    N, H, W = 2, 16, 16
    x = jax.random.normal(kx, (N, 1, H, W), jnp.float32)

    params = init_params(kparam)
    kp = prepare_inputs(params, N, H, W)

    fwd = jax.jit(cnn_forward)
    out = jax.block_until_ready(fwd(kp, x))

    assert out.shape == (N, 10)
    assert bool(jnp.all(jnp.isfinite(out)))
    # rows are (double-)softmax outputs -> must sum to ~1 (final norm is exact)
    assert bool(jnp.all(jnp.abs(jnp.sum(out, axis=-1) - 1.0) < 1e-3))
    print("KERNEL_OK")
</pallas_src>

<mosaic_0001>
module attributes {stable_mosaic.version = 11 : i64} {
  func.func @_cnn_kernel(%arg0: memref<8x578xf32, #tpu.memory_space<vmem>>, %arg1: memref<16x8xf32, #tpu.memory_space<vmem>>, %arg2: memref<16x1xf32, #tpu.memory_space<vmem>>, %arg3: memref<16x1xf32, #tpu.memory_space<vmem>>, %arg4: memref<4x32x16xf32, #tpu.memory_space<vmem>>, %arg5: memref<512x162xbf16, #tpu.memory_space<vmem>>, %arg6: memref<32x1xf32, #tpu.memory_space<vmem>>, %arg7: memref<32x1xf32, #tpu.memory_space<vmem>>, %arg8: memref<4x64x32xf32, #tpu.memory_space<vmem>>, %arg9: memref<4x32x50xbf16, #tpu.memory_space<vmem>>, %arg10: memref<64x1xf32, #tpu.memory_space<vmem>>, %arg11: memref<64x1xf32, #tpu.memory_space<vmem>>, %arg12: memref<32x256xf32, #tpu.memory_space<vmem>>, %arg13: memref<32x1xf32, #tpu.memory_space<vmem>>, %arg14: memref<32x32xf32, #tpu.memory_space<vmem>>, %arg15: memref<32x1xf32, #tpu.memory_space<vmem>>, %arg16: memref<32x1xf32, #tpu.memory_space<vmem>>, %arg17: memref<10x32xf32, #tpu.memory_space<vmem>>, %arg18: memref<10x1xf32, #tpu.memory_space<vmem>>, %arg19: memref<10x2xf32, #tpu.memory_space<vmem>>) attributes {dimension_semantics = [], scalar_prefetch = 0 : i64, scratch_operands = 0 : i64, tpu.core_type = #tpu.core_type<tc>} {
    %c0 = arith.constant 0 : index
    %c0_0 = arith.constant 0 : index
    %0 = vector.load %arg1[%c0, %c0_0] : memref<16x8xf32, #tpu.memory_space<vmem>>, vector<16x8xf32>
    %c0_1 = arith.constant 0 : index
    %c0_2 = arith.constant 0 : index
    %1 = vector.load %arg0[%c0_1, %c0_2] : memref<8x578xf32, #tpu.memory_space<vmem>>, vector<8x578xf32>
    %cst = arith.constant dense<0.000000e+00> : vector<16x578xf32>
    %2 = tpu.matmul %0, %1, %cst {dimension_numbers = #tpu.dot_dimension_numbers<[1], [0], [0], [1], [0, 0, 1, 1], [], []>} : vector<16x8xf32>, vector<8x578xf32>, vector<16x578xf32> -> vector<16x578xf32>
    %c0_3 = arith.constant 0 : index
    %c0_4 = arith.constant 0 : index
    %3 = vector.load %arg2[%c0_3, %c0_4] : memref<16x1xf32, #tpu.memory_space<vmem>>, vector<16x1xf32>
    %c0_5 = arith.constant 0 : index
    %c0_6 = arith.constant 0 : index
    %4 = vector.load %arg3[%c0_5, %c0_6] : memref<16x1xf32, #tpu.memory_space<vmem>>, vector<16x1xf32>
    %5 = arith.mulf %2, %2 : vector<16x578xf32>
    %6 = tpu.concatenate %2, %5 in 0 : vector<16x578xf32>, vector<16x578xf32> -> vector<32x578xf32>
    %cst_7 = arith.constant dense<0.000000e+00> : vector<32xf32>
    %7 = vector.multi_reduction <add>, %6, %cst_7 [1] : vector<32x578xf32> to vector<32xf32>
    %8 = vector.shape_cast %7 : vector<32xf32> to vector<32x1xf32>
    %cst_8 = arith.constant 0.00173010386 : f32
    %9 = vector.broadcast %cst_8 : f32 to vector<32x1xf32>
    %10 = arith.mulf %8, %9 : vector<32x1xf32>
    %11 = vector.extract_strided_slice %10 {offsets = [0, 0], sizes = [16, 1], strides = [1, 1]} : vector<32x1xf32> to vector<16x1xf32>
    %12 = vector.extract_strided_slice %10 {offsets = [16, 0], sizes = [16, 1], strides = [1, 1]} : vector<32x1xf32> to vector<16x1xf32>
    %13 = arith.mulf %11, %11 : vector<16x1xf32>
    %14 = arith.subf %12, %13 : vector<16x1xf32>
    %cst_9 = arith.constant 0.000000e+00 : f32
    %15 = vector.broadcast %cst_9 : f32 to vector<16x1xf32>
    %16 = arith.maximumf %14, %15 : vector<16x1xf32>
    %cst_10 = arith.constant 9.99999974E-6 : f32
    %17 = vector.broadcast %cst_10 : f32 to vector<16x1xf32>
    %18 = arith.addf %16, %17 : vector<16x1xf32>
    %19 = math.rsqrt %18 : vector<16x1xf32>
    %20 = arith.mulf %3, %19 : vector<16x1xf32>
    %21 = arith.mulf %11, %20 : vector<16x1xf32>
    %22 = arith.subf %4, %21 : vector<16x1xf32>
    %23 = vector.broadcast %20 : vector<16x1xf32> to vector<16x578xf32>
    %24 = arith.mulf %2, %23 : vector<16x578xf32>
    %25 = vector.broadcast %22 : vector<16x1xf32> to vector<16x578xf32>
    %26 = arith.addf %24, %25 : vector<16x578xf32>
    %cst_11 = arith.constant 0.000000e+00 : f32
    %27 = vector.broadcast %cst_11 : f32 to vector<16x578xf32>
    %28 = arith.maximumf %26, %27 : vector<16x578xf32>
    %29 = vector.extract_strided_slice %28 {offsets = [0, 0], sizes = [16, 128], strides = [1, 1]} : vector<16x578xf32> to vector<16x128xf32>
    %30 = vector.extract_strided_slice %28 {offsets = [0, 128], sizes = [16, 128], strides = [1, 1]} : vector<16x578xf32> to vector<16x128xf32>
    %31 = arith.maximumf %29, %30 : vector<16x128xf32>
    %32 = vector.extract_strided_slice %28 {offsets = [0, 256], sizes = [16, 128], strides = [1, 1]} : vector<16x578xf32> to vector<16x128xf32>
    %33 = vector.extract_strided_slice %28 {offsets = [0, 384], sizes = [16, 128], strides = [1, 1]} : vector<16x578xf32> to vector<16x128xf32>
    %34 = arith.maximumf %32, %33 : vector<16x128xf32>
    %35 = arith.maximumf %31, %34 : vector<16x128xf32>
    %c0_12 = arith.constant 0 : index
    %c0_13 = arith.constant 0 : index
    %36 = vector.load %arg6[%c0_12, %c0_13] : memref<32x1xf32, #tpu.memory_space<vmem>>, vector<32x1xf32>
    %c0_14 = arith.constant 0 : index
    %c0_15 = arith.constant 0 : index
    %37 = vector.load %arg7[%c0_14, %c0_15] : memref<32x1xf32, #tpu.memory_space<vmem>>, vector<32x1xf32>
    %c0_16 = arith.constant 0 : index
    %c0_17 = arith.constant 0 : index
    %c0_18 = arith.constant 0 : index
    %38 = vector.load %arg4[%c0_16, %c0_17, %c0_18] : memref<4x32x16xf32, #tpu.memory_space<vmem>>, vector<1x32x16xf32>
    %39 = vector.shape_cast %38 : vector<1x32x16xf32> to vector<32x16xf32>
    %cst_19 = arith.constant dense<0.000000e+00> : vector<32x128xf32>
    %40 = tpu.matmul %39, %35, %cst_19 {dimension_numbers = #tpu.dot_dimension_numbers<[1], [0], [0], [1], [0, 0, 1, 1], [], []>} : vector<32x16xf32>, vector<16x128xf32>, vector<32x128xf32> -> vector<32x128xf32>
    %41 = arith.truncf %40 : vector<32x128xf32> to vector<32x128xbf16>
    %c1 = arith.constant 1 : index
    %c0_20 = arith.constant 0 : index
    %c0_21 = arith.constant 0 : index
    %42 = vector.load %arg4[%c1, %c0_20, %c0_21] : memref<4x32x16xf32, #tpu.memory_space<vmem>>, vector<1x32x16xf32>
    %43 = vector.shape_cast %42 : vector<1x32x16xf32> to vector<32x16xf32>
    %cst_22 = arith.constant dense<0.000000e+00> : vector<32x128xf32>
    %44 = tpu.matmul %43, %35, %cst_22 {dimension_numbers = #tpu.dot_dimension_numbers<[1], [0], [0], [1], [0, 0, 1, 1], [], []>} : vector<32x16xf32>, vector<16x128xf32>, vector<32x128xf32> -> vector<32x128xf32>
    %45 = arith.truncf %44 : vector<32x128xf32> to vector<32x128xbf16>
    %c2 = arith.constant 2 : index
    %c0_23 = arith.constant 0 : index
    %c0_24 = arith.constant 0 : index
    %46 = vector.load %arg4[%c2, %c0_23, %c0_24] : memref<4x32x16xf32, #tpu.memory_space<vmem>>, vector<1x32x16xf32>
    %47 = vector.shape_cast %46 : vector<1x32x16xf32> to vector<32x16xf32>
    %cst_25 = arith.constant dense<0.000000e+00> : vector<32x128xf32>
    %48 = tpu.matmul %47, %35, %cst_25 {dimension_numbers = #tpu.dot_dimension_numbers<[1], [0], [0], [1], [0, 0, 1, 1], [], []>} : vector<32x16xf32>, vector<16x128xf32>, vector<32x128xf32> -> vector<32x128xf32>
    %49 = arith.truncf %48 : vector<32x128xf32> to vector<32x128xbf16>
    %c3 = arith.constant 3 : index
    %c0_26 = arith.constant 0 : index
    %c0_27 = arith.constant 0 : index
    %50 = vector.load %arg4[%c3, %c0_26, %c0_27] : memref<4x32x16xf32, #tpu.memory_space<vmem>>, vector<1x32x16xf32>
    %51 = vector.shape_cast %50 : vector<1x32x16xf32> to vector<32x16xf32>
    %cst_28 = arith.constant dense<0.000000e+00> : vector<32x128xf32>
    %52 = tpu.matmul %51, %35, %cst_28 {dimension_numbers = #tpu.dot_dimension_numbers<[1], [0], [0], [1], [0, 0, 1, 1], [], []>} : vector<32x16xf32>, vector<16x128xf32>, vector<32x128xf32> -> vector<32x128xf32>
    %53 = arith.truncf %52 : vector<32x128xf32> to vector<32x128xbf16>
    %54 = tpu.concatenate %41, %45, %49, %53 in 1 : vector<32x128xbf16>, vector<32x128xbf16>, vector<32x128xbf16>, vector<32x128xbf16> -> vector<32x512xbf16>
    %c0_29 = arith.constant 0 : index
    %c0_30 = arith.constant 0 : index
    %55 = vector.load %arg5[%c0_29, %c0_30] : memref<512x162xbf16, #tpu.memory_space<vmem>>, vector<512x162xbf16>
    %cst_31 = arith.constant dense<0.000000e+00> : vector<32x162xf32>
    %56 = tpu.matmul %54, %55, %cst_31 {dimension_numbers = #tpu.dot_dimension_numbers<[1], [0], [0], [1], [0, 0, 1, 1], [], []>} : vector<32x512xbf16>, vector<512x162xbf16>, vector<32x162xf32> -> vector<32x162xf32>
    %57 = arith.mulf %56, %56 : vector<32x162xf32>
    %58 = tpu.concatenate %56, %57 in 0 : vector<32x162xf32>, vector<32x162xf32> -> vector<64x162xf32>
    %cst_32 = arith.constant dense<0.000000e+00> : vector<64xf32>
    %59 = vector.multi_reduction <add>, %58, %cst_32 [1] : vector<64x162xf32> to vector<64xf32>
    %60 = vector.shape_cast %59 : vector<64xf32> to vector<64x1xf32>
    %cst_33 = arith.constant 0.00617283955 : f32
    %61 = vector.broadcast %cst_33 : f32 to vector<64x1xf32>
    %62 = arith.mulf %60, %61 : vector<64x1xf32>
    %63 = vector.extract_strided_slice %62 {offsets = [0, 0], sizes = [32, 1], strides = [1, 1]} : vector<64x1xf32> to vector<32x1xf32>
    %64 = vector.extract_strided_slice %62 {offsets = [32, 0], sizes = [32, 1], strides = [1, 1]} : vector<64x1xf32> to vector<32x1xf32>
    %65 = arith.mulf %63, %63 : vector<32x1xf32>
    %66 = arith.subf %64, %65 : vector<32x1xf32>
    %cst_34 = arith.constant 0.000000e+00 : f32
    %67 = vector.broadcast %cst_34 : f32 to vector<32x1xf32>
    %68 = arith.maximumf %66, %67 : vector<32x1xf32>
    %cst_35 = arith.constant 9.99999974E-6 : f32
    %69 = vector.broadcast %cst_35 : f32 to vector<32x1xf32>
    %70 = arith.addf %68, %69 : vector<32x1xf32>
    %71 = math.rsqrt %70 : vector<32x1xf32>
    %72 = arith.mulf %36, %71 : vector<32x1xf32>
    %73 = arith.mulf %63, %72 : vector<32x1xf32>
    %74 = arith.subf %37, %73 : vector<32x1xf32>
    %75 = vector.broadcast %72 : vector<32x1xf32> to vector<32x162xf32>
    %76 = arith.mulf %56, %75 : vector<32x162xf32>
    %77 = vector.broadcast %74 : vector<32x1xf32> to vector<32x162xf32>
    %78 = arith.addf %76, %77 : vector<32x162xf32>
    %cst_36 = arith.constant 0.000000e+00 : f32
    %79 = vector.broadcast %cst_36 : f32 to vector<32x162xf32>
    %80 = arith.maximumf %78, %79 : vector<32x162xf32>
    %81 = vector.extract_strided_slice %80 {offsets = [0, 0], sizes = [32, 32], strides = [1, 1]} : vector<32x162xf32> to vector<32x32xf32>
    %82 = vector.extract_strided_slice %80 {offsets = [0, 32], sizes = [32, 32], strides = [1, 1]} : vector<32x162xf32> to vector<32x32xf32>
    %83 = arith.maximumf %81, %82 : vector<32x32xf32>
    %84 = vector.extract_strided_slice %80 {offsets = [0, 64], sizes = [32, 32], strides = [1, 1]} : vector<32x162xf32> to vector<32x32xf32>
    %85 = vector.extract_strided_slice %80 {offsets = [0, 96], sizes = [32, 32], strides = [1, 1]} : vector<32x162xf32> to vector<32x32xf32>
    %86 = arith.maximumf %84, %85 : vector<32x32xf32>
    %87 = arith.maximumf %83, %86 : vector<32x32xf32>
    %c0_37 = arith.constant 0 : index
    %c0_38 = arith.constant 0 : index
    %88 = vector.load %arg10[%c0_37, %c0_38] : memref<64x1xf32, #tpu.memory_space<vmem>>, vector<64x1xf32>
    %c0_39 = arith.constant 0 : index
    %c0_40 = arith.constant 0 : index
    %89 = vector.load %arg11[%c0_39, %c0_40] : memref<64x1xf32, #tpu.memory_space<vmem>>, vector<64x1xf32>
    %c0_41 = arith.constant 0 : index
    %c0_42 = arith.constant 0 : index
    %c0_43 = arith.constant 0 : index
    %90 = vector.load %arg8[%c0_41, %c0_42, %c0_43] : memref<4x64x32xf32, #tpu.memory_space<vmem>>, vector<1x64x32xf32>
    %91 = vector.shape_cast %90 : vector<1x64x32xf32> to vector<64x32xf32>
    %cst_44 = arith.constant dense<0.000000e+00> : vector<64x32xf32>
    %92 = tpu.matmul %91, %87, %cst_44 {dimension_numbers = #tpu.dot_dimension_numbers<[1], [0], [0], [1], [0, 0, 1, 1], [], []>} : vector<64x32xf32>, vector<32x32xf32>, vector<64x32xf32> -> vector<64x32xf32>
    %93 = arith.truncf %92 : vector<64x32xf32> to vector<64x32xbf16>
    %c1_45 = arith.constant 1 : index
    %c0_46 = arith.constant 0 : index
    %c0_47 = arith.constant 0 : index
    %94 = vector.load %arg8[%c1_45, %c0_46, %c0_47] : memref<4x64x32xf32, #tpu.memory_space<vmem>>, vector<1x64x32xf32>
    %95 = vector.shape_cast %94 : vector<1x64x32xf32> to vector<64x32xf32>
    %cst_48 = arith.constant dense<0.000000e+00> : vector<64x32xf32>
    %96 = tpu.matmul %95, %87, %cst_48 {dimension_numbers = #tpu.dot_dimension_numbers<[1], [0], [0], [1], [0, 0, 1, 1], [], []>} : vector<64x32xf32>, vector<32x32xf32>, vector<64x32xf32> -> vector<64x32xf32>
    %97 = arith.truncf %96 : vector<64x32xf32> to vector<64x32xbf16>
    %c2_49 = arith.constant 2 : index
    %c0_50 = arith.constant 0 : index
    %c0_51 = arith.constant 0 : index
    %98 = vector.load %arg8[%c2_49, %c0_50, %c0_51] : memref<4x64x32xf32, #tpu.memory_space<vmem>>, vector<1x64x32xf32>
    %99 = vector.shape_cast %98 : vector<1x64x32xf32> to vector<64x32xf32>
    %cst_52 = arith.constant dense<0.000000e+00> : vector<64x32xf32>
    %100 = tpu.matmul %99, %87, %cst_52 {dimension_numbers = #tpu.dot_dimension_numbers<[1], [0], [0], [1], [0, 0, 1, 1], [], []>} : vector<64x32xf32>, vector<32x32xf32>, vector<64x32xf32> -> vector<64x32xf32>
    %101 = arith.truncf %100 : vector<64x32xf32> to vector<64x32xbf16>
    %c3_53 = arith.constant 3 : index
    %c0_54 = arith.constant 0 : index
    %c0_55 = arith.constant 0 : index
    %102 = vector.load %arg8[%c3_53, %c0_54, %c0_55] : memref<4x64x32xf32, #tpu.memory_space<vmem>>, vector<1x64x32xf32>
    %103 = vector.shape_cast %102 : vector<1x64x32xf32> to vector<64x32xf32>
    %cst_56 = arith.constant dense<0.000000e+00> : vector<64x32xf32>
    %104 = tpu.matmul %103, %87, %cst_56 {dimension_numbers = #tpu.dot_dimension_numbers<[1], [0], [0], [1], [0, 0, 1, 1], [], []>} : vector<64x32xf32>, vector<32x32xf32>, vector<64x32xf32> -> vector<64x32xf32>
    %105 = arith.truncf %104 : vector<64x32xf32> to vector<64x32xbf16>
    %c0_57 = arith.constant 0 : index
    %c0_58 = arith.constant 0 : index
    %c0_59 = arith.constant 0 : index
    %106 = vector.load %arg9[%c0_57, %c0_58, %c0_59] : memref<4x32x50xbf16, #tpu.memory_space<vmem>>, vector<1x32x50xbf16>
    %107 = vector.shape_cast %106 : vector<1x32x50xbf16> to vector<32x50xbf16>
    %cst_60 = arith.constant dense<0.000000e+00> : vector<64x50xf32>
    %108 = tpu.matmul %93, %107, %cst_60 {dimension_numbers = #tpu.dot_dimension_numbers<[1], [0], [0], [1], [0, 0, 1, 1], [], []>} : vector<64x32xbf16>, vector<32x50xbf16>, vector<64x50xf32> -> vector<64x50xf32>
    %c1_61 = arith.constant 1 : index
    %c0_62 = arith.constant 0 : index
    %c0_63 = arith.constant 0 : index
    %109 = vector.load %arg9[%c1_61, %c0_62, %c0_63] : memref<4x32x50xbf16, #tpu.memory_space<vmem>>, vector<1x32x50xbf16>
    %110 = vector.shape_cast %109 : vector<1x32x50xbf16> to vector<32x50xbf16>
    %cst_64 = arith.constant dense<0.000000e+00> : vector<64x50xf32>
    %111 = tpu.matmul %97, %110, %cst_64 {dimension_numbers = #tpu.dot_dimension_numbers<[1], [0], [0], [1], [0, 0, 1, 1], [], []>} : vector<64x32xbf16>, vector<32x50xbf16>, vector<64x50xf32> -> vector<64x50xf32>
    %112 = arith.addf %108, %111 : vector<64x50xf32>
    %c2_65 = arith.constant 2 : index
    %c0_66 = arith.constant 0 : index
    %c0_67 = arith.constant 0 : index
    %113 = vector.load %arg9[%c2_65, %c0_66, %c0_67] : memref<4x32x50xbf16, #tpu.memory_space<vmem>>, vector<1x32x50xbf16>
    %114 = vector.shape_cast %113 : vector<1x32x50xbf16> to vector<32x50xbf16>
    %cst_68 = arith.constant dense<0.000000e+00> : vector<64x50xf32>
    %115 = tpu.matmul %101, %114, %cst_68 {dimension_numbers = #tpu.dot_dimension_numbers<[1], [0], [0], [1], [0, 0, 1, 1], [], []>} : vector<64x32xbf16>, vector<32x50xbf16>, vector<64x50xf32> -> vector<64x50xf32>
    %116 = arith.addf %112, %115 : vector<64x50xf32>
    %c3_69 = arith.constant 3 : index
    %c0_70 = arith.constant 0 : index
    %c0_71 = arith.constant 0 : index
    %117 = vector.load %arg9[%c3_69, %c0_70, %c0_71] : memref<4x32x50xbf16, #tpu.memory_space<vmem>>, vector<1x32x50xbf16>
    %118 = vector.shape_cast %117 : vector<1x32x50xbf16> to vector<32x50xbf16>
    %cst_72 = arith.constant dense<0.000000e+00> : vector<64x50xf32>
    %119 = tpu.matmul %105, %118, %cst_72 {dimension_numbers = #tpu.dot_dimension_numbers<[1], [0], [0], [1], [0, 0, 1, 1], [], []>} : vector<64x32xbf16>, vector<32x50xbf16>, vector<64x50xf32> -> vector<64x50xf32>
    %120 = arith.addf %116, %119 : vector<64x50xf32>
    %121 = arith.mulf %120, %120 : vector<64x50xf32>
    %122 = tpu.concatenate %120, %121 in 0 : vector<64x50xf32>, vector<64x50xf32> -> vector<128x50xf32>
    %cst_73 = arith.constant dense<0.000000e+00> : vector<128xf32>
    %123 = vector.multi_reduction <add>, %122, %cst_73 [1] : vector<128x50xf32> to vector<128xf32>
    %124 = vector.shape_cast %123 : vector<128xf32> to vector<128x1xf32>
    %cst_74 = arith.constant 2.000000e-02 : f32
    %125 = vector.broadcast %cst_74 : f32 to vector<128x1xf32>
    %126 = arith.mulf %124, %125 : vector<128x1xf32>
    %127 = vector.extract_strided_slice %126 {offsets = [0, 0], sizes = [64, 1], strides = [1, 1]} : vector<128x1xf32> to vector<64x1xf32>
    %128 = vector.extract_strided_slice %126 {offsets = [64, 0], sizes = [64, 1], strides = [1, 1]} : vector<128x1xf32> to vector<64x1xf32>
    %129 = arith.mulf %127, %127 : vector<64x1xf32>
    %130 = arith.subf %128, %129 : vector<64x1xf32>
    %cst_75 = arith.constant 0.000000e+00 : f32
    %131 = vector.broadcast %cst_75 : f32 to vector<64x1xf32>
    %132 = arith.maximumf %130, %131 : vector<64x1xf32>
    %cst_76 = arith.constant 9.99999974E-6 : f32
    %133 = vector.broadcast %cst_76 : f32 to vector<64x1xf32>
    %134 = arith.addf %132, %133 : vector<64x1xf32>
    %135 = math.rsqrt %134 : vector<64x1xf32>
    %136 = arith.mulf %88, %135 : vector<64x1xf32>
    %137 = arith.mulf %127, %136 : vector<64x1xf32>
    %138 = arith.subf %89, %137 : vector<64x1xf32>
    %139 = vector.broadcast %136 : vector<64x1xf32> to vector<64x50xf32>
    %140 = arith.mulf %120, %139 : vector<64x50xf32>
    %141 = vector.broadcast %138 : vector<64x1xf32> to vector<64x50xf32>
    %142 = arith.addf %140, %141 : vector<64x50xf32>
    %cst_77 = arith.constant 0.000000e+00 : f32
    %143 = vector.broadcast %cst_77 : f32 to vector<64x50xf32>
    %144 = arith.maximumf %142, %143 : vector<64x50xf32>
    %145 = vector.extract_strided_slice %144 {offsets = [0, 0], sizes = [64, 8], strides = [1, 1]} : vector<64x50xf32> to vector<64x8xf32>
    %146 = vector.extract_strided_slice %144 {offsets = [0, 8], sizes = [64, 8], strides = [1, 1]} : vector<64x50xf32> to vector<64x8xf32>
    %147 = arith.maximumf %145, %146 : vector<64x8xf32>
    %148 = vector.extract_strided_slice %144 {offsets = [0, 16], sizes = [64, 8], strides = [1, 1]} : vector<64x50xf32> to vector<64x8xf32>
    %149 = vector.extract_strided_slice %144 {offsets = [0, 24], sizes = [64, 8], strides = [1, 1]} : vector<64x50xf32> to vector<64x8xf32>
    %150 = arith.maximumf %148, %149 : vector<64x8xf32>
    %151 = arith.maximumf %147, %150 : vector<64x8xf32>
    %152 = vector.extract_strided_slice %151 {offsets = [0, 0], sizes = [64, 2], strides = [1, 1]} : vector<64x8xf32> to vector<64x2xf32>
    %153 = vector.extract_strided_slice %151 {offsets = [0, 2], sizes = [64, 2], strides = [1, 1]} : vector<64x8xf32> to vector<64x2xf32>
    %154 = vector.extract_strided_slice %151 {offsets = [0, 4], sizes = [64, 2], strides = [1, 1]} : vector<64x8xf32> to vector<64x2xf32>
    %155 = vector.extract_strided_slice %151 {offsets = [0, 6], sizes = [64, 2], strides = [1, 1]} : vector<64x8xf32> to vector<64x2xf32>
    %156 = tpu.concatenate %152, %153, %154, %155 in 0 : vector<64x2xf32>, vector<64x2xf32>, vector<64x2xf32>, vector<64x2xf32> -> vector<256x2xf32>
    %c0_78 = arith.constant 0 : index
    %c0_79 = arith.constant 0 : index
    %157 = vector.load %arg12[%c0_78, %c0_79] : memref<32x256xf32, #tpu.memory_space<vmem>>, vector<32x256xf32>
    %cst_80 = arith.constant dense<0.000000e+00> : vector<32x2xf32>
    %158 = tpu.matmul %157, %156, %cst_80 {dimension_numbers = #tpu.dot_dimension_numbers<[1], [0], [0], [1], [0, 0, 1, 1], [], []>} : vector<32x256xf32>, vector<256x2xf32>, vector<32x2xf32> -> vector<32x2xf32>
    %c0_81 = arith.constant 0 : index
    %c0_82 = arith.constant 0 : index
    %159 = vector.load %arg13[%c0_81, %c0_82] : memref<32x1xf32, #tpu.memory_space<vmem>>, vector<32x1xf32>
    %160 = vector.broadcast %159 : vector<32x1xf32> to vector<32x2xf32>
    %161 = arith.addf %158, %160 : vector<32x2xf32>
    %c0_83 = arith.constant 0 : index
    %c0_84 = arith.constant 0 : index
    %162 = vector.load %arg14[%c0_83, %c0_84] : memref<32x32xf32, #tpu.memory_space<vmem>>, vector<32x32xf32>
    %cst_85 = arith.constant dense<0.000000e+00> : vector<32x2xf32>
    %163 = tpu.matmul %162, %161, %cst_85 {dimension_numbers = #tpu.dot_dimension_numbers<[1], [0], [0], [1], [0, 0, 1, 1], [], []>} : vector<32x32xf32>, vector<32x2xf32>, vector<32x2xf32> -> vector<32x2xf32>
    %c0_86 = arith.constant 0 : index
    %c0_87 = arith.constant 0 : index
    %164 = vector.load %arg15[%c0_86, %c0_87] : memref<32x1xf32, #tpu.memory_space<vmem>>, vector<32x1xf32>
    %c0_88 = arith.constant 0 : index
    %c0_89 = arith.constant 0 : index
    %165 = vector.load %arg16[%c0_88, %c0_89] : memref<32x1xf32, #tpu.memory_space<vmem>>, vector<32x1xf32>
    %166 = arith.mulf %163, %163 : vector<32x2xf32>
    %167 = tpu.concatenate %163, %166 in 0 : vector<32x2xf32>, vector<32x2xf32> -> vector<64x2xf32>
    %cst_90 = arith.constant dense<0.000000e+00> : vector<64xf32>
    %168 = vector.multi_reduction <add>, %167, %cst_90 [1] : vector<64x2xf32> to vector<64xf32>
    %169 = vector.shape_cast %168 : vector<64xf32> to vector<64x1xf32>
    %cst_91 = arith.constant 5.000000e-01 : f32
    %170 = vector.broadcast %cst_91 : f32 to vector<64x1xf32>
    %171 = arith.mulf %169, %170 : vector<64x1xf32>
    %172 = vector.extract_strided_slice %171 {offsets = [0, 0], sizes = [32, 1], strides = [1, 1]} : vector<64x1xf32> to vector<32x1xf32>
    %173 = vector.extract_strided_slice %171 {offsets = [32, 0], sizes = [32, 1], strides = [1, 1]} : vector<64x1xf32> to vector<32x1xf32>
    %174 = arith.mulf %172, %172 : vector<32x1xf32>
    %175 = arith.subf %173, %174 : vector<32x1xf32>
    %cst_92 = arith.constant 0.000000e+00 : f32
    %176 = vector.broadcast %cst_92 : f32 to vector<32x1xf32>
    %177 = arith.maximumf %175, %176 : vector<32x1xf32>
    %cst_93 = arith.constant 9.99999974E-6 : f32
    %178 = vector.broadcast %cst_93 : f32 to vector<32x1xf32>
    %179 = arith.addf %177, %178 : vector<32x1xf32>
    %180 = math.rsqrt %179 : vector<32x1xf32>
    %181 = arith.mulf %164, %180 : vector<32x1xf32>
    %182 = arith.mulf %172, %181 : vector<32x1xf32>
    %183 = arith.subf %165, %182 : vector<32x1xf32>
    %184 = vector.broadcast %181 : vector<32x1xf32> to vector<32x2xf32>
    %185 = arith.mulf %163, %184 : vector<32x2xf32>
    %186 = vector.broadcast %183 : vector<32x1xf32> to vector<32x2xf32>
    %187 = arith.addf %185, %186 : vector<32x2xf32>
    %cst_94 = arith.constant 0.000000e+00 : f32
    %188 = vector.broadcast %cst_94 : f32 to vector<32x2xf32>
    %189 = arith.maximumf %187, %188 : vector<32x2xf32>
    %c0_95 = arith.constant 0 : index
    %c0_96 = arith.constant 0 : index
    %190 = vector.load %arg17[%c0_95, %c0_96] : memref<10x32xf32, #tpu.memory_space<vmem>>, vector<10x32xf32>
    %cst_97 = arith.constant dense<0.000000e+00> : vector<10x2xf32>
    %191 = tpu.matmul %190, %189, %cst_97 {dimension_numbers = #tpu.dot_dimension_numbers<[1], [0], [0], [1], [0, 0, 1, 1], [], []>} : vector<10x32xf32>, vector<32x2xf32>, vector<10x2xf32> -> vector<10x2xf32>
    %c0_98 = arith.constant 0 : index
    %c0_99 = arith.constant 0 : index
    %192 = vector.load %arg18[%c0_98, %c0_99] : memref<10x1xf32, #tpu.memory_space<vmem>>, vector<10x1xf32>
    %193 = vector.broadcast %192 : vector<10x1xf32> to vector<10x2xf32>
    %194 = arith.addf %191, %193 : vector<10x2xf32>
    %cst_100 = arith.constant dense<0xFF800000> : vector<2xf32>
    %195 = vector.multi_reduction <maximumf>, %194, %cst_100 [0] : vector<10x2xf32> to vector<2xf32>
    %196 = vector.shape_cast %195 : vector<2xf32> to vector<1x2xf32>
    %197 = vector.broadcast %196 : vector<1x2xf32> to vector<10x2xf32>
    %198 = arith.subf %194, %197 : vector<10x2xf32>
    %199 = math.exp %198 : vector<10x2xf32>
    %cst_101 = arith.constant dense<0.000000e+00> : vector<2xf32>
    %200 = vector.multi_reduction <add>, %199, %cst_101 [0] : vector<10x2xf32> to vector<2xf32>
    %201 = vector.shape_cast %200 : vector<2xf32> to vector<1x2xf32>
    %202 = tpu.reciprocal %201 {approx = true} : vector<1x2xf32> -> vector<1x2xf32>
    %203 = vector.broadcast %202 : vector<1x2xf32> to vector<10x2xf32>
    %204 = arith.mulf %199, %203 : vector<10x2xf32>
    %205 = math.exp %204 : vector<10x2xf32>
    %cst_102 = arith.constant dense<0.000000e+00> : vector<2xf32>
    %206 = vector.multi_reduction <add>, %205, %cst_102 [0] : vector<10x2xf32> to vector<2xf32>
    %207 = vector.shape_cast %206 : vector<2xf32> to vector<1x2xf32>
    %208 = vector.broadcast %207 : vector<1x2xf32> to vector<10x2xf32>
    %209 = arith.divf %205, %208 : vector<10x2xf32>
    %c0_103 = arith.constant 0 : index
    %c0_104 = arith.constant 0 : index
    %210 = vector.load %arg19[%c0_103, %c0_104] : memref<10x2xf32, #tpu.memory_space<vmem>>, vector<10x2xf32>
    tpu.vector_store %arg19[%c0_103, %c0_104], %209 {strides = array<i32>} : memref<10x2xf32, #tpu.memory_space<vmem>>, vector<10x2xf32>,
    return
  }
}

</mosaic_0001>

<bundles_post_ra>
// kernel: cnn_forward.1
= control target key start
LH: loop header
LB: loop body
LE: loop exit
PB: predicated region body
PF: predicated region fallthrough
CT: control target
= control target key end

     0   :  { %vm70_vm0 = vcmask 64512   ;;  %vm209_vm1 = vcmask 539648   ;;  %v3445_v48 = vmov 0   ;;  %vm335_vm8 = vcmask 130048   ;;  %s3450_s26 = smov 122   ;;  %s3451_s27 = smov 126   ;;  %s4716_s0 = inlined_call_operand.vmem [shape: f32[8,578], index: 0, kind: input, shape index: {}]   ;;  %s4717_s1 = inlined_call_operand.vmem [shape: f32[16,8], index: 1, kind: input, shape index: {}]   ;;  %s4718_s2 = inlined_call_operand.vmem [shape: f32[16,1], index: 2, kind: input, shape index: {}]   ;;  %s4719_s3 = inlined_call_operand.vmem [shape: f32[16,1], index: 3, kind: input, shape index: {}]   ;;  %s4720_s5 = inlined_call_operand.vmem [shape: bf16[512,162], index: 5, kind: input, shape index: {}]   ;;  %s4721_s4 = inlined_call_operand.vmem [shape: f32[4,32,16], index: 4, kind: input, shape index: {}]   ;;  %s4722_s6 = inlined_call_operand.vmem [shape: f32[32,1], index: 6, kind: input, shape index: {}]   ;;  %s4723_s7 = inlined_call_operand.vmem [shape: f32[32,1], index: 7, kind: input, shape index: {}]   ;;  %s4724_s8 = inlined_call_operand.vmem [shape: f32[4,64,32], index: 8, kind: input, shape index: {}]   ;;  %s4725_s9 = inlined_call_operand.vmem [shape: bf16[4,32,50], index: 9, kind: input, shape index: {}]   ;;  %s4726_s10 = inlined_call_operand.vmem [shape: f32[64,1], index: 10, kind: input, shape index: {}]   ;;  %s4727_s11 = inlined_call_operand.vmem [shape: f32[64,1], index: 11, kind: input, shape index: {}]   ;;  %s4728_s13 = inlined_call_operand.vmem [shape: f32[32,1], index: 13, kind: input, shape index: {}]   ;;  %s4729_s12 = inlined_call_operand.vmem [shape: f32[32,256], index: 12, kind: input, shape index: {}]   ;;  %s4730_s14 = inlined_call_operand.vmem [shape: f32[32,32], index: 14, kind: input, shape index: {}]   ;;  %s4731_s15 = inlined_call_operand.vmem [shape: f32[32,1], index: 15, kind: input, shape index: {}]   ;;  %s4732_s16 = inlined_call_operand.vmem [shape: f32[32,1], index: 16, kind: input, shape index: {}]   ;;  %s4733_s18 = inlined_call_operand.vmem [shape: f32[10,1], index: 18, kind: input, shape index: {}]   ;;  %s4734_s17 = inlined_call_operand.vmem [shape: f32[10,32], index: 17, kind: input, shape index: {}]   ;;  %s4735_s19 = inlined_call_operand.vmem [shape: f32[10,2], index: 19, kind: output, shape index: {}]  }
   0x1   :  { %4740 = sst [smem:[#allocation2_spill]] %s4716_s0  ;;  %3274 = vset.pattern.permute.xlu2 %v3445_v48  ;;  %3275 = vset.pattern.permute.xlu0 %v3445_v48  ;;  %vm1123_vm9 = vcmask 277504   ;;  %s3452_s28 = smov 124  }
   0x2   :  { %4741 = sst [smem:[#allocation3_spill]] %s4717_s1  ;;  %3276 = vset.pattern.permute.xlu1 %v3445_v48 }
   0x3   :  { %4742 = sst [smem:[#allocation4_spill]] %s4718_s2 }
   0x4   :  { %4743 = sst [smem:[#allocation5_spill]] %s4719_s3 }
   0x5   :  { %s4744_s20 = sld [smem:[#allocation2_spill]] }
   0x6   :  { %s4745_s25 = sld [smem:[#allocation3_spill]] }
   0x7   :  { %s4746_s21 = sld [smem:[#allocation4_spill]] }
   0x8   :  { %s4747_s2 = sld [smem:[#allocation5_spill]] }
   0xb   :  { %v65_v0 = vld [vmem:[%s4744_s20] sm:$0xff]  ;;  %v66_v1 = vld [vmem:[%s4744_s20 + $0x8] sm:$0xff]  ;;  %v67_v2 = vld [vmem:[%s4744_s20 + $0x10] sm:$0xff] }
   0xc   :  { %92 = vmatpush.msra.mxu0 %v65_v0  ;;  %115 = vmatpush.msra.mxu1 %v66_v1  ;;  %v63_v3 = vld [vmem:[%s4745_s25] sm:$0xff]  ;;  %v68_v4 = vld [vmem:[%s4744_s20 + $0x18] sm:$0xff]  ;;  %v64_v6 = vld [vmem:[%s4745_s25 + $0x8] sm:$0xff] }
   0xd   :  { %138 = vmatpush.msra.mxu2 %v67_v2  ;;  %2778 = vmatmul.msk.f32.vlgmr.msra.gmra.mxu0 %vm70_vm0, %v63_v3  ;;  %v69_v5 = vld [vmem:[%s4744_s20 + $0x20] sm:$0xff] }
   0xe   :  { %2780 = vmatmul.msk.f32.vlgmr.msra.gmra.mxu1 %vm70_vm0, %v63_v3  ;;  %2782 = vmatmul.msk.f32.vlgmr.msra.gmra.mxu2 %vm70_vm0, %v63_v3 }
   0xf   :  { %161 = vmatpush.msra.mxu3 %v68_v4  ;;  %184 = vmatpush.msrb.mxu0 %v69_v5 }
  0x10   :  { %2784 = vmatmul.msk.f32.vlgmr.msra.gmra.mxu3 %vm70_vm0, %v63_v3 }
  0x15   :  { %2779 = vmatmul.msk.f32.gmra.mxu0 %vm70_vm0, %v64_v6 }
  0x16   :  { %2781 = vmatmul.msk.f32.gmra.mxu1 %vm70_vm0, %v64_v6  ;;  %2783 = vmatmul.msk.f32.gmra.mxu2 %vm70_vm0, %v64_v6 }
  0x18   :  { %2785 = vmatmul.msk.f32.gmra.mxu3 %vm70_vm0, %v64_v6 }
  0x1d   :  { %2786 = vmatmul.msk.f32.vlgmr.msrb.gmra.mxu0 %vm70_vm0, %v63_v3 }
  0x25   :  { %2787 = vmatmul.msk.f32.gmra.mxu0 %vm70_vm0, %v64_v6 }
  0x8a   :  { %v3584_v7 = vpop.f32.mrf.mxu0 }
  0x8b   :  { %v3586_v8 = vpop.f32.mrf.mxu1  ;;  %v196_v24 = vmul.f32 %v3584_v7, %v3584_v7 }
  0x8c   :  { %v197_v25 = vmul.f32 %v3586_v8, %v3586_v8  ;;  %v206_v30 = vadd.f32 %v3586_v8, %v3584_v7 }
  0x8e   :  { %v221_v35 = vadd.f32 %v197_v25, %v196_v24  ;;  %v192_v25 = vld [vmem:[%s4746_s21] sm:$0xff] }
  0x91   :  { %v3588_v9 = vpop.f32.mrf.mxu2 }
  0x92   :  { %v3590_v10 = vpop.f32.mrf.mxu0  ;;  %v198_v31 = vmul.f32 %v3588_v9, %v3588_v9  ;;  %v207_v36 = vadd.f32 %v206_v30, %v3588_v9 }
  0x93   :  { %v3592_v11 = vpop.f32.mrf.mxu3  ;;  %v3594_v12 = vpop.f32.mrf.mxu1  ;;  %v201_v14 = vmul.f32 %v3590_v10, %v3590_v10 }
  0x94   :  { %v202_v15 = vmul.f32 %v3594_v12, %v3594_v12  ;;  %v214_v17 = vadd.f32 %v3594_v12, %v3590_v10  ;;  %v199_v39 = vmul.f32 %v3592_v11, %v3592_v11  ;;  %v222_v40 = vadd.f32 %v221_v35, %v198_v31 }
  0x95   :  { %v208_v42 = vadd.f32 %v207_v36, %v3592_v11 }
  0x96   :  { %v228_v21 = vadd.f32 %v202_v15, %v201_v14  ;;  %v223_v45 = vadd.f32 %v222_v40, %v199_v39  ;;  %v193_v14 = vld [vmem:[%s4746_s21 + $0x8] sm:$0xff] }
  0x99   :  { %v3596_v13 = vpop.f32.mrf.mxu2 }
  0x9a   :  { %v186_v16 = vpop.f32.mrf.mxu0  ;;  %v203_v18 = vmul.f32 %v3596_v13, %v3596_v13  ;;  %v215_v20 = vadd.f32 %v214_v17, %v3596_v13 }
  0x9b   :  { %v3606_v19 = vpop.f32.mrf.mxu3  ;;  %v200_v38 = vmul.f32 %v186_v16, %v186_v16  ;;  %v210_v41 = vsel %vm209_vm1, %v186_v16, 0.0 }
  0x9c   :  { %v204_v22 = vmul.f32 %v3606_v19, %v3606_v19  ;;  %v229_v23 = vadd.f32 %v228_v21, %v203_v18  ;;  %v216_v27 = vadd.f32 %v215_v20, %v3606_v19  ;;  %v211_v44 = vadd.f32 %v210_v41, %v208_v42  ;;  %v195_v21 = vld [vmem:[%s4747_s2 + $0x8] sm:$0xff] }
  0x9d   :  { %v224_v43 = vsel %vm209_vm1, %v200_v38, 0.0 }
  0x9e   :  { %v230_v33 = vadd.f32 %v229_v23, %v204_v22  ;;  %v225_v46 = vadd.f32 %v224_v43, %v223_v45 }
  0xa2   :  { %v189_v26 = vpop.f32.mrf.mxu0 }
  0xa3   :  { %v217_v28 = vsel %vm209_vm1, %v189_v26, 0.0  ;;  %v205_v29 = vmul.f32 %v189_v26, %v189_v26 }
  0xa4   :  { %v218_v32 = vadd.f32 %v217_v28, %v216_v27 }
  0xa5   :  { %v231_v34 = vsel %vm209_vm1, %v205_v29, 0.0  ;;  %v194_v29 = vld [vmem:[%s4747_s2] sm:$0xff] }
  0xa6   :  { %219 = vadd.xlane.f32.xlu0 %v218_v32  ;;  %v232_v37 = vadd.f32 %v231_v34, %v230_v33 }
  0xa8   :  { %233 = vadd.xlane.f32.xlu1 %v232_v37 }
  0xae   :  { %212 = vadd.xlane.f32.xlu0 %v211_v44 }
  0xb0   :  { %226 = vadd.xlane.f32.xlu1 %v225_v46 }
 0x119   :  { %v220_v47 = vpop.xlane.xlu0 %219 }
 0x11a   :  { %v236_v49 = vmul.f32 0.0017301039, %v220_v47 }
 0x11b   :  { %v234_v50 = vpop.xlane.xlu1 %233 }
 0x11c   :  { %v240_v51 = vmul.f32 %v236_v49, %v236_v49  ;;  %v238_v52 = vmul.f32 0.0017301039, %v234_v50 }
 0x11e   :  { %v242_v53 = vsub.f32 %v238_v52, %v240_v51 }
 0x120   :  { %v244_v54 = vmax.f32 %v242_v53, 0.0 }
 0x121   :  { %v213_v55 = vpop.xlane.xlu0 %212 }
 0x122   :  { %v246_v56 = vadd.f32 1e-05, %v244_v54  ;;  %v235_v57 = vmul.f32 0.0017301039, %v213_v55 }
 0x123   :  { %v227_v58 = vpop.xlane.xlu1 %226 }
 0x124   :  { %3397 = vrsqrt.f32 %v246_v56  ;;  %v239_v59 = vmul.f32 %v235_v57, %v235_v57  ;;  %v237_v60 = vmul.f32 0.0017301039, %v227_v58  ;;  %vm263_vm3 = vweird.f32 %v246_v56 }
 0x126   :  { %v241_v61 = vsub.f32 %v237_v60, %v239_v59  ;;  %v3209_v59 = vld [vmem:[%s4720_s5 + $0x74] sm:$0xf0]  ;;  %v3066_v60 = vld [vmem:[%s4720_s5 + $0x1f0] sm:$0xf] }
 0x128   :  { %v243_v62 = vmax.f32 %v241_v61, 0.0  ;;  %v3257_v61 = vld [vmem:[%s4720_s5 + $0x1f4] sm:$0xf0] }
 0x12a   :  { %v3398_v63 = vpop.eup %3397  ;;  %v245_v0 = vadd.f32 1e-05, %v243_v62 }
 0x12b   :  { %v258_v1 = vmul.f32 %v3398_v63, %v246_v56  ;;  %vm264_vm2 = vweird.f32 %v3398_v63 }
 0x12c   :  { %3399 = vrsqrt.f32 %v245_v0  ;;  %vm265_vm4 = vmor %vm263_vm3, %vm264_vm2  ;;  %vm253_vm6 = vweird.f32 %v245_v0 }
 0x12d   :  { %v259_v2 = vmul.f32 %v3398_v63, %v258_v1  ;;  %v3002_v1 = vld [vmem:[%s4720_s5 + $0x170] sm:$0xf] }
 0x12f   :  { %v260_v3 = vmul.f32 0.5, %v259_v2  ;;  %v2792_v2 = vld [vmem:[%s4721_s4 + $0x20] sm:$0xff] }
 0x131   :  { %v261_v4 = vsub.f32 1.5, %v260_v3  ;;  %v2800_v3 = vld [vmem:[%s4721_s4 + $0x40] sm:$0xff] }
 0x132   :  { %v3400_v5 = vpop.eup %3399 }
 0x133   :  { %v248_v6 = vmul.f32 %v3400_v5, %v245_v0  ;;  %v262_v15 = vmul.f32 %v3398_v63, %v261_v4  ;;  %vm254_vm5 = vweird.f32 %v3400_v5  ;;  %v3225_v0 = vld [vmem:[%s4720_s5 + $0xf4] sm:$0xf0] }
 0x134   :  { %vm255_vm7 = vmor %vm253_vm6, %vm254_vm5  ;;  %v3241_v4 = vld [vmem:[%s4720_s5 + $0x174] sm:$0xf0]  ;;  %vm1348_vm6 = vcmask 261120  }
 0x135   :  { %v249_v16 = vmul.f32 %v3400_v5, %v248_v6  ;;  %v266_v17 = vsel %vm265_vm4, %v3398_v63, %v262_v15  ;;  %v2938_v63 = vld [vmem:[%s4720_s5 + $0xf0] sm:$0xf]  ;;  %v2866_v15 = vld [vmem:[%s4720_s5 + $0x60] sm:$0xf] }
 0x136   :  { %v268_v18 = vmul.f32 %v266_v17, %v193_v14  ;;  %v3067_v14 = vor.u32 %v3257_v61, %v3066_v60  ;;  %v3058_v17 = vld [vmem:[%s4720_s5 + $0x1e0] sm:$0xf] }
 0x137   :  { %v250_v20 = vmul.f32 0.5, %v249_v16  ;;  %v3207_v16 = vld [vmem:[%s4720_s5 + $0x64] sm:$0xf0]  ;;  %v2978_v60 = vld [vmem:[%s4720_s5 + $0x140] sm:$0xf] }
 0x138   :  { %280 = vperm.xlu2 %3274, %v268_v18   ;;  %v270_v22 = vmul.f32 %v268_v18, %v236_v49  ;;  %v3255_v18 = vld [vmem:[%s4720_s5 + $0x1e4] sm:$0xf0] }
 0x139   :  { %v251_v23 = vsub.f32 1.5, %v250_v20  ;;  %v2939_v20 = vor.u32 %v3225_v0, %v2938_v63  ;;  %v2834_v0 = vld [vmem:[%s4720_s5 + $0x20] sm:$0xf] }
 0x13a   :  { %v272_v24 = vsub.f32 %v195_v21, %v270_v22  ;;  %v3003_v21 = vor.u32 %v3241_v4, %v3002_v1  ;;  %v2930_v22 = vld [vmem:[%s4720_s5 + $0xe0] sm:$0xf]  ;;  %v3199_v1 = vld [vmem:[%s4720_s5 + $0x24] sm:$0xf0] }
 0x13b   :  { %v252_v26 = vmul.f32 %v3400_v5, %v251_v23  ;;  %v3223_v23 = vld [vmem:[%s4720_s5 + $0xe4] sm:$0xf0] }
 0x13c   :  { %298 = vperm.xlu0 %3275, %v272_v24   ;;  %v2994_v24 = vld [vmem:[%s4720_s5 + $0x160] sm:$0xf]  ;;  %v3247_v4 = vld [vmem:[%s4720_s5 + $0x1a4] sm:$0xf0] }
 0x13d   :  { %v256_v27 = vsel %vm255_vm7, %v3400_v5, %v252_v26  ;;  %v2808_v5 = vld [vmem:[%s4721_s4 + $0x60] sm:$0xff]  ;;  %v2867_v26 = vor.u32 %v3207_v16, %v2866_v15  ;;  %v2970_v15 = vld [vmem:[%s4720_s5 + $0x130] sm:$0xf]  ;;  %vm1907_vm7 = vcmask 408576  }
 0x13e   :  { %v267_v28 = vmul.f32 %v256_v27, %v192_v25  ;;  %v3239_v25 = vld [vmem:[%s4720_s5 + $0x164] sm:$0xf0]  ;;  %v3059_v27 = vor.u32 %v3255_v18, %v3058_v17  ;;  %v3233_v17 = vld [vmem:[%s4720_s5 + $0x134] sm:$0xf0] }
 0x13f   :  { %v2971_v18 = vor.u32 %v3233_v17, %v2970_v15  ;;  %v3202_v15 = vld [vmem:[%s4720_s5 + $0x44] sm:$0xf] }
 0x140   :  { %275 = vperm.xlu2 %3274, %v267_v28   ;;  %v269_v30 = vmul.f32 %v267_v28, %v235_v57  ;;  %v2858_v28 = vld [vmem:[%s4720_s5 + $0x50] sm:$0xf]  ;;  %v3250_v17 = vld [vmem:[%s4720_s5 + $0x1c4] sm:$0xf] }
 0x142   :  { %v271_v31 = vsub.f32 %v194_v29, %v269_v30  ;;  %v3205_v29 = vld [vmem:[%s4720_s5 + $0x54] sm:$0xf0]  ;;  %v3050_v30 = vld [vmem:[%s4720_s5 + $0x1d0] sm:$0xf] }
 0x144   :  { %293 = vperm.xlu1 %3276, %v271_v31   ;;  %v3253_v31 = vld [vmem:[%s4720_s5 + $0x1d4] sm:$0xf0] }
 0x192   :  { %v281_v32 = vpop.permute.xlu2 %280 }
 0x193   :  { %v287_v33 = vmul.f32 %v281_v32, %v3590_v10  ;;  %v288_v34 = vmul.f32 %v281_v32, %v3594_v12  ;;  %v289_v35 = vmul.f32 %v281_v32, %v3596_v13  ;;  %v290_v36 = vmul.f32 %v281_v32, %v3606_v19 }
 0x194   :  { %v2931_v32 = vor.u32 %v3223_v23, %v2930_v22  ;;  %v3018_v22 = vld [vmem:[%s4720_s5 + $0x190] sm:$0xf] }
 0x19a   :  { %v276_v42 = vpop.permute.xlu2 %275 }
 0x19b   :  { %v283_v10 = vmul.f32 %v276_v42, %v3584_v7  ;;  %v284_v12 = vmul.f32 %v276_v42, %v3586_v8  ;;  %v285_v13 = vmul.f32 %v276_v42, %v3588_v9  ;;  %v286_v19 = vmul.f32 %v276_v42, %v3592_v11  ;;  %v2874_v9 = vld [vmem:[%s4720_s5 + $0x70] sm:$0xf]  ;;  %v331_v11 = vld [vmem:[%s4721_s4] sm:$0xff] }
 0x19c   :  { %v2875_v6 = vor.u32 %v3209_v59, %v2874_v9  ;;  %v2859_v42 = vor.u32 %v3205_v29, %v2858_v28  ;;  %v3219_v59 = vld [vmem:[%s4720_s5 + $0xc4] sm:$0xf0]  ;;  %v2962_v28 = vld [vmem:[%s4720_s5 + $0x120] sm:$0xf] }
 0x1ae   :  { %v299_v37 = vpop.permute.xlu0 %298 }
 0x1af   :  { %v305_v38 = vadd.f32 %v299_v37, %v287_v33  ;;  %v306_v39 = vadd.f32 %v299_v37, %v288_v34  ;;  %v307_v40 = vadd.f32 %v299_v37, %v289_v35  ;;  %v308_v41 = vadd.f32 %v299_v37, %v290_v36  ;;  %v2922_v34 = vld [vmem:[%s4720_s5 + $0xd0] sm:$0xf]  ;;  %v3221_v35 = vld [vmem:[%s4720_s5 + $0xd4] sm:$0xf0] }
 0x1b0   :  { %v2995_v33 = vor.u32 %v3239_v25, %v2994_v24  ;;  %v2986_v36 = vld [vmem:[%s4720_s5 + $0x150] sm:$0xf]  ;;  %v3237_v37 = vld [vmem:[%s4720_s5 + $0x154] sm:$0xf0] }
 0x1b1   :  { %v313_v43 = vmax.f32 %v305_v38, 0.0  ;;  %v314_v44 = vmax.f32 %v306_v39, 0.0  ;;  %v315_v45 = vmax.f32 %v307_v40, 0.0  ;;  %v316_v46 = vmax.f32 %v308_v41, 0.0  ;;  %v332_v38 = vld [vmem:[%s4721_s4 + $0x8] sm:$0xff] }
 0x1b2   :  { %v2793_v39 = vld [vmem:[%s4721_s4 + $0x28] sm:$0xff]  ;;  %v3245_v24 = vld [vmem:[%s4720_s5 + $0x194] sm:$0xf0] }
 0x1b3   :  { %v318_v47 = vmax.f32 %v313_v43, %v314_v44  ;;  %v320_v48 = vmax.f32 %v315_v45, %v316_v46  ;;  %v2801_v40 = vld [vmem:[%s4721_s4 + $0x48] sm:$0xff]  ;;  %v3051_v43 = vor.u32 %v3253_v31, %v3050_v30  ;;  %v2850_v44 = vld [vmem:[%s4720_s5 + $0x40] sm:$0xf]  ;;  %v3019_v25 = vor.u32 %v3245_v24, %v3018_v22  ;;  %v3220_v22 = vld [vmem:[%s4720_s5 + $0xd4] sm:$0xf] }
 0x1b4   :  { %v2809_v41 = vld [vmem:[%s4721_s4 + $0x68] sm:$0xff]  ;;  %v3042_v46 = vld [vmem:[%s4720_s5 + $0x1c0] sm:$0xf]  ;;  %v3236_v24 = vld [vmem:[%s4720_s5 + $0x154] sm:$0xf] }
 0x1b5   :  { %v322_v49 = vmax.f32 %v318_v47, %v320_v48  ;;  %v3203_v45 = vld [vmem:[%s4720_s5 + $0x44] sm:$0xf0]  ;;  %v2923_v48 = vor.u32 %v3221_v35, %v2922_v34  ;;  %v3010_v34 = vld [vmem:[%s4720_s5 + $0x180] sm:$0xf] }
 0x1b6   :  { %v294_v50 = vpop.permute.xlu1 %293  ;;  %v3251_v47 = vld [vmem:[%s4720_s5 + $0x1c4] sm:$0xf0] }
 0x1b7   :  { %v301_v51 = vadd.f32 %v294_v50, %v283_v10  ;;  %v302_v52 = vadd.f32 %v294_v50, %v284_v12  ;;  %v303_v53 = vadd.f32 %v294_v50, %v285_v13  ;;  %v304_v54 = vadd.f32 %v294_v50, %v286_v19  ;;  %362 = vmatpush.msrb.mxu1 %v322_v49  ;;  %v333_v19 = vld [vmem:[%s4721_s4 + $0x10] sm:$0xff]  ;;  %v3231_v30 = vld [vmem:[%s4720_s5 + $0x124] sm:$0xf0] }
 0x1b8   :  { %412 = vmatpush.msrb.mxu2 %v322_v49  ;;  %462 = vmatpush.msrb.mxu3 %v322_v49  ;;  %v2987_v10 = vor.u32 %v3237_v37, %v2986_v36  ;;  %v2851_v12 = vor.u32 %v3203_v45, %v2850_v44  ;;  %v3043_v13 = vor.u32 %v3251_v47, %v3042_v46  ;;  %v2802_v50 = vld [vmem:[%s4721_s4 + $0x50] sm:$0xff]  ;;  %v3243_v36 = vld [vmem:[%s4720_s5 + $0x184] sm:$0xf0]  ;;  %v2876_v45 = vld [vmem:[%s4720_s5 + $0x78] sm:$0xf0] }
 0x1b9   :  { %v309_v55 = vmax.f32 %v301_v51, 0.0  ;;  %v310_v56 = vmax.f32 %v302_v52, 0.0  ;;  %v311_v57 = vmax.f32 %v303_v53, 0.0  ;;  %v312_v58 = vmax.f32 %v304_v54, 0.0  ;;  %512 = vmatpush.msra.mxu0 %v322_v49  ;;  %v2794_v49 = vld [vmem:[%s4721_s4 + $0x30] sm:$0xff]  ;;  %v334_v52 = vld [vmem:[%s4721_s4 + $0x18] sm:$0xff] }
 0x1ba   :  { %v2810_v51 = vld [vmem:[%s4721_s4 + $0x70] sm:$0xff]  ;;  %v2795_v53 = vld [vmem:[%s4721_s4 + $0x38] sm:$0xff]  ;;  %v2963_v31 = vor.u32 %v3231_v30, %v2962_v28  ;;  %v3011_v37 = vor.u32 %v3243_v36, %v3010_v34  ;;  %v2916_v36 = vld [vmem:[%s4720_s5 + $0xc8] sm:$0xf0] }
 0x1bb   :  { %v317_v7 = vmax.f32 %v309_v55, %v310_v56  ;;  %v319_v8 = vmax.f32 %v311_v57, %v312_v58  ;;  %v2803_v54 = vld [vmem:[%s4721_s4 + $0x58] sm:$0xff]  ;;  %v2842_v56 = vld [vmem:[%s4720_s5 + $0x30] sm:$0xf]  ;;  %v3208_v44 = vld [vmem:[%s4720_s5 + $0x74] sm:$0xf] }
 0x1bc   :  { %v2811_v55 = vld [vmem:[%s4721_s4 + $0x78] sm:$0xff]  ;;  %v3034_v58 = vld [vmem:[%s4720_s5 + $0x1b0] sm:$0xf]  ;;  %v3256_v46 = vld [vmem:[%s4720_s5 + $0x1f4] sm:$0xf]  ;;  %v2879_v47 = vor.u32 %v3208_v44, %v2876_v45 }
 0x1bd   :  { %v321_v62 = vmax.f32 %v317_v7, %v319_v8  ;;  %v3201_v57 = vld [vmem:[%s4720_s5 + $0x34] sm:$0xf0]  ;;  %v3200_v28 = vld [vmem:[%s4720_s5 + $0x34] sm:$0xf]  ;;  %v3246_v44 = vld [vmem:[%s4720_s5 + $0x1a4] sm:$0xf] }
 0x1be   :  { %v2843_v7 = vor.u32 %v3201_v57, %v2842_v56  ;;  %v3249_v8 = vld [vmem:[%s4720_s5 + $0x1b4] sm:$0xf0]  ;;  %v3060_v56 = vld [vmem:[%s4720_s5 + $0x1e8] sm:$0xf0]  ;;  %v3248_v30 = vld [vmem:[%s4720_s5 + $0x1b4] sm:$0xf] }
 0x1bf   :  { %363 = vmatpush.msrb.mxu1 %v321_v62  ;;  %413 = vmatpush.msrb.mxu2 %v321_v62  ;;  %v3035_v9 = vor.u32 %v3249_v8, %v3034_v58  ;;  %v3224_v58 = vld [vmem:[%s4720_s5 + $0xf4] sm:$0xf] }
 0x1c0   :  { %463 = vmatpush.msrb.mxu3 %v321_v62  ;;  %513 = vmatpush.msra.mxu0 %v321_v62  ;;  %v3235_v62 = vld [vmem:[%s4720_s5 + $0x144] sm:$0xf0]  ;;  %v3240_v8 = vld [vmem:[%s4720_s5 + $0x174] sm:$0xf] }
 0x1c1   :  { %2788 = vmatmul.msk.f32.vlgmr.msrb.gmra.mxu1 %vm335_vm8, %v331_v11  ;;  %2796 = vmatmul.msk.f32.vlgmr.msrb.gmra.mxu2 %vm335_vm8, %v2792_v2  ;;  %v2914_v11 = vld [vmem:[%s4720_s5 + $0xc0] sm:$0xf]  ;;  %v2979_v63 = vor.u32 %v3235_v62, %v2978_v60  ;;  %v3204_v60 = vld [vmem:[%s4720_s5 + $0x54] sm:$0xf] }
 0x1c2   :  { %2804 = vmatmul.msk.f32.vlgmr.msrb.gmra.mxu3 %vm335_vm8, %v2800_v3  ;;  %2812 = vmatmul.msk.f32.vlgmr.msra.gmra.mxu0 %vm335_vm8, %v2808_v5  ;;  %v2915_v61 = vor.u32 %v3219_v59, %v2914_v11  ;;  %v3026_v2 = vld [vmem:[%s4720_s5 + $0x1a0] sm:$0xf]  ;;  %v2835_v3 = vor.u32 %v3199_v1, %v2834_v0  ;;  %v3004_v11 = vld [vmem:[%s4720_s5 + $0x178] sm:$0xf0]  ;;  %v3252_v62 = vld [vmem:[%s4720_s5 + $0x1d4] sm:$0xf] }
 0x1c3   :  { %963 = vmatpush.bf16.msra.mxu1 %v2875_v6  ;;  %1020 = vmatpush.bf16.msrb.mxu0 %v3067_v14  ;;  %v3027_v5 = vor.u32 %v3247_v4, %v3026_v2  ;;  %v2906_v6 = vld [vmem:[%s4720_s5 + $0xb0] sm:$0xf]  ;;  %v3217_v14 = vld [vmem:[%s4720_s5 + $0xb4] sm:$0xf0]  ;;  %v3007_v59 = vor.u32 %v3240_v8, %v3004_v11  ;;  %v3052_v0 = vld [vmem:[%s4720_s5 + $0x1d8] sm:$0xf0] }
 0x1c4   :  { %982 = vmatpush.bf16.msra.mxu2 %v2939_v20  ;;  %1001 = vmatpush.bf16.msra.mxu3 %v3003_v21  ;;  %v2907_v16 = vor.u32 %v3217_v14, %v2906_v6  ;;  %v2826_v20 = vld [vmem:[%s4720_s5 + $0x10] sm:$0xf]  ;;  %v3197_v21 = vld [vmem:[%s4720_s5 + $0x14] sm:$0xf0]  ;;  %v3055_v1 = vor.u32 %v3252_v62, %v3052_v0  ;;  %v3222_v2 = vld [vmem:[%s4720_s5 + $0xe4] sm:$0xf] }
 0x1c5   :  { %v2827_v23 = vor.u32 %v3197_v21, %v2826_v20  ;;  %v3238_v4 = vld [vmem:[%s4720_s5 + $0x164] sm:$0xf]  ;;  %v2996_v6 = vld [vmem:[%s4720_s5 + $0x168] sm:$0xf0] }
 0x1c6   :  { %v2999_v14 = vor.u32 %v3238_v4, %v2996_v6  ;;  %v3044_v20 = vld [vmem:[%s4720_s5 + $0x1c8] sm:$0xf0]  ;;  %v3194_v62 = vld [vmem:[%s4720_s5 + $0x4] sm:$0xf] }
 0x1c7   :  { %964 = vmatpush.bf16.msra.mxu1 %v2867_v26  ;;  %1021 = vmatpush.bf16.msrb.mxu0 %v3059_v27  ;;  %v2898_v26 = vld [vmem:[%s4720_s5 + $0xa0] sm:$0xf]  ;;  %v3215_v27 = vld [vmem:[%s4720_s5 + $0xa4] sm:$0xf0]  ;;  %v3047_v21 = vor.u32 %v3250_v17, %v3044_v20  ;;  %v2900_v8 = vld [vmem:[%s4720_s5 + $0xa8] sm:$0xf0] }
 0x1c8   :  { %983 = vmatpush.bf16.msra.mxu2 %v2931_v32  ;;  %1002 = vmatpush.bf16.msra.mxu3 %v2995_v33  ;;  %v2899_v29 = vor.u32 %v3215_v27, %v2898_v26  ;;  %v2818_v32 = vld [vmem:[%s4720_s5] sm:$0xf]  ;;  %v3195_v33 = vld [vmem:[%s4720_s5 + $0x4] sm:$0xf0]  ;;  %v2988_v26 = vld [vmem:[%s4720_s5 + $0x158] sm:$0xf0] }
 0x1c9   :  { %2789 = vmatmul.msk.f32.gmra.mxu1 %vm335_vm8, %v332_v38  ;;  %2797 = vmatmul.msk.f32.gmra.mxu2 %vm335_vm8, %v2793_v39  ;;  %v2819_v35 = vor.u32 %v3195_v33, %v2818_v32  ;;  %v2890_v38 = vld [vmem:[%s4720_s5 + $0x90] sm:$0xf]  ;;  %v3213_v39 = vld [vmem:[%s4720_s5 + $0x94] sm:$0xf0]  ;;  %v2991_v27 = vor.u32 %v3236_v24, %v2988_v26  ;;  %v3036_v32 = vld [vmem:[%s4720_s5 + $0x1b8] sm:$0xf0] }
 0x1ca   :  { %2805 = vmatmul.msk.f32.gmra.mxu3 %vm335_vm8, %v2801_v40  ;;  %2813 = vmatmul.msk.f32.gmra.mxu0 %vm335_vm8, %v2809_v41  ;;  %v2954_v40 = vld [vmem:[%s4720_s5 + $0x110] sm:$0xf]  ;;  %v2891_v41 = vor.u32 %v3213_v39, %v2890_v38  ;;  %v3039_v34 = vor.u32 %v3248_v30, %v3036_v32  ;;  %v3242_v4 = vld [vmem:[%s4720_s5 + $0x184] sm:$0xf]  ;;  %v3212_v17 = vld [vmem:[%s4720_s5 + $0x94] sm:$0xf] }
 0x1cb   :  { %965 = vmatpush.bf16.msra.mxu1 %v2859_v42  ;;  %1022 = vmatpush.bf16.msrb.mxu0 %v3051_v43  ;;  %v3229_v42 = vld [vmem:[%s4720_s5 + $0x114] sm:$0xf0]  ;;  %v3228_v20 = vld [vmem:[%s4720_s5 + $0x114] sm:$0xf] }
 0x1cc   :  { %984 = vmatpush.bf16.msra.mxu2 %v2923_v48  ;;  %1003 = vmatpush.bf16.msra.mxu3 %v2987_v10  ;;  %v2955_v43 = vor.u32 %v3229_v42, %v2954_v40  ;;  %v3068_v48 = vld [vmem:[%s4720_s5 + $0x1f8] sm:$0xf0]  ;;  %v2980_v40 = vld [vmem:[%s4720_s5 + $0x148] sm:$0xf0]  ;;  %v3198_v42 = vld [vmem:[%s4720_s5 + $0x24] sm:$0xf] }
 0x1cd   :  { %v3071_v10 = vor.u32 %v3256_v46, %v3068_v48  ;;  %v3028_v46 = vld [vmem:[%s4720_s5 + $0x1a8] sm:$0xf0]  ;;  %v3216_v48 = vld [vmem:[%s4720_s5 + $0xb4] sm:$0xf] }
 0x1cf   :  { %966 = vmatpush.bf16.msra.mxu1 %v2851_v12  ;;  %1023 = vmatpush.bf16.msrb.mxu0 %v3043_v13  ;;  %v2882_v12 = vld [vmem:[%s4720_s5 + $0x80] sm:$0xf]  ;;  %v3211_v13 = vld [vmem:[%s4720_s5 + $0x84] sm:$0xf0] }
 0x1d0   :  { %985 = vmatpush.bf16.msra.mxu2 %v2915_v61  ;;  %1004 = vmatpush.bf16.msra.mxu3 %v2979_v63  ;;  %v2860_v61 = vld [vmem:[%s4720_s5 + $0x58] sm:$0xf0] }
 0x1d1   :  { %2790 = vmatmul.msk.f32.gmra.mxu1 %vm335_vm8, %v333_v19  ;;  %2798 = vmatmul.msk.f32.gmra.mxu2 %vm335_vm8, %v2794_v49  ;;  %v2946_v19 = vld [vmem:[%s4720_s5 + $0x100] sm:$0xf]  ;;  %v2883_v49 = vor.u32 %v3211_v13, %v2882_v12  ;;  %v2863_v63 = vor.u32 %v3204_v60, %v2860_v61  ;;  %v3232_v12 = vld [vmem:[%s4720_s5 + $0x134] sm:$0xf]  ;;  %v3230_v60 = vld [vmem:[%s4720_s5 + $0x124] sm:$0xf] }
 0x1d2   :  { %2806 = vmatmul.msk.f32.gmra.mxu3 %vm335_vm8, %v2802_v50  ;;  %2814 = vmatmul.msk.f32.gmra.mxu0 %vm335_vm8, %v2810_v51  ;;  %v3227_v50 = vld [vmem:[%s4720_s5 + $0x104] sm:$0xf0]  ;;  %v2964_v61 = vld [vmem:[%s4720_s5 + $0x128] sm:$0xf0] }
 0x1d3   :  { %967 = vmatpush.bf16.msra.mxu1 %v2843_v7  ;;  %1024 = vmatpush.bf16.msrb.mxu0 %v3035_v9  ;;  %v2947_v51 = vor.u32 %v3227_v50, %v2946_v19  ;;  %v2940_v7 = vld [vmem:[%s4720_s5 + $0xf8] sm:$0xf0] }
 0x1d4   :  { %986 = vmatpush.bf16.msra.mxu2 %v2907_v16  ;;  %1005 = vmatpush.bf16.msra.mxu3 %v2971_v18  ;;  %v2943_v9 = vor.u32 %v3224_v58, %v2940_v7  ;;  %v2852_v16 = vld [vmem:[%s4720_s5 + $0x48] sm:$0xf0]  ;;  %v3020_v58 = vld [vmem:[%s4720_s5 + $0x198] sm:$0xf0]  ;;  %v3214_v7 = vld [vmem:[%s4720_s5 + $0xa4] sm:$0xf] }
 0x1d5   :  { %v2855_v18 = vor.u32 %v3202_v15, %v2852_v16 }
 0x1d7   :  { %968 = vmatpush.bf16.msra.mxu1 %v2835_v3  ;;  %1025 = vmatpush.bf16.msrb.mxu0 %v3027_v5  ;;  %v2932_v3 = vld [vmem:[%s4720_s5 + $0xe8] sm:$0xf0] }
 0x1d8   :  { %987 = vmatpush.bf16.msra.mxu2 %v2899_v29  ;;  %1006 = vmatpush.bf16.msra.mxu3 %v2963_v31  ;;  %v2935_v5 = vor.u32 %v3222_v2, %v2932_v3  ;;  %v2844_v29 = vld [vmem:[%s4720_s5 + $0x38] sm:$0xf0]  ;;  %v2967_v2 = vor.u32 %v3230_v60, %v2964_v61  ;;  %v2820_v3 = vld [vmem:[%s4720_s5 + $0x8] sm:$0xf0] }
 0x1d9   :  { %2791 = vmatmul.msk.f32.gmra.mxu1 %vm335_vm8, %v334_v52  ;;  %2799 = vmatmul.msk.f32.gmra.mxu2 %vm335_vm8, %v2795_v53  ;;  %v3206_v52 = vld [vmem:[%s4720_s5 + $0x64] sm:$0xf]  ;;  %v2868_v53 = vld [vmem:[%s4720_s5 + $0x68] sm:$0xf0]  ;;  %v2847_v31 = vor.u32 %v3200_v28, %v2844_v29  ;;  %v2823_v15 = vor.u32 %v3194_v62, %v2820_v3 }
 0x1da   :  { %2807 = vmatmul.msk.f32.gmra.mxu3 %vm335_vm8, %v2803_v54  ;;  %2815 = vmatmul.msk.f32.gmra.mxu0 %vm335_vm8, %v2811_v55  ;;  %v3254_v54 = vld [vmem:[%s4720_s5 + $0x1e4] sm:$0xf]  ;;  %v2871_v55 = vor.u32 %v3206_v52, %v2868_v53  ;;  %v3196_v53 = vld [vmem:[%s4720_s5 + $0x14] sm:$0xf] }
 0x1db   :  { %969 = vmatpush.bf16.msra.mxu1 %v2827_v23  ;;  %1026 = vmatpush.bf16.msrb.mxu0 %v3019_v25  ;;  %v3063_v57 = vor.u32 %v3254_v54, %v3060_v56  ;;  %v2924_v23 = vld [vmem:[%s4720_s5 + $0xd8] sm:$0xf0] }
 0x1dc   :  { %988 = vmatpush.bf16.msra.mxu2 %v2891_v41  ;;  %1007 = vmatpush.bf16.msra.mxu3 %v2955_v43  ;;  %v2927_v25 = vor.u32 %v3220_v22, %v2924_v23  ;;  %v2836_v43 = vld [vmem:[%s4720_s5 + $0x28] sm:$0xf0]  ;;  %v2828_v54 = vld [vmem:[%s4720_s5 + $0x18] sm:$0xf0] }
 0x1dd   :  { %v2839_v45 = vor.u32 %v3198_v42, %v2836_v43  ;;  %v2956_v23 = vld [vmem:[%s4720_s5 + $0x118] sm:$0xf0]  ;;  %v2948_v42 = vld [vmem:[%s4720_s5 + $0x108] sm:$0xf0] }
 0x1df   :  { %970 = vmatpush.bf16.msra.mxu1 %v2819_v35  ;;  %1027 = vmatpush.bf16.msrb.mxu0 %v3011_v37  ;;  %v3218_v35 = vld [vmem:[%s4720_s5 + $0xc4] sm:$0xf] }
 0x1e0   :  { %989 = vmatpush.bf16.msra.mxu2 %v2883_v49  ;;  %1008 = vmatpush.bf16.msra.mxu3 %v2947_v51  ;;  %v3234_v37 = vld [vmem:[%s4720_s5 + $0x144] sm:$0xf]  ;;  %v2919_v39 = vor.u32 %v3218_v35, %v2916_v36  ;;  %v2972_v49 = vld [vmem:[%s4720_s5 + $0x138] sm:$0xf0]  ;;  %v2884_v36 = vld [vmem:[%s4720_s5 + $0x88] sm:$0xf0] }
 0x1e1   :  { %v2983_v41 = vor.u32 %v3234_v37, %v2980_v40  ;;  %v2975_v52 = vor.u32 %v3232_v12, %v2972_v49  ;;  %v3210_v35 = vld [vmem:[%s4720_s5 + $0x84] sm:$0xf] }
 0x1e2   :  { %v3226_v37 = vld [vmem:[%s4720_s5 + $0x104] sm:$0xf] }
 0x1e3   :  { %1039 = vmatpush.bf16.msrb.mxu1 %v2879_v47  ;;  %1096 = vmatpush.bf16.msra.mxu0 %v3071_v10  ;;  %v3031_v47 = vor.u32 %v3246_v44, %v3028_v46  ;;  %v2908_v10 = vld [vmem:[%s4720_s5 + $0xb8] sm:$0xf0] }
 0x1e4   :  { %1058 = vmatpush.bf16.msrb.mxu2 %v2943_v9  ;;  %1077 = vmatpush.bf16.msrb.mxu3 %v3007_v59  ;;  %v2911_v19 = vor.u32 %v3216_v48, %v2908_v10  ;;  %v2903_v59 = vor.u32 %v3214_v7, %v2900_v8 }
 0x1e7   :  { %1040 = vmatpush.bf16.msrb.mxu1 %v2871_v55  ;;  %1097 = vmatpush.bf16.msra.mxu0 %v3063_v57  ;;  %v3244_v55 = vld [vmem:[%s4720_s5 + $0x194] sm:$0xf]  ;;  %v2831_v57 = vor.u32 %v3196_v53, %v2828_v54 }
 0x1e8   :  { %1059 = vmatpush.bf16.msrb.mxu2 %v2935_v5  ;;  %1078 = vmatpush.bf16.msrb.mxu3 %v2999_v14  ;;  %v3023_v11 = vor.u32 %v3244_v55, %v3020_v58  ;;  %v3012_v5 = vld [vmem:[%s4720_s5 + $0x188] sm:$0xf0] }
 0x1e9   :  { %v3015_v16 = vor.u32 %v3242_v4, %v3012_v5 }
 0x1eb   :  { %1041 = vmatpush.bf16.msrb.mxu1 %v2863_v63  ;;  %1098 = vmatpush.bf16.msra.mxu0 %v3055_v1 }
 0x1ec   :  { %1060 = vmatpush.bf16.msrb.mxu2 %v2927_v25  ;;  %1079 = vmatpush.bf16.msrb.mxu3 %v2991_v27  ;;  %v2959_v25 = vor.u32 %v3228_v20, %v2956_v23 }
 0x1ef   :  { %1042 = vmatpush.bf16.msrb.mxu1 %v2855_v18  ;;  %1099 = vmatpush.bf16.msra.mxu0 %v3047_v21  ;;  %v2892_v18 = vld [vmem:[%s4720_s5 + $0x98] sm:$0xf0] }
 0x1f0   :  { %1061 = vmatpush.bf16.msrb.mxu2 %v2919_v39  ;;  %1080 = vmatpush.bf16.msrb.mxu3 %v2983_v41  ;;  %v2895_v22 = vor.u32 %v3212_v17, %v2892_v18  ;;  %v2887_v41 = vor.u32 %v3210_v35, %v2884_v36 }
 0x1f3   :  { %1043 = vmatpush.bf16.msrb.mxu1 %v2847_v31  ;;  %1100 = vmatpush.bf16.msra.mxu0 %v3039_v34 }
 0x1f4   :  { %1062 = vmatpush.bf16.msrb.mxu2 %v2911_v19  ;;  %1081 = vmatpush.bf16.msrb.mxu3 %v2975_v52 }
 0x1f7   :  { %1044 = vmatpush.bf16.msrb.mxu1 %v2839_v45  ;;  %1101 = vmatpush.bf16.msra.mxu0 %v3031_v47  ;;  %v2951_v45 = vor.u32 %v3226_v37, %v2948_v42 }
 0x1f8   :  { %1063 = vmatpush.bf16.msrb.mxu2 %v2903_v59  ;;  %1082 = vmatpush.bf16.msrb.mxu3 %v2967_v2 }
 0x1fb   :  { %1045 = vmatpush.bf16.msrb.mxu1 %v2831_v57  ;;  %1102 = vmatpush.bf16.msra.mxu0 %v3023_v11 }
 0x1fc   :  { %1064 = vmatpush.bf16.msrb.mxu2 %v2895_v22  ;;  %1083 = vmatpush.bf16.msrb.mxu3 %v2959_v25 }
 0x1ff   :  { %1046 = vmatpush.bf16.msrb.mxu1 %v2823_v15  ;;  %1103 = vmatpush.bf16.msra.mxu0 %v3015_v16 }
 0x200   :  { %1065 = vmatpush.bf16.msrb.mxu2 %v2887_v41  ;;  %1084 = vmatpush.bf16.msrb.mxu3 %v2951_v45 }
 0x23e   :  { %v365_v33 = vpop.f32.mrf.mxu1 }
 0x23f   :  { %v515_v38 = vpop.f32.mrf.mxu0  ;;  %v377_v13 = vpack.c.bf16 %v365_v33, %v365_v33 }
 0x240   :  { %v527_v50 = vpack.c.bf16 %v515_v38, %v515_v38 }
 0x241   :  { %v535_v63 = vunpack.c.l.b16 %v377_v13 }
 0x242   :  { %v571_v6 = vunpack.c.l.b16 %v527_v50 }
 0x244   :  { %v415_v51 = vpop.f32.mrf.mxu2 }
 0x245   :  { %v465_v56 = vpop.f32.mrf.mxu3  ;;  %v427_v26 = vpack.c.bf16 %v415_v51, %v415_v51 }
 0x246   :  { %v368_v9 = vpop.f32.mrf.mxu1  ;;  %v477_v28 = vpack.c.bf16 %v465_v56, %v465_v56 }
 0x247   :  { %v378_v0 = vpack.c.bf16 %v368_v9, %v368_v9  ;;  %v518_v1 = vpop.f32.mrf.mxu0  ;;  %v547_v38 = vunpack.c.l.b16 %v427_v26 }
 0x248   :  { %v528_v14 = vpack.c.bf16 %v518_v1, %v518_v1  ;;  %v559_v43 = vunpack.c.l.b16 %v477_v28 }
 0x249   :  { %v536_v21 = vunpack.c.l.b16 %v378_v0 }
 0x24a   :  { %v572_v24 = vunpack.c.l.b16 %v528_v14 }
 0x24b   :  { %v539_v27 = vpack.c.b16 %v536_v21, %v535_v63 }
 0x24c   :  { %v575_v29 = vpack.c.b16 %v572_v24, %v571_v6  ;;  %v418_v30 = vpop.f32.mrf.mxu2 }
 0x24d   :  { %v428_v31 = vpack.c.bf16 %v418_v30, %v418_v30  ;;  %v468_v32 = vpop.f32.mrf.mxu3  ;;  %971 = vmatmul.bf16.vlgmr.msra.gmra.mxu1 %v539_v27 }
 0x24e   :  { %v478_v33 = vpack.c.bf16 %v468_v32, %v468_v32  ;;  %1028 = vmatmul.bf16.vlgmr.msrb.gmra.mxu0 %v575_v29  ;;  %v371_v34 = vpop.f32.mrf.mxu1 }
 0x24f   :  { %v548_v39 = vunpack.c.l.b16 %v428_v31  ;;  %v521_v40 = vpop.f32.mrf.mxu0  ;;  %v379_v48 = vpack.c.bf16 %v371_v34, %v371_v34 }
 0x250   :  { %v560_v44 = vunpack.c.l.b16 %v478_v33  ;;  %v529_v10 = vpack.c.bf16 %v521_v40, %v521_v40 }
 0x251   :  { %v551_v46 = vpack.c.b16 %v548_v39, %v547_v38  ;;  %v537_v49 = vunpack.c.l.b16 %v379_v48 }
 0x252   :  { %v563_v47 = vpack.c.b16 %v560_v44, %v559_v43  ;;  %v573_v52 = vunpack.c.l.b16 %v529_v10 }
 0x253   :  { %990 = vmatmul.bf16.vlgmr.msra.gmra.mxu2 %v551_v46 }
 0x254   :  { %1009 = vmatmul.bf16.vlgmr.msra.gmra.mxu3 %v563_v47  ;;  %v421_v12 = vpop.f32.mrf.mxu2 }
 0x255   :  { %v471_v13 = vpop.f32.mrf.mxu3  ;;  %v429_v56 = vpack.c.bf16 %v421_v12, %v421_v12 }
 0x256   :  { %v374_v19 = vpop.f32.mrf.mxu1  ;;  %v479_v58 = vpack.c.bf16 %v471_v13, %v471_v13 }
 0x257   :  { %v380_v50 = vpack.c.bf16 %v374_v19, %v374_v19  ;;  %v524_v51 = vpop.f32.mrf.mxu0  ;;  %v549_v60 = vunpack.c.l.b16 %v429_v56 }
 0x258   :  { %v530_v53 = vpack.c.bf16 %v524_v51, %v524_v51  ;;  %v561_v62 = vunpack.c.l.b16 %v479_v58 }
 0x259   :  { %v538_v54 = vunpack.c.l.b16 %v380_v50 }
 0x25a   :  { %v574_v55 = vunpack.c.l.b16 %v530_v53 }
 0x25b   :  { %v540_v57 = vpack.c.b16 %v538_v54, %v537_v49 }
 0x25c   :  { %v424_v7 = vpop.f32.mrf.mxu2  ;;  %v576_v8 = vpack.c.b16 %v574_v55, %v573_v52 }
 0x25d   :  { %v430_v9 = vpack.c.bf16 %v424_v7, %v424_v7  ;;  %v474_v11 = vpop.f32.mrf.mxu3  ;;  %976 = vmatmul.bf16.gmra.mxu1 %v540_v57 }
 0x25e   :  { %v480_v59 = vpack.c.bf16 %v474_v11, %v474_v11  ;;  %1033 = vmatmul.bf16.gmra.mxu0 %v576_v8 }
 0x25f   :  { %v550_v61 = vunpack.c.l.b16 %v430_v9 }
 0x260   :  { %v562_v63 = vunpack.c.l.b16 %v480_v59 }
 0x261   :  { %v552_v0 = vpack.c.b16 %v550_v61, %v549_v60 }
 0x262   :  { %v564_v1 = vpack.c.b16 %v562_v63, %v561_v62 }
 0x263   :  { %995 = vmatmul.bf16.gmra.mxu2 %v552_v0 }
 0x264   :  { %1014 = vmatmul.bf16.gmra.mxu3 %v564_v1 }
 0x26d   :  { %1047 = vmatmul.bf16.vlgmr.msrb.gmra.mxu1 %v539_v27 }
 0x26e   :  { %1104 = vmatmul.bf16.vlgmr.msra.gmra.mxu0 %v575_v29 }
 0x273   :  { %1066 = vmatmul.bf16.vlgmr.msrb.gmra.mxu2 %v551_v46 }
 0x274   :  { %1085 = vmatmul.bf16.vlgmr.msrb.gmra.mxu3 %v563_v47 }
 0x27d   :  { %1052 = vmatmul.bf16.gmra.mxu1 %v540_v57 }
 0x27e   :  { %1109 = vmatmul.bf16.gmra.mxu0 %v576_v8 }
 0x283   :  { %1071 = vmatmul.bf16.gmra.mxu2 %v552_v0 }
 0x284   :  { %1090 = vmatmul.bf16.gmra.mxu3 %v564_v1 }
 0x2ca   :  { %v972_v2 = vpop.f32.mrf.mxu1 }
 0x2cb   :  { %v1029_v3 = vpop.f32.mrf.mxu0 }
 0x2d2   :  { %v974_v4 = vpop.f32.mrf.mxu1 }
 0x2d3   :  { %v4096_v5 = vpop.f32.mrf.mxu0 }
 0x2d6   :  { %v991_v6 = vpop.f32.mrf.mxu2 }
 0x2d7   :  { %v1010_v14 = vpop.f32.mrf.mxu3  ;;  %v992_v41 = vadd.f32 %v991_v6, %v972_v2 }
 0x2d9   :  { %v1011_v48 = vadd.f32 %v1010_v14, %v992_v41 }
 0x2da   :  { %v977_v15 = vpop.f32.mrf.mxu1 }
 0x2db   :  { %v1034_v18 = vpop.f32.mrf.mxu0  ;;  %v4102_v54 = vadd.f32 %v1029_v3, %v1011_v48 }
 0x2dd   :  { %v1115_v59 = vmul.f32 %v4102_v54, %v4102_v54 }
 0x2de   :  { %v993_v16 = vpop.f32.mrf.mxu2 }
 0x2df   :  { %v1012_v17 = vpop.f32.mrf.mxu3  ;;  %v994_v11 = vadd.f32 %v993_v16, %v974_v4 }
 0x2e1   :  { %v1013_v3 = vadd.f32 %v1012_v17, %v994_v11 }
 0x2e2   :  { %v979_v20 = vpop.f32.mrf.mxu1 }
 0x2e3   :  { %v1036_v23 = vpop.f32.mrf.mxu0  ;;  %v4116_v14 = vadd.f32 %v4096_v5, %v1013_v3 }
 0x2e6   :  { %v996_v21 = vpop.f32.mrf.mxu2 }
 0x2e7   :  { %v1015_v22 = vpop.f32.mrf.mxu3  ;;  %v997_v35 = vadd.f32 %v996_v21, %v977_v15 }
 0x2e9   :  { %v1016_v42 = vadd.f32 %v1015_v22, %v997_v35 }
 0x2ea   :  { %v1048_v26 = vpop.f32.mrf.mxu1 }
 0x2eb   :  { %v1105_v27 = vpop.f32.mrf.mxu0  ;;  %v4098_v10 = vadd.f32 %v1034_v18, %v1016_v42 }
 0x2ee   :  { %v998_v24 = vpop.f32.mrf.mxu2 }
 0x2ef   :  { %v1017_v25 = vpop.f32.mrf.mxu3  ;;  %v999_v45 = vadd.f32 %v998_v24, %v979_v20  ;;  %v1119_v20 = vmul.f32 %v4098_v10, %v4098_v10  ;;  %v1117_v24 = vmul.f32 %v4116_v14, %v4116_v14 }
 0x2f1   :  { %v1018_v13 = vadd.f32 %v1017_v25, %v999_v45 }
 0x2f2   :  { %v1050_v30 = vpop.f32.mrf.mxu1 }
 0x2f3   :  { %v1107_v31 = vpop.f32.mrf.mxu0  ;;  %v4104_v57 = vadd.f32 %v1036_v23, %v1018_v13 }
 0x2f5   :  { %v1121_v0 = vmul.f32 %v4104_v57, %v4104_v57 }
 0x2f6   :  { %v1067_v28 = vpop.f32.mrf.mxu2 }
 0x2f7   :  { %v1086_v29 = vpop.f32.mrf.mxu3  ;;  %v1068_v34 = vadd.f32 %v1067_v28, %v1048_v26 }
 0x2f9   :  { %v1087_v38 = vadd.f32 %v1086_v29, %v1068_v34 }
 0x2fa   :  { %v1053_v36 = vpop.f32.mrf.mxu1 }
 0x2fb   :  { %v1110_v43 = vpop.f32.mrf.mxu0  ;;  %v1106_v46 = vadd.f32 %v1105_v27, %v1087_v38 }
 0x2fd   :  { %v1116_v53 = vmul.f32 %v1106_v46, %v1106_v46  ;;  %v1124_v17 = vsel %vm1123_vm9, %v1106_v46, 0.0 }
 0x2fe   :  { %v1069_v32 = vpop.f32.mrf.mxu2  ;;  %v1125_v22 = vadd.f32 %v1124_v17, %v4102_v54 }
 0x2ff   :  { %v1088_v33 = vpop.f32.mrf.mxu3  ;;  %v1070_v51 = vadd.f32 %v1069_v32, %v1050_v30  ;;  %v1140_v9 = vsel %vm1123_vm9, %v1116_v53, 0.0 }
 0x300   :  { %v1141_v62 = vadd.f32 %v1140_v9, %v1115_v59 }
 0x301   :  { %v1089_v7 = vadd.f32 %v1088_v33, %v1070_v51 }
 0x302   :  { %v1055_v19 = vpop.f32.mrf.mxu1 }
 0x303   :  { %v1112_v58 = vpop.f32.mrf.mxu0  ;;  %v1108_v1 = vadd.f32 %v1107_v31, %v1089_v7 }
 0x305   :  { %v1128_v4 = vsel %vm1123_vm9, %v1108_v1, 0.0  ;;  %v1118_v23 = vmul.f32 %v1108_v1, %v1108_v1 }
 0x306   :  { %v1072_v37 = vpop.f32.mrf.mxu2  ;;  %v1129_v15 = vadd.f32 %v1128_v4, %v4116_v14 }
 0x307   :  { %v1073_v39 = vadd.f32 %v1072_v37, %v1053_v36  ;;  %v1091_v40 = vpop.f32.mrf.mxu3  ;;  %v1144_v5 = vsel %vm1123_vm9, %v1118_v23, 0.0 }
 0x308   :  { %v1145_v25 = vadd.f32 %v1144_v5, %v1117_v24 }
 0x309   :  { %v1092_v44 = vadd.f32 %v1091_v40, %v1073_v39 }
 0x30b   :  { %v1111_v47 = vadd.f32 %v1110_v43, %v1092_v44 }
 0x30d   :  { %v1132_v12 = vsel %vm1123_vm9, %v1111_v47, 0.0  ;;  %v1120_v16 = vmul.f32 %v1111_v47, %v1111_v47 }
 0x30e   :  { %v1074_v49 = vpop.f32.mrf.mxu2  ;;  %v1133_v50 = vadd.f32 %v1132_v12, %v4098_v10 }
 0x30f   :  { %v1075_v52 = vadd.f32 %v1074_v49, %v1055_v19  ;;  %v1093_v55 = vpop.f32.mrf.mxu3  ;;  %v1148_v18 = vsel %vm1123_vm9, %v1120_v16, 0.0  ;;  %v326_v49 = vld [vmem:[%s4722_s6 + $0x18] sm:$0xff] }
 0x310   :  { %1134 = vadd.xlane.f32.xlu1 %v1133_v50  ;;  %v1149_v21 = vadd.f32 %v1148_v18, %v1119_v20 }
 0x311   :  { %v1094_v56 = vadd.f32 %v1093_v55, %v1075_v52 }
 0x313   :  { %v1113_v8 = vadd.f32 %v1112_v58, %v1094_v56  ;;  %v330_v58 = vld [vmem:[%s4723_s7 + $0x18] sm:$0xff] }
 0x315   :  { %v1136_v60 = vsel %vm1123_vm9, %v1113_v8, 0.0  ;;  %v1122_v61 = vmul.f32 %v1113_v8, %v1113_v8 }
 0x316   :  { %v1137_v63 = vadd.f32 %v1136_v60, %v4104_v57 }
 0x317   :  { %v1152_v2 = vsel %vm1123_vm9, %v1122_v61, 0.0 }
 0x318   :  { %1142 = vadd.xlane.f32.xlu1 %v1141_v62  ;;  %1138 = vadd.xlane.f32.xlu2 %v1137_v63  ;;  %v1153_v6 = vadd.f32 %v1152_v2, %v1121_v0 }
 0x31a   :  { %1154 = vadd.xlane.f32.xlu0 %v1153_v6 }
 0x320   :  { %1130 = vadd.xlane.f32.xlu2 %v1129_v15  ;;  %v325_v15 = vld [vmem:[%s4722_s6 + $0x10] sm:$0xff] }
 0x328   :  { %1150 = vadd.xlane.f32.xlu2 %v1149_v21 }
 0x330   :  { %1126 = vadd.xlane.f32.xlu2 %v1125_v22 }
 0x338   :  { %1146 = vadd.xlane.f32.xlu2 %v1145_v25 }
 0x383   :  { %v1135_v35 = vpop.xlane.xlu1 %1134 }
 0x384   :  { %v1158_v36 = vmul.f32 0.0061728396, %v1135_v35 }
 0x386   :  { %v1166_v39 = vmul.f32 %v1158_v36, %v1158_v36 }
 0x38b   :  { %v1139_v26 = vpop.xlane.xlu2 %1138  ;;  %v1143_v47 = vpop.xlane.xlu1 %1142 }
 0x38c   :  { %v1159_v27 = vmul.f32 0.0061728396, %v1139_v26  ;;  %v1160_v50 = vmul.f32 0.0061728396, %v1143_v47 }
 0x38d   :  { %v1155_v28 = vpop.xlane.xlu0 %1154 }
 0x38e   :  { %v1167_v29 = vmul.f32 %v1159_v27, %v1159_v27  ;;  %v1163_v30 = vmul.f32 0.0061728396, %v1155_v28  ;;  %v323_v28 = vld [vmem:[%s4722_s6] sm:$0xff] }
 0x390   :  { %v1171_v31 = vsub.f32 %v1163_v30, %v1167_v29 }
 0x392   :  { %v1175_v32 = vmax.f32 %v1171_v31, 0.0 }
 0x393   :  { %v1131_v33 = vpop.xlane.xlu2 %1130 }
 0x394   :  { %v1179_v34 = vadd.f32 1e-05, %v1175_v32  ;;  %v4130_v53 = vmul.f32 0.0061728396, %v1131_v33 }
 0x396   :  { %3401 = vrsqrt.f32 %v1179_v34  ;;  %vm1216_vm11 = vweird.f32 %v1179_v34  ;;  %v1165_v60 = vmul.f32 %v4130_v53, %v4130_v53 }
 0x39b   :  { %v1151_v37 = vpop.xlane.xlu2 %1150 }
 0x39c   :  { %v3402_v38 = vpop.eup %3401  ;;  %v1162_v40 = vmul.f32 0.0061728396, %v1151_v37  ;;  %v327_v37 = vld [vmem:[%s4723_s7] sm:$0xff] }
 0x39d   :  { %v1211_v41 = vmul.f32 %v3402_v38, %v1179_v34  ;;  %vm1217_vm10 = vweird.f32 %v3402_v38 }
 0x39e   :  { %v1170_v42 = vsub.f32 %v1162_v40, %v1166_v39  ;;  %vm1218_vm12 = vmor %vm1216_vm11, %vm1217_vm10 }
 0x39f   :  { %v1212_v43 = vmul.f32 %v3402_v38, %v1211_v41 }
 0x3a0   :  { %v1174_v44 = vmax.f32 %v1170_v42, 0.0 }
 0x3a1   :  { %v1213_v45 = vmul.f32 0.5, %v1212_v43 }
 0x3a2   :  { %v1178_v46 = vadd.f32 1e-05, %v1174_v44  ;;  %v328_v44 = vld [vmem:[%s4723_s7 + $0x8] sm:$0xff] }
 0x3a3   :  { %v1214_v48 = vsub.f32 1.5, %v1213_v45  ;;  %v1127_v12 = vpop.xlane.xlu2 %1126 }
 0x3a4   :  { %3403 = vrsqrt.f32 %v1178_v46  ;;  %v1156_v13 = vmul.f32 0.0061728396, %v1127_v12  ;;  %vm1206_vm14 = vweird.f32 %v1178_v46 }
 0x3a5   :  { %v1215_v19 = vmul.f32 %v3402_v38, %v1214_v48 }
 0x3a6   :  { %v1164_v51 = vmul.f32 %v1156_v13, %v1156_v13 }
 0x3a7   :  { %v1219_v52 = vsel %vm1218_vm12, %v3402_v38, %v1215_v19  ;;  %v324_v38 = vld [vmem:[%s4722_s6 + $0x8] sm:$0xff]  ;;  %s3446_s6 = smov 96  }
 0x3a8   :  { %v1168_v55 = vsub.f32 %v1160_v50, %v1164_v51  ;;  %v1223_v56 = vmul.f32 %v1219_v52, %v326_v49 }
 0x3aa   :  { %v3404_v7 = vpop.eup %3403  ;;  %v1172_v8 = vmax.f32 %v1168_v55, 0.0  ;;  %v1227_v9 = vmul.f32 %v1223_v56, %v1159_v27  ;;  %v329_v27 = vld [vmem:[%s4723_s7 + $0x10] sm:$0xff]  ;;  %s3447_s7 = smov 64  }
 0x3ab   :  { %v1201_v11 = vmul.f32 %v3404_v7, %v1178_v46  ;;  %v1147_v59 = vpop.xlane.xlu2 %1146  ;;  %vm1207_vm13 = vweird.f32 %v3404_v7 }
 0x3ac   :  { %v1176_v61 = vadd.f32 1e-05, %v1172_v8  ;;  %v1161_v62 = vmul.f32 0.0061728396, %v1147_v59  ;;  %v1231_v63 = vsub.f32 %v330_v58, %v1227_v9  ;;  %vm1208_vm15 = vmor %vm1206_vm14, %vm1207_vm13 }
 0x3ad   :  { %v1202_v0 = vmul.f32 %v3404_v7, %v1201_v11 }
 0x3ae   :  { %3405 = vrsqrt.f32 %v1176_v61  ;;  %v1169_v1 = vsub.f32 %v1161_v62, %v1165_v60  ;;  %1273 = vperm.xlu0 %3275, %v1231_v63   ;;  %vm1186_vm1 = vweird.f32 %v1176_v61 }
 0x3af   :  { %v1203_v2 = vmul.f32 0.5, %v1202_v0 }
 0x3b0   :  { %v1173_v3 = vmax.f32 %v1169_v1, 0.0 }
 0x3b1   :  { %v1204_v6 = vsub.f32 1.5, %v1203_v2 }
 0x3b2   :  { %v1177_v4 = vadd.f32 1e-05, %v1173_v3 }
 0x3b3   :  { %v1205_v16 = vmul.f32 %v3404_v7, %v1204_v6 }
 0x3b4   :  { %v3406_v18 = vpop.eup %3405  ;;  %3407 = vrsqrt.f32 %v1177_v4  ;;  %vm1196_vm4 = vweird.f32 %v1177_v4 }
 0x3b5   :  { %v1181_v20 = vmul.f32 %v3406_v18, %v1176_v61  ;;  %v1209_v21 = vsel %vm1208_vm15, %v3404_v7, %v1205_v16  ;;  %vm1187_vm0 = vweird.f32 %v3406_v18 }
 0x3b6   :  { %v1222_v17 = vmul.f32 %v1209_v21, %v325_v15  ;;  %vm1188_vm2 = vmor %vm1186_vm1, %vm1187_vm0 }
 0x3b7   :  { %v1182_v22 = vmul.f32 %v3406_v18, %v1181_v20 }
 0x3b8   :  { %1244 = vperm.xlu1 %3276, %v1222_v17   ;;  %v1226_v24 = vmul.f32 %v1222_v17, %v1158_v36 }
 0x3b9   :  { %v1183_v23 = vmul.f32 0.5, %v1182_v22 }
 0x3ba   :  { %v3408_v5 = vpop.eup %3407  ;;  %v1230_v31 = vsub.f32 %v329_v27, %v1226_v24  ;;  %v3080_v27 = vld [vmem:[%s4724_s8 + $0x40] sm:$0xff] }
 0x3bb   :  { %v1184_v25 = vsub.f32 1.5, %v1183_v23  ;;  %v1191_v26 = vmul.f32 %v3408_v5, %v1177_v4  ;;  %vm1197_vm3 = vweird.f32 %v3408_v5 }
 0x3bc   :  { %vm1198_vm5 = vmor %vm1196_vm4, %vm1197_vm3 }
 0x3bd   :  { %v1185_v29 = vmul.f32 %v3406_v18, %v1184_v25  ;;  %v1192_v30 = vmul.f32 %v3408_v5, %v1191_v26  ;;  %v1340_v26 = vld [vmem:[%s4724_s8] sm:$0xff] }
 0x3bf   :  { %v1189_v32 = vsel %vm1188_vm2, %v3406_v18, %v1185_v29  ;;  %v1193_v33 = vmul.f32 0.5, %v1192_v30  ;;  %v3112_v29 = vld [vmem:[%s4724_s8 + $0xc0] sm:$0xff]  ;;  %v1341_v30 = vld [vmem:[%s4724_s8 + $0x8] sm:$0xff] }
 0x3c0   :  { %v1220_v34 = vmul.f32 %v1189_v32, %v323_v28  ;;  %1268 = vperm.xlu1 %3276, %v1230_v31   ;;  %v3096_v28 = vld [vmem:[%s4724_s8 + $0x80] sm:$0xff]  ;;  %v3081_v31 = vld [vmem:[%s4724_s8 + $0x48] sm:$0xff] }
 0x3c1   :  { %v1194_v35 = vsub.f32 1.5, %v1193_v33  ;;  %v3097_v32 = vld [vmem:[%s4724_s8 + $0x88] sm:$0xff] }
 0x3c2   :  { %v1224_v36 = vmul.f32 %v1220_v34, %v1156_v13  ;;  %1234 = vperm.xlu0 %3275, %v1220_v34   ;;  %v3113_v33 = vld [vmem:[%s4724_s8 + $0xc8] sm:$0xff]  ;;  %v1342_v34 = vld [vmem:[%s4724_s8 + $0x10] sm:$0xff] }
 0x3c3   :  { %v1195_v39 = vmul.f32 %v3408_v5, %v1194_v35  ;;  %v3082_v35 = vld [vmem:[%s4724_s8 + $0x50] sm:$0xff] }
 0x3c4   :  { %v1228_v41 = vsub.f32 %v327_v37, %v1224_v36  ;;  %v3098_v36 = vld [vmem:[%s4724_s8 + $0x90] sm:$0xff] }
 0x3c5   :  { %v1199_v40 = vsel %vm1198_vm5, %v3408_v5, %v1195_v39  ;;  %v3114_v37 = vld [vmem:[%s4724_s8 + $0xd0] sm:$0xff]  ;;  %v3083_v39 = vld [vmem:[%s4724_s8 + $0x58] sm:$0xff] }
 0x3c6   :  { %v1221_v42 = vmul.f32 %v1199_v40, %v324_v38  ;;  %v1343_v38 = vld [vmem:[%s4724_s8 + $0x18] sm:$0xff] }
 0x3c7   :  { %v3099_v40 = vld [vmem:[%s4724_s8 + $0x98] sm:$0xff] }
 0x3c8   :  { %1258 = vperm.xlu1 %3276, %v1228_v41   ;;  %1239 = vperm.xlu2 %3274, %v1221_v42   ;;  %v1225_v43 = vmul.f32 %v1221_v42, %v4130_v53  ;;  %v3115_v41 = vld [vmem:[%s4724_s8 + $0xd8] sm:$0xff]  ;;  %v1344_v42 = vld [vmem:[%s4724_s8 + $0x20] sm:$0xff] }
 0x3ca   :  { %v1229_v45 = vsub.f32 %v328_v44, %v1225_v43  ;;  %v3084_v43 = vld [vmem:[%s4724_s8 + $0x60] sm:$0xff] }
 0x3cb   :  { %v3100_v44 = vld [vmem:[%s4724_s8 + $0xa0] sm:$0xff] }
 0x3d0   :  { %1249 = vperm.xlu2 %3274, %v1223_v56  }
 0x3d8   :  { %1263 = vperm.xlu2 %3274, %v1229_v45   ;;  %v3116_v45 = vld [vmem:[%s4724_s8 + $0xe0] sm:$0xff] }
 0x420   :  { %v1274_v13 = vpop.permute.xlu0 %1273 }
 0x422   :  { %v1240_v46 = vpop.permute.xlu2 %1239 }
 0x423   :  { %v1253_v58 = vmul.f32 %v1240_v46, %v4116_v14  ;;  %v1345_v46 = vld [vmem:[%s4724_s8 + $0x28] sm:$0xff] }
 0x42a   :  { %v1245_v47 = vpop.permute.xlu1 %1244  ;;  %v1250_v48 = vpop.permute.xlu2 %1249 }
 0x42b   :  { %v1255_v12 = vmul.f32 %v1250_v48, %v4104_v57  ;;  %v1254_v19 = vmul.f32 %v1245_v47, %v4098_v10  ;;  %v3085_v47 = vld [vmem:[%s4724_s8 + $0x68] sm:$0xff] }
 0x42c   :  { %v3101_v48 = vld [vmem:[%s4724_s8 + $0xa8] sm:$0xff] }
 0x42d   :  { %v1279_v49 = vadd.f32 %v1274_v13, %v1255_v12  ;;  %v3117_v12 = vld [vmem:[%s4724_s8 + $0xe8] sm:$0xff]  ;;  %v1346_v13 = vld [vmem:[%s4724_s8 + $0x30] sm:$0xff] }
 0x42f   :  { %v1283_v52 = vmax.f32 %v1279_v49, 0.0  ;;  %v3102_v49 = vld [vmem:[%s4724_s8 + $0xb0] sm:$0xff] }
 0x432   :  { %v1269_v50 = vpop.permute.xlu1 %1268  ;;  %v1264_v53 = vpop.permute.xlu2 %1263 }
 0x433   :  { %v1278_v51 = vadd.f32 %v1269_v50, %v1254_v19  ;;  %v1277_v8 = vadd.f32 %v1264_v53, %v1253_v58  ;;  %v3086_v19 = vld [vmem:[%s4724_s8 + $0x70] sm:$0xff]  ;;  %v3119_v53 = vld [vmem:[%s4724_s8 + $0xf8] sm:$0xff] }
 0x434   :  { %v1235_v56 = vpop.permute.xlu0 %1234  ;;  %v3118_v50 = vld [vmem:[%s4724_s8 + $0xf0] sm:$0xff]  ;;  %v3265_v58 = vld [vmem:[%s4725_s9 + $0x38] sm:$0xff] }
 0x435   :  { %v1282_v55 = vmax.f32 %v1278_v51, 0.0  ;;  %v1252_v9 = vmul.f32 %v1235_v56, %v4102_v54  ;;  %v1281_v59 = vmax.f32 %v1277_v8, 0.0  ;;  %v1347_v51 = vld [vmem:[%s4724_s8 + $0x38] sm:$0xff]  ;;  %v3259_v56 = vld [vmem:[%s4725_s9 + $0x8] sm:$0xff]  ;;  %v3264_v8 = vld [vmem:[%s4725_s9 + $0x30] sm:$0xff] }
 0x437   :  { %v3277_v7 = vpack.i.bf16 %v1282_v55, %v1283_v52 }
 0x439   :  { %3278 = vrot.lane.b32.xlu0 %v3277_v7, %s3446_s6  ;;  %v3258_v7 = vld [vmem:[%s4725_s9] sm:$0xff] }
 0x43a   :  { %v1259_v11 = vpop.permute.xlu1 %1258 }
 0x43b   :  { %v1276_v57 = vadd.f32 %v1259_v11, %v1252_v9  ;;  %v3261_v9 = vld [vmem:[%s4725_s9 + $0x18] sm:$0xff]  ;;  %v3263_v11 = vld [vmem:[%s4725_s9 + $0x28] sm:$0xff] }
 0x43d   :  { %v1280_v60 = vmax.f32 %v1276_v57, 0.0  ;;  %v3260_v57 = vld [vmem:[%s4725_s9 + $0x10] sm:$0xff] }
 0x43f   :  { %v3282_v10 = vpack.i.bf16 %v1280_v60, %v1281_v59 }
 0x441   :  { %3283 = vrot.lane.b32.xlu2 %v3282_v10, %s3446_s6 }
 0x49b   :  { %v3284_v61 = vpop.permute.xlu2 %3283 }
 0x49c   :  { %v3286_v62 = vunpack.i.h.bf16 %v3284_v61  ;;  %v3285_v63 = vunpack.i.l.bf16 %v3284_v61 }
 0x49e   :  { %v1300_v0 = vmax.f32 %v1280_v60, %v3286_v62  ;;  %v1301_v1 = vmax.f32 %v1281_v59, %v3285_v63  ;;  %v3262_v59 = vld [vmem:[%s4725_s9 + $0x20] sm:$0xff] }
 0x4a0   :  { %v3292_v2 = vpack.i.bf16 %v1300_v0, %v1301_v1 }
 0x4a2   :  { %3293 = vrot.lane.b32.xlu0 %v3292_v2, %s3447_s7 }
 0x4ab   :  { %v3279_v14 = vpop.permute.xlu0 %3278 }
 0x4ac   :  { %v3281_v3 = vunpack.i.h.bf16 %v3279_v14  ;;  %v3280_v6 = vunpack.i.l.bf16 %v3279_v14 }
 0x4ae   :  { %v1302_v54 = vmax.f32 %v1282_v55, %v3281_v3  ;;  %v1303_v4 = vmax.f32 %v1283_v52, %v3280_v6  ;;  %v3087_v52 = vld [vmem:[%s4724_s8 + $0x78] sm:$0xff] }
 0x4af   :  { %v3103_v55 = vld [vmem:[%s4724_s8 + $0xb8] sm:$0xff] }
 0x4b0   :  { %v3287_v15 = vpack.i.bf16 %v1302_v54, %v1303_v4 }
 0x4b2   :  { %3288 = vrot.lane.b32.xlu1 %v3287_v15, %s3447_s7 }
 0x514   :  { %v3294_v16 = vpop.permute.xlu0 %3293 }
 0x515   :  { %v3295_v17 = vunpack.i.l.bf16 %v3294_v16  ;;  %v3296_v23 = vunpack.i.h.bf16 %v3294_v16 }
 0x517   :  { %v1321_v24 = vmax.f32 %v1301_v1, %v3295_v17  ;;  %v1320_v25 = vmax.f32 %v1300_v0, %v3296_v23 }
 0x524   :  { %v3289_v18 = vpop.permute.xlu1 %3288 }
 0x525   :  { %v3291_v20 = vunpack.i.h.bf16 %v3289_v18  ;;  %v3290_v21 = vunpack.i.l.bf16 %v3289_v18 }
 0x527   :  { %v1323_v22 = vmax.f32 %v1303_v4, %v3290_v21  ;;  %v1322_v5 = vmax.f32 %v1302_v54, %v3291_v20 }
 0x529   :  { %1385 = vmatpush.msra.mxu1 %v1323_v22  ;;  %1463 = vmatpush.msra.mxu2 %v1323_v22 }
 0x52a   :  { %1541 = vmatpush.msra.mxu3 %v1323_v22  ;;  %1619 = vmatpush.msrb.mxu0 %v1323_v22 }
 0x52b   :  { %1386 = vmatpush.msra.mxu1 %v1322_v5  ;;  %1464 = vmatpush.msra.mxu2 %v1322_v5 }
 0x52c   :  { %1542 = vmatpush.msra.mxu3 %v1322_v5  ;;  %1620 = vmatpush.msrb.mxu0 %v1322_v5 }
 0x52d   :  { %1387 = vmatpush.msra.mxu1 %v1321_v24  ;;  %1465 = vmatpush.msra.mxu2 %v1321_v24 }
 0x52e   :  { %1543 = vmatpush.msra.mxu3 %v1321_v24  ;;  %1621 = vmatpush.msrb.mxu0 %v1321_v24 }
 0x52f   :  { %1388 = vmatpush.msra.mxu1 %v1320_v25  ;;  %1466 = vmatpush.msra.mxu2 %v1320_v25 }
 0x530   :  { %1544 = vmatpush.msra.mxu3 %v1320_v25  ;;  %1622 = vmatpush.msrb.mxu0 %v1320_v25 }
 0x531   :  { %3072 = vmatmul.msk.f32.vlgmr.msra.gmra.mxu1 %vm1348_vm6, %v1340_v26  ;;  %3088 = vmatmul.msk.f32.vlgmr.msra.gmra.mxu2 %vm1348_vm6, %v3080_v27 }
 0x532   :  { %3104 = vmatmul.msk.f32.vlgmr.msra.gmra.mxu3 %vm1348_vm6, %v3096_v28  ;;  %3120 = vmatmul.msk.f32.vlgmr.msrb.gmra.mxu0 %vm1348_vm6, %v3112_v29 }
 0x533   :  { %1744 = vmatpush.bf16.msrb.mxu2 %v3259_v56  ;;  %1868 = vmatpush.bf16.msra.mxu0 %v3265_v58 }
 0x534   :  { %1691 = vmatpush.bf16.msrb.mxu1 %v3261_v9  ;;  %1802 = vmatpush.bf16.msrb.mxu3 %v3263_v11 }
 0x537   :  { %1745 = vmatpush.bf16.msrb.mxu2 %v3258_v7  ;;  %1869 = vmatpush.bf16.msra.mxu0 %v3264_v8 }
 0x538   :  { %1692 = vmatpush.bf16.msrb.mxu1 %v3260_v57  ;;  %1803 = vmatpush.bf16.msrb.mxu3 %v3262_v59 }
 0x539   :  { %3073 = vmatmul.msk.f32.gmra.mxu1 %vm1348_vm6, %v1341_v30  ;;  %3089 = vmatmul.msk.f32.gmra.mxu2 %vm1348_vm6, %v3081_v31 }
 0x53a   :  { %3105 = vmatmul.msk.f32.gmra.mxu3 %vm1348_vm6, %v3097_v32  ;;  %3121 = vmatmul.msk.f32.gmra.mxu0 %vm1348_vm6, %v3113_v33 }
 0x541   :  { %3074 = vmatmul.msk.f32.gmra.mxu1 %vm1348_vm6, %v1342_v34  ;;  %3090 = vmatmul.msk.f32.gmra.mxu2 %vm1348_vm6, %v3082_v35 }
 0x542   :  { %3106 = vmatmul.msk.f32.gmra.mxu3 %vm1348_vm6, %v3098_v36  ;;  %3122 = vmatmul.msk.f32.gmra.mxu0 %vm1348_vm6, %v3114_v37 }
 0x549   :  { %3075 = vmatmul.msk.f32.gmra.mxu1 %vm1348_vm6, %v1343_v38  ;;  %3091 = vmatmul.msk.f32.gmra.mxu2 %vm1348_vm6, %v3083_v39 }
 0x54a   :  { %3107 = vmatmul.msk.f32.gmra.mxu3 %vm1348_vm6, %v3099_v40  ;;  %3123 = vmatmul.msk.f32.gmra.mxu0 %vm1348_vm6, %v3115_v41 }
 0x551   :  { %3076 = vmatmul.msk.f32.gmra.mxu1 %vm1348_vm6, %v1344_v42  ;;  %3092 = vmatmul.msk.f32.gmra.mxu2 %vm1348_vm6, %v3084_v43 }
 0x552   :  { %3108 = vmatmul.msk.f32.gmra.mxu3 %vm1348_vm6, %v3100_v44  ;;  %3124 = vmatmul.msk.f32.gmra.mxu0 %vm1348_vm6, %v3116_v45 }
 0x559   :  { %3077 = vmatmul.msk.f32.gmra.mxu1 %vm1348_vm6, %v1345_v46  ;;  %3093 = vmatmul.msk.f32.gmra.mxu2 %vm1348_vm6, %v3085_v47 }
 0x55a   :  { %3109 = vmatmul.msk.f32.gmra.mxu3 %vm1348_vm6, %v3101_v48  ;;  %3125 = vmatmul.msk.f32.gmra.mxu0 %vm1348_vm6, %v3117_v12 }
 0x561   :  { %3078 = vmatmul.msk.f32.gmra.mxu1 %vm1348_vm6, %v1346_v13  ;;  %3094 = vmatmul.msk.f32.gmra.mxu2 %vm1348_vm6, %v3086_v19 }
 0x562   :  { %3110 = vmatmul.msk.f32.gmra.mxu3 %vm1348_vm6, %v3102_v49  ;;  %3126 = vmatmul.msk.f32.gmra.mxu0 %vm1348_vm6, %v3118_v50 }
 0x569   :  { %3079 = vmatmul.msk.f32.gmra.mxu1 %vm1348_vm6, %v1347_v51  ;;  %3095 = vmatmul.msk.f32.gmra.mxu2 %vm1348_vm6, %v3087_v52 }
 0x56a   :  { %3111 = vmatmul.msk.f32.gmra.mxu3 %vm1348_vm6, %v3103_v55  ;;  %3127 = vmatmul.msk.f32.gmra.mxu0 %vm1348_vm6, %v3119_v53 }
 0x5ae   :  { %v1390_v60 = vpop.f32.mrf.mxu1 }
 0x5af   :  { %v1624_v10 = vpop.f32.mrf.mxu0 }
 0x5b4   :  { %v1468_v61 = vpop.f32.mrf.mxu2 }
 0x5b5   :  { %v1546_v62 = vpop.f32.mrf.mxu3 }
 0x5b6   :  { %v1393_v63 = vpop.f32.mrf.mxu1 }
 0x5b7   :  { %v1414_v0 = vpack.c.bf16 %v1393_v63, %v1390_v60  ;;  %v1627_v1 = vpop.f32.mrf.mxu0 }
 0x5b8   :  { %v1648_v2 = vpack.c.bf16 %v1627_v1, %v1624_v10 }
 0x5b9   :  { %3152 = vmatmul.msk.bf16.vlgmr.msrb.gmra.mxu2 %vm1348_vm6, %v1414_v0 }
 0x5ba   :  { %3184 = vmatmul.msk.bf16.vlgmr.msra.gmra.mxu0 %vm1348_vm6, %v1648_v2 }
 0x5bc   :  { %v1471_v14 = vpop.f32.mrf.mxu2 }
 0x5bd   :  { %v1492_v3 = vpack.c.bf16 %v1471_v14, %v1468_v61  ;;  %v1549_v6 = vpop.f32.mrf.mxu3 }
 0x5be   :  { %v1570_v54 = vpack.c.bf16 %v1549_v6, %v1546_v62  ;;  %v1396_v4 = vpop.f32.mrf.mxu1 }
 0x5bf   :  { %v1630_v15 = vpop.f32.mrf.mxu0  ;;  %3140 = vmatmul.msk.bf16.vlgmr.msrb.gmra.mxu1 %vm1348_vm6, %v1492_v3 }
 0x5c0   :  { %3168 = vmatmul.msk.bf16.vlgmr.msrb.gmra.mxu3 %vm1348_vm6, %v1570_v54 }
 0x5c4   :  { %v1474_v16 = vpop.f32.mrf.mxu2 }
 0x5c5   :  { %v1552_v18 = vpop.f32.mrf.mxu3 }
 0x5c6   :  { %v1399_v20 = vpop.f32.mrf.mxu1 }
 0x5c7   :  { %v1415_v21 = vpack.c.bf16 %v1399_v20, %v1396_v4  ;;  %v1633_v17 = vpop.f32.mrf.mxu0 }
 0x5c8   :  { %v1649_v22 = vpack.c.bf16 %v1633_v17, %v1630_v15 }
 0x5c9   :  { %3153 = vmatmul.msk.bf16.gmra.mxu2 %vm1348_vm6, %v1415_v21 }
 0x5ca   :  { %3185 = vmatmul.msk.bf16.gmra.mxu0 %vm1348_vm6, %v1649_v22 }
 0x5cc   :  { %v1477_v23 = vpop.f32.mrf.mxu2 }
 0x5cd   :  { %v1493_v5 = vpack.c.bf16 %v1477_v23, %v1474_v16  ;;  %v1555_v24 = vpop.f32.mrf.mxu3 }
 0x5ce   :  { %v1571_v25 = vpack.c.bf16 %v1555_v24, %v1552_v18  ;;  %v1402_v26 = vpop.f32.mrf.mxu1 }
 0x5cf   :  { %v1636_v27 = vpop.f32.mrf.mxu0  ;;  %3141 = vmatmul.msk.bf16.gmra.mxu1 %vm1348_vm6, %v1493_v5 }
 0x5d0   :  { %3169 = vmatmul.msk.bf16.gmra.mxu3 %vm1348_vm6, %v1571_v25 }
 0x5d4   :  { %v1480_v28 = vpop.f32.mrf.mxu2 }
 0x5d5   :  { %v1558_v29 = vpop.f32.mrf.mxu3 }
 0x5d6   :  { %v1405_v30 = vpop.f32.mrf.mxu1 }
 0x5d7   :  { %v1416_v31 = vpack.c.bf16 %v1405_v30, %v1402_v26  ;;  %v1639_v32 = vpop.f32.mrf.mxu0 }
 0x5d8   :  { %v1650_v33 = vpack.c.bf16 %v1639_v32, %v1636_v27 }
 0x5d9   :  { %3154 = vmatmul.msk.bf16.gmra.mxu2 %vm1348_vm6, %v1416_v31 }
 0x5da   :  { %3186 = vmatmul.msk.bf16.gmra.mxu0 %vm1348_vm6, %v1650_v33 }
 0x5dc   :  { %v1483_v34 = vpop.f32.mrf.mxu2 }
 0x5dd   :  { %v1494_v35 = vpack.c.bf16 %v1483_v34, %v1480_v28  ;;  %v1561_v36 = vpop.f32.mrf.mxu3 }
 0x5de   :  { %v1572_v37 = vpack.c.bf16 %v1561_v36, %v1558_v29  ;;  %v1408_v38 = vpop.f32.mrf.mxu1 }
 0x5df   :  { %v1642_v39 = vpop.f32.mrf.mxu0  ;;  %3142 = vmatmul.msk.bf16.gmra.mxu1 %vm1348_vm6, %v1494_v35 }
 0x5e0   :  { %3170 = vmatmul.msk.bf16.gmra.mxu3 %vm1348_vm6, %v1572_v37 }
 0x5e4   :  { %v1486_v40 = vpop.f32.mrf.mxu2 }
 0x5e5   :  { %v1564_v41 = vpop.f32.mrf.mxu3 }
 0x5e6   :  { %v1411_v42 = vpop.f32.mrf.mxu1 }
 0x5e7   :  { %v1417_v43 = vpack.c.bf16 %v1411_v42, %v1408_v38  ;;  %v1645_v44 = vpop.f32.mrf.mxu0 }
 0x5e8   :  { %v1651_v45 = vpack.c.bf16 %v1645_v44, %v1642_v39 }
 0x5e9   :  { %3155 = vmatmul.msk.bf16.gmra.mxu2 %vm1348_vm6, %v1417_v43 }
 0x5ea   :  { %3187 = vmatmul.msk.bf16.gmra.mxu0 %vm1348_vm6, %v1651_v45 }
 0x5ec   :  { %v1489_v46 = vpop.f32.mrf.mxu2 }
 0x5ed   :  { %v1495_v47 = vpack.c.bf16 %v1489_v46, %v1486_v40  ;;  %v1567_v48 = vpop.f32.mrf.mxu3 }
 0x5ee   :  { %v1573_v12 = vpack.c.bf16 %v1567_v48, %v1564_v41 }
 0x5ef   :  { %3143 = vmatmul.msk.bf16.gmra.mxu1 %vm1348_vm6, %v1495_v47 }
 0x5f0   :  { %3171 = vmatmul.msk.bf16.gmra.mxu3 %vm1348_vm6, %v1573_v12 }
 0x637   :  { %v1871_v13 = vpop.f32.mrf.mxu0 }
 0x63c   :  { %v1694_v19 = vpop.f32.mrf.mxu1  ;;  %v1747_v49 = vpop.f32.mrf.mxu2 }
 0x63d   :  { %v1748_v50 = vadd.f32 %v1747_v49, %v1694_v19 }
 0x63f   :  { %v1873_v51 = vpop.f32.mrf.mxu0 }
 0x643   :  { %v1805_v52 = vpop.f32.mrf.mxu3 }
 0x644   :  { %v1825_v55 = vadd.f32 %v1805_v52, %v1748_v50  ;;  %v1696_v53 = vpop.f32.mrf.mxu1  ;;  %v1749_v56 = vpop.f32.mrf.mxu2 }
 0x645   :  { %v1750_v7 = vadd.f32 %v1749_v56, %v1696_v53 }
 0x646   :  { %v4328_v58 = vadd.f32 %v1871_v13, %v1825_v55 }
 0x647   :  { %v1876_v8 = vpop.f32.mrf.mxu0 }
 0x64b   :  { %v1807_v9 = vpop.f32.mrf.mxu3 }
 0x64c   :  { %v1826_v11 = vadd.f32 %v1807_v9, %v1750_v7  ;;  %v1699_v57 = vpop.f32.mrf.mxu1  ;;  %v1752_v59 = vpop.f32.mrf.mxu2 }
 0x64d   :  { %v1753_v61 = vadd.f32 %v1752_v59, %v1699_v57  ;;  %v1899_v59 = vmul.f32 %v4328_v58, %v4328_v58 }
 0x64e   :  { %v4330_v60 = vadd.f32 %v1873_v51, %v1826_v11  ;;  %v1908_v11 = vsel %vm1907_vm7, %v4328_v58, 0.0 }
 0x64f   :  { %v1878_v2 = vpop.f32.mrf.mxu0 }
 0x650   :  { %v1911_v10 = vsel %vm1907_vm7, %v4330_v60, 0.0 }
 0x651   :  { %1912 = vadd.xlane.f32.xlu0 %v1911_v10  ;;  %v1932_v10 = vsel %vm1907_vm7, %v1899_v59, 0.0 }
 0x653   :  { %v1810_v62 = vpop.f32.mrf.mxu3 }
 0x654   :  { %v1827_v63 = vadd.f32 %v1810_v62, %v1753_v61  ;;  %v1701_v0 = vpop.f32.mrf.mxu1  ;;  %v1754_v1 = vpop.f32.mrf.mxu2 }
 0x655   :  { %v1755_v6 = vadd.f32 %v1754_v1, %v1701_v0 }
 0x656   :  { %v4334_v14 = vadd.f32 %v1876_v8, %v1827_v63  ;;  %v1900_v8 = vmul.f32 %v4330_v60, %v4330_v60 }
 0x657   :  { %v1881_v20 = vpop.f32.mrf.mxu0 }
 0x658   :  { %v1914_v3 = vsel %vm1907_vm7, %v4334_v14, 0.0  ;;  %v1901_v7 = vmul.f32 %v4334_v14, %v4334_v14  ;;  %v1935_v57 = vsel %vm1907_vm7, %v1900_v8, 0.0 }
 0x659   :  { %1915 = vadd.xlane.f32.xlu2 %v1914_v3 }
 0x65a   :  { %v1938_v9 = vsel %vm1907_vm7, %v1901_v7, 0.0 }
 0x65b   :  { %v1812_v54 = vpop.f32.mrf.mxu3 }
 0x65c   :  { %v1828_v4 = vadd.f32 %v1812_v54, %v1755_v6  ;;  %v1704_v15 = vpop.f32.mrf.mxu1  ;;  %v1757_v16 = vpop.f32.mrf.mxu2 }
 0x65d   :  { %v1758_v17 = vadd.f32 %v1757_v16, %v1704_v15 }
 0x65e   :  { %v4338_v18 = vadd.f32 %v1878_v2, %v1828_v4 }
 0x65f   :  { %v1883_v29 = vpop.f32.mrf.mxu0 }
 0x660   :  { %v1917_v21 = vsel %vm1907_vm7, %v4338_v18, 0.0  ;;  %v1902_v25 = vmul.f32 %v4338_v18, %v4338_v18 }
 0x661   :  { %1918 = vadd.xlane.f32.xlu1 %v1917_v21 }
 0x662   :  { %v1941_v27 = vsel %vm1907_vm7, %v1902_v25, 0.0 }
 0x663   :  { %v1815_v22 = vpop.f32.mrf.mxu3 }
 0x664   :  { %v1829_v23 = vadd.f32 %v1815_v22, %v1758_v17  ;;  %v1706_v5 = vpop.f32.mrf.mxu1  ;;  %v1759_v24 = vpop.f32.mrf.mxu2 }
 0x665   :  { %v1760_v30 = vadd.f32 %v1759_v24, %v1706_v5 }
 0x666   :  { %v4344_v26 = vadd.f32 %v1881_v20, %v1829_v23 }
 0x667   :  { %v1886_v40 = vpop.f32.mrf.mxu0 }
 0x668   :  { %v1920_v28 = vsel %vm1907_vm7, %v4344_v26, 0.0  ;;  %v1903_v33 = vmul.f32 %v4344_v26, %v4344_v26 }
 0x669   :  { %1942 = vadd.xlane.f32.xlu1 %v1941_v27  ;;  %1921 = vadd.xlane.f32.xlu0 %v1920_v28 }
 0x66a   :  { %v1944_v37 = vsel %vm1907_vm7, %v1903_v33, 0.0 }
 0x66b   :  { %v1817_v31 = vpop.f32.mrf.mxu3 }
 0x66c   :  { %v1830_v32 = vadd.f32 %v1817_v31, %v1760_v30  ;;  %v1709_v34 = vpop.f32.mrf.mxu1  ;;  %v1762_v35 = vpop.f32.mrf.mxu2 }
 0x66d   :  { %v1763_v39 = vadd.f32 %v1762_v35, %v1709_v34 }
 0x66e   :  { %v4351_v36 = vadd.f32 %v1883_v29, %v1830_v32 }
 0x66f   :  { %v1888_v50 = vpop.f32.mrf.mxu0 }
 0x670   :  { %v1923_v38 = vsel %vm1907_vm7, %v4351_v36, 0.0  ;;  %v1904_v43 = vmul.f32 %v4351_v36, %v4351_v36 }
 0x671   :  { %1945 = vadd.xlane.f32.xlu0 %v1944_v37  ;;  %1924 = vadd.xlane.f32.xlu2 %v1923_v38 }
 0x672   :  { %v1947_v47 = vsel %vm1907_vm7, %v1904_v43, 0.0  ;;  %v1327_v43 = vld [vmem:[%s4726_s10 + $0x18] sm:$0xff] }
 0x673   :  { %v1820_v41 = vpop.f32.mrf.mxu3 }
 0x674   :  { %v1831_v42 = vadd.f32 %v1820_v41, %v1763_v39  ;;  %v1711_v45 = vpop.f32.mrf.mxu1  ;;  %v1764_v46 = vpop.f32.mrf.mxu2 }
 0x675   :  { %v1765_v12 = vadd.f32 %v1764_v46, %v1711_v45 }
 0x676   :  { %v4358_v44 = vadd.f32 %v1886_v40, %v1831_v42 }
 0x678   :  { %v1926_v48 = vsel %vm1907_vm7, %v4358_v44, 0.0  ;;  %v1905_v49 = vmul.f32 %v4358_v44, %v4358_v44 }
 0x679   :  { %1948 = vadd.xlane.f32.xlu2 %v1947_v47  ;;  %1927 = vadd.xlane.f32.xlu1 %v1926_v48 }
 0x67a   :  { %v1950_v55 = vsel %vm1907_vm7, %v1905_v49, 0.0 }
 0x67b   :  { %v1822_v13 = vpop.f32.mrf.mxu3 }
 0x67c   :  { %v1832_v19 = vadd.f32 %v1822_v13, %v1765_v12 }
 0x67e   :  { %v4365_v51 = vadd.f32 %v1888_v50, %v1832_v19 }
 0x680   :  { %v1929_v52 = vsel %vm1907_vm7, %v4365_v51, 0.0  ;;  %v1906_v53 = vmul.f32 %v4365_v51, %v4365_v51 }
 0x681   :  { %1930 = vadd.xlane.f32.xlu2 %v1929_v52  ;;  %1951 = vadd.xlane.f32.xlu1 %v1950_v55 }
 0x682   :  { %v1953_v56 = vsel %vm1907_vm7, %v1906_v53, 0.0 }
 0x683   :  { %1954 = vadd.xlane.f32.xlu0 %v1953_v56 }
 0x689   :  { %1939 = vadd.xlane.f32.xlu2 %v1938_v9  ;;  %1909 = vadd.xlane.f32.xlu1 %v1908_v11 }
 0x68b   :  { %1936 = vadd.xlane.f32.xlu0 %v1935_v57 }
 0x691   :  { %1933 = vadd.xlane.f32.xlu2 %v1932_v10 }
 0x6c4   :  { %v1913_v61 = vpop.xlane.xlu0 %1912 }
 0x6c5   :  { %v4414_v59 = vmul.f32 0.02, %v1913_v61 }
 0x6cc   :  { %v1916_v0 = vpop.xlane.xlu2 %1915 }
 0x6cd   :  { %v4409_v7 = vmul.f32 0.02, %v1916_v0 }
 0x6d4   :  { %v1919_v62 = vpop.xlane.xlu1 %1918 }
 0x6d5   :  { %v4384_v63 = vmul.f32 0.02, %v1919_v62 }
 0x6d7   :  { %v1975_v3 = vmul.f32 %v4384_v63, %v4384_v63 }
 0x6dc   :  { %v1943_v1 = vpop.xlane.xlu1 %1942  ;;  %v1922_v2 = vpop.xlane.xlu0 %1921 }
 0x6dd   :  { %v1967_v6 = vmul.f32 0.02, %v1943_v1  ;;  %v4388_v15 = vmul.f32 0.02, %v1922_v2 }
 0x6df   :  { %v1983_v54 = vsub.f32 %v1967_v6, %v1975_v3  ;;  %v1976_v17 = vmul.f32 %v4388_v15, %v4388_v15  ;;  %v1974_v3 = vmul.f32 %v4409_v7, %v4409_v7 }
 0x6e1   :  { %v1991_v4 = vmax.f32 %v1983_v54, 0.0  ;;  %v1328_v54 = vld [vmem:[%s4726_s10 + $0x20] sm:$0xff] }
 0x6e3   :  { %v1999_v16 = vadd.f32 1e-05, %v1991_v4 }
 0x6e4   :  { %v1946_v20 = vpop.xlane.xlu0 %1945  ;;  %v1925_v21 = vpop.xlane.xlu2 %1924 }
 0x6e5   :  { %3409 = vrsqrt.f32 %v1999_v16  ;;  %v1968_v22 = vmul.f32 0.02, %v1946_v20  ;;  %v4392_v28 = vmul.f32 0.02, %v1925_v21  ;;  %vm2040_vm9 = vweird.f32 %v1999_v16 }
 0x6e6   :  { %v1973_v20 = vmul.f32 %v4414_v59, %v4414_v59 }
 0x6e7   :  { %v1984_v23 = vsub.f32 %v1968_v22, %v1976_v17  ;;  %v1977_v34 = vmul.f32 %v4392_v28, %v4392_v28 }
 0x6e9   :  { %v1992_v5 = vmax.f32 %v1984_v23, 0.0 }
 0x6eb   :  { %v3410_v24 = vpop.eup %3409  ;;  %v2000_v25 = vadd.f32 1e-05, %v1992_v5 }
 0x6ec   :  { %v2035_v27 = vmul.f32 %v3410_v24, %v1999_v16  ;;  %v1949_v29 = vpop.xlane.xlu2 %1948  ;;  %v1928_v30 = vpop.xlane.xlu1 %1927  ;;  %vm2041_vm8 = vweird.f32 %v3410_v24 }
 0x6ed   :  { %3411 = vrsqrt.f32 %v2000_v25  ;;  %v1969_v32 = vmul.f32 0.02, %v1949_v29  ;;  %v4396_v35 = vmul.f32 0.02, %v1928_v30  ;;  %vm2042_vm10 = vmor %vm2040_vm9, %vm2041_vm8  ;;  %vm2050_vm12 = vweird.f32 %v2000_v25 }
 0x6ee   :  { %v2036_v31 = vmul.f32 %v3410_v24, %v2035_v27 }
 0x6ef   :  { %v1985_v38 = vsub.f32 %v1969_v32, %v1977_v34  ;;  %v1978_v46 = vmul.f32 %v4396_v35, %v4396_v35 }
 0x6f0   :  { %v2037_v33 = vmul.f32 0.5, %v2036_v31 }
 0x6f1   :  { %v1993_v13 = vmax.f32 %v1985_v38, 0.0 }
 0x6f2   :  { %v2038_v37 = vsub.f32 1.5, %v2037_v33 }
 0x6f3   :  { %v3412_v39 = vpop.eup %3411  ;;  %v4412_v57 = vadd.f32 1e-05, %v1993_v13 }
 0x6f4   :  { %v2045_v40 = vmul.f32 %v3412_v39, %v2000_v25  ;;  %v1931_v41 = vpop.xlane.xlu2 %1930  ;;  %v1952_v42 = vpop.xlane.xlu1 %1951  ;;  %v2039_v45 = vmul.f32 %v3410_v24, %v2038_v37  ;;  %vm2051_vm11 = vweird.f32 %v3412_v39 }
 0x6f5   :  { %v4403_v47 = vmul.f32 0.02, %v1931_v41  ;;  %v1970_v48 = vmul.f32 0.02, %v1952_v42  ;;  %vm2052_vm13 = vmor %vm2050_vm12, %vm2051_vm11  ;;  %vm2060_vm12 = vweird.f32 %v4412_v57 }
 0x6f6   :  { %v2046_v12 = vmul.f32 %v3412_v39, %v2045_v40  ;;  %v1955_v19 = vpop.xlane.xlu0 %1954  ;;  %v2043_v49 = vsel %vm2042_vm10, %v3410_v24, %v2039_v45  ;;  %v1336_v40 = vld [vmem:[%s4727_s11 + $0x20] sm:$0xff] }
 0x6f7   :  { %v1979_v50 = vmul.f32 %v4403_v47, %v4403_v47  ;;  %v1986_v52 = vsub.f32 %v1970_v48, %v1978_v46  ;;  %v1971_v55 = vmul.f32 0.02, %v1955_v19  ;;  %v4407_v53 = vmul.f32 %v2043_v49, %v1327_v43 }
 0x6f8   :  { %v2047_v56 = vmul.f32 0.5, %v2046_v12 }
 0x6f9   :  { %v1994_v8 = vmax.f32 %v1986_v52, 0.0  ;;  %v1987_v9 = vsub.f32 %v1971_v55, %v1979_v50  ;;  %2125 = vperm.xlu1 %3276, %v4407_v53  }
 0x6fa   :  { %v2048_v11 = vsub.f32 1.5, %v2047_v56 }
 0x6fb   :  { %v2002_v10 = vadd.f32 1e-05, %v1994_v8  ;;  %v1995_v62 = vmax.f32 %v1987_v9, 0.0  ;;  %v1330_v9 = vld [vmem:[%s4726_s10 + $0x30] sm:$0xff] }
 0x6fc   :  { %v1940_v1 = vpop.xlane.xlu2 %1939  ;;  %v2049_v2 = vmul.f32 %v3412_v39, %v2048_v11  ;;  %v1910_v61 = vpop.xlane.xlu1 %1909 }
 0x6fd   :  { %3413 = vrsqrt.f32 %v2002_v10  ;;  %v4418_v0 = vadd.f32 1e-05, %v1995_v62  ;;  %v1966_v6 = vmul.f32 0.02, %v1940_v1  ;;  %v4427_v5 = vmul.f32 0.02, %v1910_v61 }
 0x6fe   :  { %3415 = vrsqrt.f32 %v4412_v57  ;;  %v1937_v4 = vpop.xlane.xlu0 %1936  ;;  %v2053_v16 = vsel %vm2052_vm13, %v3412_v39, %v2049_v2  ;;  %vm2070_vm15 = vweird.f32 %v2002_v10 }
 0x6ff   :  { %3417 = vrsqrt.f32 %v4418_v0  ;;  %v1982_v21 = vsub.f32 %v1966_v6, %v1974_v3  ;;  %v1965_v17 = vmul.f32 0.02, %v1937_v4  ;;  %v2088_v22 = vmul.f32 %v2053_v16, %v1328_v54  ;;  %v1331_v3 = vld [vmem:[%s4726_s10 + $0x38] sm:$0xff] }
 0x700   :  { %v1972_v37 = vmul.f32 %v4427_v5, %v4427_v5  ;;  %vm2080_vm2 = vweird.f32 %v4418_v0 }
 0x701   :  { %v1990_v23 = vmax.f32 %v1982_v21, 0.0  ;;  %v1981_v24 = vsub.f32 %v1965_v17, %v1973_v20  ;;  %2130 = vperm.xlu2 %3274, %v2088_v22   ;;  %v2096_v33 = vmul.f32 %v2088_v22, %v4388_v15 }
 0x703   :  { %v3414_v25 = vpop.eup %3413  ;;  %v4429_v27 = vadd.f32 1e-05, %v1990_v23  ;;  %v1989_v29 = vmax.f32 %v1981_v24, 0.0  ;;  %v2104_v48 = vsub.f32 %v1336_v40, %v2096_v33  ;;  %v1339_v23 = vld [vmem:[%s4727_s11 + $0x38] sm:$0xff] }
 0x704   :  { %v4431_v30 = vpop.eup %3415  ;;  %v2065_v31 = vmul.f32 %v3414_v25, %v2002_v10  ;;  %v1934_v32 = vpop.xlane.xlu2 %1933  ;;  %vm2071_vm14 = vweird.f32 %v3414_v25 }
 0x705   :  { %v3418_v34 = vpop.eup %3417  ;;  %3419 = vrsqrt.f32 %v4429_v27  ;;  %v4437_v38 = vadd.f32 1e-05, %v1989_v29  ;;  %v1964_v39 = vmul.f32 0.02, %v1934_v32  ;;  %v2055_v43 = vmul.f32 %v4431_v30, %v4412_v57  ;;  %vm2072_vm1 = vmor %vm2070_vm15, %vm2071_vm14 }
 0x706   :  { %v2066_v41 = vmul.f32 %v3414_v25, %v2065_v31  ;;  %v2075_v42 = vmul.f32 %v3418_v34, %v4418_v0  ;;  %vm2081_vm0 = vweird.f32 %v3418_v34  ;;  %v1338_v0 = vld [vmem:[%s4727_s11 + $0x30] sm:$0xff]  ;;  %vm2030_vm5 = vweird.f32 %v4429_v27 }
 0x707   :  { %3421 = vrsqrt.f32 %v4437_v38  ;;  %v1980_v15 = vsub.f32 %v1964_v39, %v1972_v37  ;;  %v2056_v50 = vmul.f32 %v4431_v30, %v2055_v43  ;;  %vm2082_vm3 = vmor %vm2080_vm2, %vm2081_vm0  ;;  %vm2020_vm9 = vweird.f32 %v4437_v38 }
 0x708   :  { %v2067_v45 = vmul.f32 0.5, %v2066_v41  ;;  %v2076_v46 = vmul.f32 %v3418_v34, %v2075_v42  ;;  %vm2061_vm10 = vweird.f32 %v4431_v30  ;;  %v1325_v42 = vld [vmem:[%s4726_s10 + $0x8] sm:$0xff]  ;;  %v2095_v57 = vmul.f32 %v4407_v53, %v4384_v63 }
 0x709   :  { %v1988_v12 = vmax.f32 %v1980_v15, 0.0  ;;  %2178 = vperm.xlu2 %3274, %v2104_v48   ;;  %v2057_v6 = vmul.f32 0.5, %v2056_v50  ;;  %vm2062_vm13 = vmor %vm2060_vm12, %vm2061_vm10 }
 0x70a   :  { %v2068_v13 = vsub.f32 1.5, %v2067_v45  ;;  %v2077_v19 = vmul.f32 0.5, %v2076_v46 }
 0x70b   :  { %v3420_v49 = vpop.eup %3419  ;;  %v4447_v52 = vadd.f32 1e-05, %v1988_v12 }
 0x70c   :  { %v2069_v55 = vmul.f32 %v3414_v25, %v2068_v13  ;;  %v2078_v56 = vsub.f32 1.5, %v2077_v19  ;;  %v2025_v8 = vmul.f32 %v3420_v49, %v4429_v27  ;;  %vm2031_vm4 = vweird.f32 %v3420_v49  ;;  %v1335_v13 = vld [vmem:[%s4727_s11 + $0x18] sm:$0xff] }
 0x70d   :  { %v3422_v11 = vpop.eup %3421  ;;  %3423 = vrsqrt.f32 %v4447_v52  ;;  %vm2032_vm7 = vmor %vm2030_vm5, %vm2031_vm4  ;;  %vm2010_vm15 = vweird.f32 %v4447_v52 }
 0x70e   :  { %v2079_v62 = vmul.f32 %v3418_v34, %v2078_v56  ;;  %v2026_v1 = vmul.f32 %v3420_v49, %v2025_v8  ;;  %v2015_v10 = vmul.f32 %v3422_v11, %v4437_v38  ;;  %v2073_v2 = vsel %vm2072_vm1, %v3414_v25, %v2069_v55  ;;  %v1329_v38 = vld [vmem:[%s4726_s10 + $0x28] sm:$0xff] }
 0x70f   :  { %v4459_v54 = vmul.f32 %v2073_v2, %v1330_v9  ;;  %v2058_v25 = vsub.f32 1.5, %v2057_v6  ;;  %vm2021_vm8 = vweird.f32 %v3422_v11  ;;  %v1337_v55 = vld [vmem:[%s4727_s11 + $0x28] sm:$0xff]  ;;  %vm2519_vm1 = vcmask 15360  }
 0x710   :  { %v2027_v61 = vmul.f32 0.5, %v2026_v1  ;;  %v2016_v4 = vmul.f32 %v3422_v11, %v2015_v10  ;;  %v2083_v16 = vsel %vm2082_vm3, %v3418_v34, %v2079_v62  ;;  %vm2022_vm11 = vmor %vm2020_vm9, %vm2021_vm8  ;;  %v1332_v1 = vld [vmem:[%s4727_s11] sm:$0xff] }
 0x711   :  { %v2098_v20 = vmul.f32 %v4459_v54, %v4396_v35  ;;  %v2091_v21 = vmul.f32 %v2083_v16, %v1331_v3  ;;  %v1326_v35 = vld [vmem:[%s4726_s10 + $0x10] sm:$0xff]  ;;  %v2059_v27 = vmul.f32 %v4431_v30, %v2058_v25 }
 0x712   :  { %v2028_v17 = vsub.f32 1.5, %v2027_v61  ;;  %v2017_v22 = vmul.f32 0.5, %v2016_v4 }
 0x713   :  { %v3424_v24 = vpop.eup %3423  ;;  %v2106_v29 = vsub.f32 %v1338_v0, %v2098_v20  ;;  %v2099_v31 = vmul.f32 %v2091_v21, %v4403_v47  ;;  %v2063_v45 = vsel %vm2062_vm13, %v4431_v30, %v2059_v27  ;;  %v2103_v30 = vsub.f32 %v1335_v13, %v2095_v57 }
 0x714   :  { %v2018_v32 = vsub.f32 1.5, %v2017_v22  ;;  %v2005_v33 = vmul.f32 %v3424_v24, %v4447_v52  ;;  %v2029_v34 = vmul.f32 %v3420_v49, %v2028_v17  ;;  %v2089_v48 = vmul.f32 %v2063_v45, %v1329_v38 }
 0x715   :  { %2188 = vperm.xlu1 %3276, %v2106_v29   ;;  %v2107_v37 = vsub.f32 %v1339_v23, %v2099_v31  ;;  %vm2011_vm14 = vweird.f32 %v3424_v24 }
 0x716   :  { %v2033_v39 = vsel %vm2032_vm7, %v3420_v49, %v2029_v34  ;;  %v2019_v40 = vmul.f32 %v3422_v11, %v2018_v32  ;;  %v2006_v47 = vmul.f32 %v3424_v24, %v2005_v33  ;;  %v1333_v49 = vld [vmem:[%s4727_s11 + $0x8] sm:$0xff]  ;;  %v2097_v50 = vmul.f32 %v2089_v48, %v4392_v28  ;;  %vm2012_vm0 = vmor %vm2010_vm15, %vm2011_vm14 }
 0x717   :  { %2193 = vperm.xlu2 %3274, %v2107_v37   ;;  %v2086_v41 = vmul.f32 %v2033_v39, %v1326_v35  ;;  %vm2716_vm15 = vcmask 9216  }
 0x718   :  { %v2023_v43 = vsel %vm2022_vm11, %v3422_v11, %v2019_v40  ;;  %v2007_v15 = vmul.f32 0.5, %v2006_v47  ;;  %v2105_v56 = vsub.f32 %v1337_v55, %v2097_v50  ;;  %v1334_v11 = vld [vmem:[%s4727_s11 + $0x10] sm:$0xff]  ;;  %s3449_s11 = smov 112  }
 0x719   :  { %2120 = vperm.xlu0 %3275, %v2086_v41   ;;  %v2085_v46 = vmul.f32 %v2023_v43, %v1325_v42  ;;  %v2094_v9 = vmul.f32 %v2086_v41, %v4409_v7 }
 0x71a   :  { %v2008_v12 = vsub.f32 1.5, %v2007_v15 }
 0x71b   :  { %v2093_v19 = vmul.f32 %v2085_v46, %v4414_v59  ;;  %v1324_v59 = vld [vmem:[%s4726_s10] sm:$0xff]  ;;  %v2102_v52 = vsub.f32 %v1334_v11, %v2094_v9  ;;  %s3448_s10 = smov 120  }
 0x71c   :  { %v2009_v63 = vmul.f32 %v3424_v24, %v2008_v12 }
 0x71d   :  { %2145 = vperm.xlu1 %3276, %v2091_v21   ;;  %v2101_v53 = vsub.f32 %v1333_v49, %v2093_v19 }
 0x71e   :  { %v2013_v8 = vsel %vm2012_vm0, %v3424_v24, %v2009_v63 }
 0x71f   :  { %2115 = vperm.xlu2 %3274, %v2085_v46   ;;  %v2084_v28 = vmul.f32 %v2013_v8, %v1324_v59 }
 0x721   :  { %2135 = vperm.xlu0 %3275, %v2089_v48   ;;  %v2092_v62 = vmul.f32 %v2084_v28, %v4427_v5 }
 0x723   :  { %v2100_v10 = vsub.f32 %v1332_v1, %v2092_v62 }
 0x725   :  { %2173 = vperm.xlu1 %3276, %v2103_v30  }
 0x727   :  { %2163 = vperm.xlu2 %3274, %v2101_v53  }
 0x729   :  { %2183 = vperm.xlu0 %3275, %v2105_v56  }
 0x72d   :  { %2110 = vperm.xlu1 %3276, %v2084_v28  }
 0x731   :  { %2140 = vperm.xlu0 %3275, %v4459_v54  }
 0x739   :  { %2168 = vperm.xlu0 %3275, %v2102_v52  }
 0x741   :  { %2158 = vperm.xlu0 %3275, %v2100_v10  }
 0x75b   :  { %v2131_v2 = vpop.permute.xlu2 %2130 }
 0x75c   :  { %v2152_v4 = vmul.f32 %v2131_v2, %v4344_v26 }
 0x763   :  { %v2179_v61 = vpop.permute.xlu2 %2178 }
 0x764   :  { %v2200_v0 = vadd.f32 %v2179_v61, %v2152_v4 }
 0x766   :  { %v2208_v22 = vmax.f32 %v2200_v0, 0.0 }
 0x76b   :  { %v2126_v3 = vpop.permute.xlu1 %2125 }
 0x771   :  { %v2194_v16 = vpop.permute.xlu2 %2193 }
 0x779   :  { %v2116_v26 = vpop.permute.xlu2 %2115 }
 0x781   :  { %v2164_v43 = vpop.permute.xlu2 %2163 }
 0x787   :  { %v2189_v54 = vpop.permute.xlu1 %2188 }
 0x78b   :  { %v2121_v6 = vpop.permute.xlu0 %2120 }
 0x78c   :  { %v2150_v39 = vmul.f32 %v2121_v6, %v4334_v14 }
 0x78f   :  { %v2146_v21 = vpop.permute.xlu1 %2145 }
 0x790   :  { %v2155_v24 = vmul.f32 %v2146_v21, %v4365_v51 }
 0x792   :  { %v2203_v31 = vadd.f32 %v2194_v16, %v2155_v24 }
 0x793   :  { %v2136_v7 = vpop.permute.xlu0 %2135 }
 0x794   :  { %v2153_v20 = vmul.f32 %v2136_v7, %v4351_v36  ;;  %v2151_v36 = vmul.f32 %v2126_v3, %v4338_v18  ;;  %v2211_v34 = vmax.f32 %v2203_v31, 0.0 }
 0x797   :  { %v2174_v33 = vpop.permute.xlu1 %2173 }
 0x798   :  { %v2199_v40 = vadd.f32 %v2174_v33, %v2151_v36 }
 0x79a   :  { %v2207_v27 = vmax.f32 %v2199_v40, 0.0 }
 0x79b   :  { %v2184_v5 = vpop.permute.xlu0 %2183 }
 0x79c   :  { %v2201_v17 = vadd.f32 %v2184_v5, %v2153_v20 }
 0x79e   :  { %v2209_v23 = vmax.f32 %v2201_v17, 0.0 }
 0x79f   :  { %v2111_v15 = vpop.permute.xlu1 %2110 }
 0x7a0   :  { %v3302_v25 = vpack.i.bf16 %v2208_v22, %v2209_v23  ;;  %v2148_v18 = vmul.f32 %v2111_v15, %v4328_v58 }
 0x7a2   :  { %3303 = vrot.lane.b32.xlu2 %v3302_v25, %s3448_s10 }
 0x7a3   :  { %v2141_v29 = vpop.permute.xlu0 %2140 }
 0x7a4   :  { %v2154_v32 = vmul.f32 %v2141_v29, %v4358_v44  ;;  %v2149_v44 = vmul.f32 %v2116_v26, %v4330_v60 }
 0x7a6   :  { %v2202_v35 = vadd.f32 %v2189_v54, %v2154_v32  ;;  %v2197_v45 = vadd.f32 %v2164_v43, %v2149_v44 }
 0x7a8   :  { %v2210_v37 = vmax.f32 %v2202_v35, 0.0  ;;  %v2205_v48 = vmax.f32 %v2197_v45, 0.0 }
 0x7aa   :  { %v3297_v41 = vpack.i.bf16 %v2210_v37, %v2211_v34 }
 0x7ab   :  { %v2169_v51 = vpop.permute.xlu0 %2168 }
 0x7ac   :  { %v2198_v47 = vadd.f32 %v2169_v51, %v2150_v39  ;;  %3298 = vrot.lane.b32.xlu1 %v3297_v41, %s3448_s10  ;;  %v2383_v41 = vld [vmem:[%s4728_s13 + $0x18] sm:$0xff]  ;;  %v2380_v51 = vld [vmem:[%s4728_s13] sm:$0xff] }
 0x7ae   :  { %v2206_v42 = vmax.f32 %v2198_v47, 0.0  ;;  %v2381_v47 = vld [vmem:[%s4728_s13 + $0x8] sm:$0xff] }
 0x7b0   :  { %v3307_v38 = vpack.i.bf16 %v2206_v42, %v2207_v27 }
 0x7b2   :  { %3308 = vrot.lane.b32.xlu0 %v3307_v38, %s3448_s10 }
 0x7b3   :  { %v2159_v46 = vpop.permute.xlu0 %2158 }
 0x7b4   :  { %v2196_v14 = vadd.f32 %v2159_v46, %v2148_v18 }
 0x7b6   :  { %v2204_v57 = vmax.f32 %v2196_v14, 0.0 }
 0x7b8   :  { %v3312_v12 = vpack.i.bf16 %v2204_v57, %v2205_v48 }
 0x7ba   :  { %3313 = vrot.lane.b32.xlu1 %v3312_v12, %s3448_s10 }
 0x7fc   :  { %v3304_v13 = vpop.permute.xlu2 %3303 }
 0x7fd   :  { %v3306_v19 = vunpack.i.h.bf16 %v3304_v13  ;;  %v3305_v49 = vunpack.i.l.bf16 %v3304_v13 }
 0x7ff   :  { %v2248_v30 = vmax.f32 %v2208_v22, %v3306_v19  ;;  %v2249_v50 = vmax.f32 %v2209_v23, %v3305_v49 }
 0x801   :  { %v3322_v55 = vpack.i.bf16 %v2248_v30, %v2249_v50 }
 0x803   :  { %3323 = vrot.lane.b32.xlu0 %v3322_v55, %s3449_s11 }
 0x81e   :  { %v3299_v60 = vpop.permute.xlu1 %3298 }
 0x81f   :  { %v3301_v63 = vunpack.i.h.bf16 %v3299_v60  ;;  %v3300_v58 = vunpack.i.l.bf16 %v3299_v60 }
 0x821   :  { %v2250_v53 = vmax.f32 %v2210_v37, %v3301_v63  ;;  %v2251_v56 = vmax.f32 %v2211_v34, %v3300_v58 }
 0x823   :  { %v3317_v59 = vpack.i.bf16 %v2250_v53, %v2251_v56 }
 0x824   :  { %v3309_v8 = vpop.permute.xlu0 %3308 }
 0x825   :  { %v3311_v28 = vunpack.i.h.bf16 %v3309_v8  ;;  %v3310_v9 = vunpack.i.l.bf16 %v3309_v8  ;;  %3318 = vrot.lane.b32.xlu2 %v3317_v59, %s3449_s11 }
 0x827   :  { %v2246_v11 = vmax.f32 %v2206_v42, %v3311_v28  ;;  %v2247_v52 = vmax.f32 %v2207_v27, %v3310_v9  ;;  %v2382_v27 = vld [vmem:[%s4728_s13 + $0x10] sm:$0xff] }
 0x829   :  { %v3327_v62 = vpack.i.bf16 %v2246_v11, %v2247_v52 }
 0x82b   :  { %3328 = vrot.lane.b32.xlu1 %v3327_v62, %s3449_s11 }
 0x82c   :  { %v3314_v1 = vpop.permute.xlu1 %3313 }
 0x82d   :  { %v3316_v10 = vunpack.i.h.bf16 %v3314_v1  ;;  %v3315_v2 = vunpack.i.l.bf16 %v3314_v1 }
 0x82f   :  { %v2244_v3 = vmax.f32 %v2204_v57, %v3316_v10  ;;  %v2245_v6 = vmax.f32 %v2205_v48, %v3315_v2 }
 0x831   :  { %v3332_v54 = vpack.i.bf16 %v2244_v3, %v2245_v6 }
 0x833   :  { %3333 = vrot.lane.b32.xlu2 %v3332_v54, %s3449_s11 }
 0x875   :  { %v3324_v61 = vpop.permute.xlu0 %3323 }
 0x876   :  { %v3326_v7 = vunpack.i.h.bf16 %v3324_v61  ;;  %v3325_v4 = vunpack.i.l.bf16 %v3324_v61  ;;  %v2373_v61 = vld [vmem:[%s4729_s12 + $0x8] sm:$0xff] }
 0x878   :  { %v4524_v0 = vmax.f32 %v2248_v30, %v3326_v7  ;;  %v4526_v16 = vmax.f32 %v2249_v50, %v3325_v4  ;;  %v2372_v7 = vld [vmem:[%s4729_s12] sm:$0xff]  ;;  %v2375_v4 = vld [vmem:[%s4729_s12 + $0x18] sm:$0xff] }
 0x87a   :  { %v3337_v20 = vpack.i.bf16 %v4524_v0, %v4526_v16 }
 0x87c   :  { %3338 = vrot.lane.b32.xlu2 %v3337_v20, %s3450_s26 }
 0x87f   :  { %v3319_v21 = vpop.permute.xlu2 %3318 }
 0x880   :  { %v3321_v5 = vunpack.i.h.bf16 %v3319_v21  ;;  %v3320_v17 = vunpack.i.l.bf16 %v3319_v21  ;;  %v2379_v21 = vld [vmem:[%s4729_s12 + $0x38] sm:$0xff] }
 0x882   :  { %v4531_v22 = vmax.f32 %v2250_v53, %v3321_v5  ;;  %v4533_v23 = vmax.f32 %v2251_v56, %v3320_v17  ;;  %v2378_v5 = vld [vmem:[%s4729_s12 + $0x30] sm:$0xff] }
 0x884   :  { %v3352_v24 = vpack.i.bf16 %v4531_v22, %v4533_v23 }
 0x886   :  { %3353 = vrot.lane.b32.xlu1 %v3352_v24, %s3451_s27  ;;  %3343 = vrot.lane.b32.xlu0 %v3352_v24, %s3450_s26 }
 0x88d   :  { %v3334_v25 = vpop.permute.xlu2 %3333 }
 0x88e   :  { %v3336_v29 = vunpack.i.h.bf16 %v3334_v25  ;;  %v3335_v31 = vunpack.i.l.bf16 %v3334_v25  ;;  %3348 = vrot.lane.b32.xlu0 %v3337_v20, %s3451_s27 }
 0x890   :  { %v4538_v32 = vmax.f32 %v2244_v3, %v3336_v29  ;;  %v4540_v26 = vmax.f32 %v2245_v6, %v3335_v31 }
 0x892   :  { %v3367_v33 = vpack.i.bf16 %v4538_v32, %v4540_v26 }
 0x896   :  { %3368 = vrot.lane.b32.xlu0 %v3367_v33, %s3450_s26 }
 0x89d   :  { %v3329_v35 = vpop.permute.xlu1 %3328 }
 0x89e   :  { %v3331_v36 = vunpack.i.h.bf16 %v3329_v35  ;;  %v3330_v34 = vunpack.i.l.bf16 %v3329_v35  ;;  %3383 = vrot.lane.b32.xlu0 %v3337_v20, %s3452_s28  ;;  %v2376_v20 = vld [vmem:[%s4729_s12 + $0x20] sm:$0xff] }
 0x8a0   :  { %v4545_v37 = vmax.f32 %v2246_v11, %v3331_v36  ;;  %v4547_v39 = vmax.f32 %v2247_v52, %v3330_v34 }
 0x8a2   :  { %v3362_v40 = vpack.i.bf16 %v4545_v37, %v4547_v39 }
 0x8a4   :  { %3363 = vrot.lane.b32.xlu2 %v3362_v40, %s3451_s27  ;;  %3358 = vrot.lane.b32.xlu1 %v3362_v40, %s3450_s26 }
 0x8a6   :  { %2401 = vperm.xlu0 %3275, %v2383_v41  }
 0x8ac   :  { %3378 = vrot.lane.b32.xlu2 %v3352_v24, %s3452_s28  ;;  %3373 = vrot.lane.b32.xlu1 %v3367_v33, %s3451_s27 }
 0x8ae   :  { %2386 = vperm.xlu0 %3275, %v2380_v51  }
 0x8b4   :  { %3393 = vrot.lane.b32.xlu2 %v3367_v33, %s3452_s28  ;;  %3388 = vrot.lane.b32.xlu1 %v3362_v40, %s3452_s28 }
 0x8bc   :  { %2391 = vperm.xlu2 %3274, %v2381_v47   ;;  %2396 = vperm.xlu1 %3276, %v2382_v27  }
 0x8d6   :  { %v3339_v38 = vpop.permute.xlu2 %3338 }
 0x8d7   :  { %v3340_v46 = vunpack.i.l.bf16 %v3339_v38  ;;  %v3341_v14 = vunpack.i.h.bf16 %v3339_v38 }
 0x8f8   :  { %v3354_v42 = vpop.permute.xlu1 %3353  ;;  %v3344_v43 = vpop.permute.xlu0 %3343 }
 0x8f9   :  { %v3355_v15 = vunpack.i.l.bf16 %v3354_v42  ;;  %v3345_v44 = vunpack.i.l.bf16 %v3344_v43  ;;  %v3356_v45 = vunpack.i.h.bf16 %v3354_v42  ;;  %v3346_v18 = vunpack.i.h.bf16 %v3344_v43  ;;  %v2462_v42 = vld [vmem:[%s4730_s14] sm:$0xff]  ;;  %v2463_v43 = vld [vmem:[%s4730_s14 + $0x8] sm:$0xff] }
 0x8fb   :  { %2404 = vmatpush.msra.mxu1 %v3355_v15  ;;  %2433 = vmatpush.msra.mxu2 %v3345_v44  ;;  %v2464_v15 = vld [vmem:[%s4730_s14 + $0x10] sm:$0xff]  ;;  %v2465_v44 = vld [vmem:[%s4730_s14 + $0x18] sm:$0xff] }
 0x8fd   :  { %2405 = vmatpush.msra.mxu1 %v3356_v45  ;;  %2434 = vmatpush.msra.mxu2 %v3346_v18 }
 0x8fe   :  { %v3364_v12 = vpop.permute.xlu2 %3363 }
 0x8ff   :  { %2435 = vmatpush.msra.mxu2 %v3340_v46  ;;  %v3365_v19 = vunpack.i.l.bf16 %v3364_v12  ;;  %v3366_v49 = vunpack.i.h.bf16 %v3364_v12 }
 0x900   :  { %v3349_v48 = vpop.permute.xlu0 %3348 }
 0x901   :  { %v3350_v57 = vunpack.i.l.bf16 %v3349_v48  ;;  %2436 = vmatpush.msra.mxu2 %v3341_v14  ;;  %v3351_v13 = vunpack.i.h.bf16 %v3349_v48 }
 0x903   :  { %2406 = vmatpush.msra.mxu1 %v3350_v57 }
 0x905   :  { %2407 = vmatpush.msra.mxu1 %v3351_v13 }
 0x906   :  { %v3379_v58 = vpop.permute.xlu2 %3378 }
 0x907   :  { %2408 = vmatpush.msra.mxu1 %v3365_v19  ;;  %v3380_v59 = vunpack.i.l.bf16 %v3379_v58  ;;  %v3381_v9 = vunpack.i.h.bf16 %v3379_v58 }
 0x908   :  { %v3369_v30 = vpop.permute.xlu0 %3368 }
 0x909   :  { %2409 = vmatpush.msra.mxu1 %v3366_v49  ;;  %v3370_v63 = vunpack.i.l.bf16 %v3369_v30  ;;  %v3371_v53 = vunpack.i.h.bf16 %v3369_v30 }
 0x90e   :  { %v3394_v2 = vpop.permute.xlu2 %3393 }
 0x90f   :  { %v3395_v6 = vunpack.i.l.bf16 %v3394_v2  ;;  %v3396_v54 = vunpack.i.h.bf16 %v3394_v2 }
 0x910   :  { %v3384_v28 = vpop.permute.xlu0 %3383 }
 0x911   :  { %v3385_v52 = vunpack.i.l.bf16 %v3384_v28  ;;  %v3386_v62 = vunpack.i.h.bf16 %v3384_v28 }
 0x916   :  { %v3359_v50 = vpop.permute.xlu1 %3358  ;;  %v2392_v36 = vpop.permute.xlu2 %2391 }
 0x917   :  { %v3360_v55 = vunpack.i.l.bf16 %v3359_v50  ;;  %v3361_v60 = vunpack.i.h.bf16 %v3359_v50 }
 0x918   :  { %v2402_v29 = vpop.permute.xlu0 %2401 }
 0x919   :  { %2437 = vmatpush.msra.mxu2 %v3360_v55 }
 0x91b   :  { %2438 = vmatpush.msra.mxu2 %v3361_v60 }
 0x91d   :  { %2439 = vmatpush.msra.mxu2 %v3370_v63 }
 0x91e   :  { %v3374_v56 = vpop.permute.xlu1 %3373 }
 0x91f   :  { %v3375_v8 = vunpack.i.l.bf16 %v3374_v56  ;;  %2440 = vmatpush.msra.mxu2 %v3371_v53  ;;  %v3376_v11 = vunpack.i.h.bf16 %v3374_v56 }
 0x920   :  { %v2387_v40 = vpop.permute.xlu0 %2386 }
 0x921   :  { %2410 = vmatpush.msra.mxu1 %v3375_v8  ;;  %2441 = vmatpush.msra.mxu2 %v3380_v59 }
 0x923   :  { %2411 = vmatpush.msra.mxu1 %v3376_v11  ;;  %2442 = vmatpush.msra.mxu2 %v3381_v9 }
 0x925   :  { %2412 = vmatpush.msra.mxu1 %v4533_v23  ;;  %2443 = vmatpush.msra.mxu2 %v3385_v52 }
 0x926   :  { %v3389_v1 = vpop.permute.xlu1 %3388 }
 0x927   :  { %v3390_v10 = vunpack.i.l.bf16 %v3389_v1  ;;  %2413 = vmatpush.msra.mxu1 %v4531_v22  ;;  %2444 = vmatpush.msra.mxu2 %v3386_v62  ;;  %v3391_v3 = vunpack.i.h.bf16 %v3389_v1 }
 0x929   :  { %2414 = vmatpush.msra.mxu1 %v4526_v16  ;;  %2445 = vmatpush.msra.mxu2 %v3390_v10  ;;  %v2377_v16 = vld [vmem:[%s4729_s12 + $0x28] sm:$0xff] }
 0x92b   :  { %2415 = vmatpush.msra.mxu1 %v4524_v0  ;;  %2446 = vmatpush.msra.mxu2 %v3391_v3  ;;  %v2374_v0 = vld [vmem:[%s4729_s12 + $0x10] sm:$0xff] }
 0x92d   :  { %2416 = vmatpush.msra.mxu1 %v4547_v39  ;;  %2447 = vmatpush.msra.mxu2 %v3395_v6 }
 0x92f   :  { %2417 = vmatpush.msra.mxu1 %v4545_v37  ;;  %2448 = vmatpush.msra.mxu2 %v3396_v54 }
 0x930   :  { %2449 = vmatmul.f32.vlgmr.msra.gmra.mxu2 %v2373_v61 }
 0x931   :  { %2418 = vmatpush.msra.mxu1 %v4540_v26 }
 0x933   :  { %2419 = vmatpush.msra.mxu1 %v4538_v32  ;;  %v2397_v32 = vpop.permute.xlu1 %2396 }
 0x934   :  { %2420 = vmatmul.f32.vlgmr.msra.gmra.mxu1 %v2372_v7 }
 0x938   :  { %2452 = vmatmul.f32.gmra.mxu2 %v2375_v4 }
 0x93c   :  { %2423 = vmatmul.f32.gmra.mxu1 %v2374_v0 }
 0x940   :  { %2455 = vmatmul.f32.gmra.mxu2 %v2377_v16 }
 0x944   :  { %2426 = vmatmul.f32.gmra.mxu1 %v2376_v20 }
 0x948   :  { %2458 = vmatmul.f32.gmra.mxu2 %v2379_v21 }
 0x94c   :  { %2429 = vmatmul.f32.gmra.mxu1 %v2378_v5 }
 0x9b1   :  { %v2421_v17 = vpop.f32.mrf.mxu1 }
 0x9b2   :  { %v2422_v41 = vadd.f32 %v2421_v17, %v2387_v40 }
 0x9b3   :  { %v2450_v22 = vpop.f32.mrf.mxu2 }
 0x9b4   :  { %v2451_v27 = vadd.f32 %v2450_v22, %v2422_v41 }
 0x9b9   :  { %v2424_v23 = vpop.f32.mrf.mxu1 }
 0x9ba   :  { %v2425_v37 = vadd.f32 %v2424_v23, %v2392_v36 }
 0x9bb   :  { %v2453_v24 = vpop.f32.mrf.mxu2 }
 0x9bc   :  { %v2454_v47 = vadd.f32 %v2453_v24, %v2425_v37 }
 0x9c1   :  { %v2427_v25 = vpop.f32.mrf.mxu1 }
 0x9c2   :  { %v2428_v33 = vadd.f32 %v2427_v25, %v2397_v32 }
 0x9c3   :  { %v2456_v31 = vpop.f32.mrf.mxu2 }
 0x9c4   :  { %v2457_v51 = vadd.f32 %v2456_v31, %v2428_v33 }
 0x9c9   :  { %v2430_v26 = vpop.f32.mrf.mxu1 }
 0x9ca   :  { %v2431_v35 = vadd.f32 %v2430_v26, %v2402_v29 }
 0x9cb   :  { %v2459_v34 = vpop.f32.mrf.mxu2 }
 0x9cc   :  { %v2460_v39 = vadd.f32 %v2459_v34, %v2431_v35 }
 0x9ce   :  { %2490 = vmatpush.msra.mxu3 %v2460_v39 }
 0x9d0   :  { %2491 = vmatpush.msra.mxu3 %v2457_v51 }
 0x9d2   :  { %2492 = vmatpush.msra.mxu3 %v2454_v47 }
 0x9d4   :  { %2493 = vmatpush.msra.mxu3 %v2451_v27  ;;  %v2509_v27 = vld [vmem:[%s4731_s15 + $0x10] sm:$0xff] }
 0x9d5   :  { %3188 = vmatmul.msk.f32.vlgmr.msra.gmra.mxu3 %vm1348_vm6, %v2462_v42 }
 0x9dd   :  { %3189 = vmatmul.msk.f32.gmra.mxu3 %vm1348_vm6, %v2463_v43 }
 0x9e5   :  { %3190 = vmatmul.msk.f32.gmra.mxu3 %vm1348_vm6, %v2464_v15 }
 0x9ed   :  { %3191 = vmatmul.msk.f32.gmra.mxu3 %vm1348_vm6, %v2465_v44 }
 0xa58   :  { %v4612_v38 = vpop.f32.mrf.mxu3 }
 0xa59   :  { %v2515_v30 = vmul.f32 %v4612_v38, %v4612_v38  ;;  %v2520_v63 = vsel %vm2519_vm1, %v4612_v38, 0.0 }
 0xa5b   :  { %v2532_v55 = vsel %vm2519_vm1, %v2515_v30, 0.0 }
 0xa60   :  { %v4614_v45 = vpop.f32.mrf.mxu3 }
 0xa61   :  { %v2523_v18 = vsel %vm2519_vm1, %v4614_v45, 0.0  ;;  %v2516_v50 = vmul.f32 %v4614_v45, %v4614_v45 }
 0xa62   :  { %2524 = vadd.xlane.f32.xlu1 %v2523_v18  ;;  %v2510_v18 = vld [vmem:[%s4731_s15 + $0x18] sm:$0xff] }
 0xa63   :  { %v2535_v60 = vsel %vm2519_vm1, %v2516_v50, 0.0 }
 0xa68   :  { %v4618_v46 = vpop.f32.mrf.mxu3 }
 0xa69   :  { %v2526_v14 = vsel %vm2519_vm1, %v4618_v46, 0.0  ;;  %v2517_v48 = vmul.f32 %v4618_v46, %v4618_v46 }
 0xa6a   :  { %2527 = vadd.xlane.f32.xlu2 %v2526_v14 }
 0xa6b   :  { %v2538_v13 = vsel %vm2519_vm1, %v2517_v48, 0.0 }
 0xa70   :  { %v4624_v57 = vpop.f32.mrf.mxu3 }
 0xa71   :  { %v2518_v12 = vmul.f32 %v4624_v57, %v4624_v57  ;;  %v2529_v19 = vsel %vm2519_vm1, %v4624_v57, 0.0 }
 0xa72   :  { %2539 = vadd.xlane.f32.xlu2 %v2538_v13  ;;  %2530 = vadd.xlane.f32.xlu1 %v2529_v19 }
 0xa73   :  { %v2541_v49 = vsel %vm2519_vm1, %v2518_v12, 0.0 }
 0xa74   :  { %2542 = vadd.xlane.f32.xlu0 %v2541_v49 }
 0xa7a   :  { %2533 = vadd.xlane.f32.xlu2 %v2532_v55  ;;  %2536 = vadd.xlane.f32.xlu1 %v2535_v60  ;;  %v2514_v55 = vld [vmem:[%s4732_s16 + $0x18] sm:$0xff] }
 0xa7c   :  { %2521 = vadd.xlane.f32.xlu0 %v2520_v63 }
 0xad5   :  { %v2525_v58 = vpop.xlane.xlu1 %2524 }
 0xad6   :  { %v4648_v6 = vmul.f32 0.5, %v2525_v58 }
 0xad8   :  { %v2553_v0 = vmul.f32 %v4648_v6, %v4648_v6 }
 0xadd   :  { %v2528_v53 = vpop.xlane.xlu2 %2527 }
 0xade   :  { %v4640_v56 = vmul.f32 0.5, %v2528_v53 }
 0xae0   :  { %v2554_v28 = vmul.f32 %v4640_v56, %v4640_v56 }
 0xae5   :  { %v2540_v59 = vpop.xlane.xlu2 %2539  ;;  %v2531_v8 = vpop.xlane.xlu1 %2530 }
 0xae6   :  { %v2550_v9 = vmul.f32 0.5, %v2540_v59  ;;  %v4644_v11 = vmul.f32 0.5, %v2531_v8  ;;  %v2508_v59 = vld [vmem:[%s4731_s15 + $0x8] sm:$0xff] }
 0xae7   :  { %v2543_v52 = vpop.xlane.xlu0 %2542 }
 0xae8   :  { %v2558_v62 = vsub.f32 %v2550_v9, %v2554_v28  ;;  %v2555_v1 = vmul.f32 %v4644_v11, %v4644_v11  ;;  %v2551_v10 = vmul.f32 0.5, %v2543_v52  ;;  %v2507_v52 = vld [vmem:[%s4731_s15] sm:$0xff] }
 0xaea   :  { %v2562_v2 = vmax.f32 %v2558_v62, 0.0  ;;  %v2559_v3 = vsub.f32 %v2551_v10, %v2555_v1  ;;  %v2512_v10 = vld [vmem:[%s4732_s16 + $0x8] sm:$0xff] }
 0xaec   :  { %v2566_v54 = vadd.f32 1e-05, %v2562_v2  ;;  %v2563_v61 = vmax.f32 %v2559_v3, 0.0 }
 0xaed   :  { %v2537_v7 = vpop.xlane.xlu1 %2536  ;;  %v2534_v16 = vpop.xlane.xlu2 %2533 }
 0xaee   :  { %3425 = vrsqrt.f32 %v2566_v54  ;;  %v2567_v4 = vadd.f32 1e-05, %v2563_v61  ;;  %v2549_v20 = vmul.f32 0.5, %v2537_v7  ;;  %v2548_v22 = vmul.f32 0.5, %v2534_v16  ;;  %v2513_v7 = vld [vmem:[%s4732_s16 + $0x10] sm:$0xff]  ;;  %v2511_v16 = vld [vmem:[%s4732_s16] sm:$0xff] }
 0xaef   :  { %v2522_v21 = vpop.xlane.xlu0 %2521  ;;  %vm2594_vm3 = vweird.f32 %v2566_v54 }
 0xaf0   :  { %3427 = vrsqrt.f32 %v2567_v4  ;;  %v4652_v5 = vmul.f32 0.5, %v2522_v21  ;;  %v2557_v17 = vsub.f32 %v2549_v20, %v2553_v0  ;;  %vm2604_vm7 = vweird.f32 %v2567_v4  ;;  %v2674_v0 = vld [vmem:[%s4733_s18] sm:$0xff] }
 0xaf2   :  { %v2552_v23 = vmul.f32 %v4652_v5, %v4652_v5  ;;  %v2561_v24 = vmax.f32 %v2557_v17, 0.0 }
 0xaf4   :  { %v3426_v25 = vpop.eup %3425  ;;  %v2556_v29 = vsub.f32 %v2548_v22, %v2552_v23  ;;  %v2565_v32 = vadd.f32 1e-05, %v2561_v24 }
 0xaf5   :  { %v2589_v31 = vmul.f32 %v3426_v25, %v2566_v54  ;;  %vm2595_vm2 = vweird.f32 %v3426_v25 }
 0xaf6   :  { %v3428_v26 = vpop.eup %3427  ;;  %v2560_v33 = vmax.f32 %v2556_v29, 0.0  ;;  %3429 = vrsqrt.f32 %v2565_v32  ;;  %vm2596_vm5 = vmor %vm2594_vm3, %vm2595_vm2  ;;  %vm2584_vm10 = vweird.f32 %v2565_v32 }
 0xaf7   :  { %v2590_v35 = vmul.f32 %v3426_v25, %v2589_v31  ;;  %v2599_v36 = vmul.f32 %v3428_v26, %v2567_v4  ;;  %vm2605_vm4 = vweird.f32 %v3428_v26 }
 0xaf8   :  { %v2564_v34 = vadd.f32 1e-05, %v2560_v33  ;;  %vm2606_vm8 = vmor %vm2604_vm7, %vm2605_vm4 }
 0xaf9   :  { %v2591_v37 = vmul.f32 0.5, %v2590_v35  ;;  %v2600_v39 = vmul.f32 %v3428_v26, %v2599_v36 }
 0xafa   :  { %3431 = vrsqrt.f32 %v2564_v34  ;;  %vm2574_vm13 = vweird.f32 %v2564_v34 }
 0xafb   :  { %v2592_v40 = vsub.f32 1.5, %v2591_v37  ;;  %v2601_v41 = vmul.f32 0.5, %v2600_v39 }
 0xafc   :  { %v3430_v51 = vpop.eup %3429 }
 0xafd   :  { %v2602_v47 = vsub.f32 1.5, %v2601_v41  ;;  %v2593_v42 = vmul.f32 %v3426_v25, %v2592_v40  ;;  %v2579_v43 = vmul.f32 %v3430_v51, %v2565_v32  ;;  %vm2585_vm9 = vweird.f32 %v3430_v51 }
 0xafe   :  { %vm2586_vm12 = vmor %vm2584_vm10, %vm2585_vm9 }
 0xaff   :  { %v2603_v15 = vmul.f32 %v3428_v26, %v2602_v47  ;;  %v2597_v44 = vsel %vm2596_vm5, %v3426_v25, %v2593_v42  ;;  %v2580_v48 = vmul.f32 %v3430_v51, %v2579_v43 }
 0xb00   :  { %v3432_v14 = vpop.eup %3431  ;;  %v2610_v12 = vmul.f32 %v2597_v44, %v2509_v27 }
 0xb01   :  { %v2569_v13 = vmul.f32 %v3432_v14, %v2564_v34  ;;  %v2607_v19 = vsel %vm2606_vm8, %v3428_v26, %v2603_v15  ;;  %v2581_v49 = vmul.f32 0.5, %v2580_v48  ;;  %vm2575_vm11 = vweird.f32 %v3432_v14 }
 0xb02   :  { %2632 = vperm.xlu1 %3276, %v2610_v12   ;;  %v2611_v30 = vmul.f32 %v2607_v19, %v2510_v18  ;;  %vm2576_vm14 = vmor %vm2574_vm13, %vm2575_vm11  ;;  %v2614_v54 = vmul.f32 %v2610_v12, %v4640_v56 }
 0xb03   :  { %v2570_v50 = vmul.f32 %v3432_v14, %v2569_v13  ;;  %v2582_v60 = vsub.f32 1.5, %v2581_v49 }
 0xb04   :  { %v2615_v63 = vmul.f32 %v2611_v30, %v4644_v11  ;;  %v2618_v4 = vsub.f32 %v2513_v7, %v2614_v54 }
 0xb05   :  { %v2571_v58 = vmul.f32 0.5, %v2570_v50  ;;  %v2583_v8 = vmul.f32 %v3430_v51, %v2582_v60 }
 0xb06   :  { %v2619_v53 = vsub.f32 %v2514_v55, %v2615_v63 }
 0xb07   :  { %v2572_v28 = vsub.f32 1.5, %v2571_v58  ;;  %v2587_v9 = vsel %vm2586_vm12, %v3430_v51, %v2583_v8 }
 0xb08   :  { %2661 = vperm.xlu2 %3274, %v2619_v53   ;;  %v2609_v11 = vmul.f32 %v2587_v9, %v2508_v59 }
 0xb09   :  { %v2573_v62 = vmul.f32 %v3432_v14, %v2572_v28 }
 0xb0a   :  { %2627 = vperm.xlu0 %3275, %v2609_v11   ;;  %v2613_v2 = vmul.f32 %v2609_v11, %v4648_v6  ;;  %v2675_v6 = vld [vmem:[%s4733_s18 + $0x8] sm:$0x3] }
 0xb0b   :  { %v2577_v1 = vsel %vm2576_vm14, %v3432_v14, %v2573_v62 }
 0xb0c   :  { %v2608_v3 = vmul.f32 %v2577_v1, %v2507_v52  ;;  %v2617_v61 = vsub.f32 %v2512_v10, %v2613_v2 }
 0xb0e   :  { %2622 = vperm.xlu1 %3276, %v2608_v3   ;;  %v2612_v56 = vmul.f32 %v2608_v3, %v4652_v5 }
 0xb10   :  { %2651 = vperm.xlu2 %3274, %v2617_v61   ;;  %v2616_v20 = vsub.f32 %v2511_v16, %v2612_v56 }
 0xb12   :  { %2656 = vperm.xlu0 %3275, %v2618_v4  }
 0xb16   :  { %2678 = vperm.xlu1 %3276, %v2674_v0  }
 0xb18   :  { %2683 = vperm.xlu2 %3274, %v2675_v6  }
 0xb1a   :  { %2637 = vperm.xlu0 %3275, %v2611_v30  }
 0xb22   :  { %2646 = vperm.xlu0 %3275, %v2616_v20  }
 0xb62   :  { %v2662_v22 = vpop.permute.xlu2 %2661 }
 0xb6a   :  { %v2652_v5 = vpop.permute.xlu2 %2651 }
 0xb72   :  { %v2684_v27 = vpop.permute.xlu2 %2683 }
 0xb74   :  { %v2633_v23 = vpop.permute.xlu1 %2632 }
 0xb75   :  { %v2642_v25 = vmul.f32 %v2633_v23, %v4618_v46  ;;  %v2673_v46 = vld [vmem:[%s4734_s17 + $0x8] sm:$0x3] }
 0xb7c   :  { %v2628_v21 = vpop.permute.xlu0 %2627 }
 0xb7d   :  { %v2641_v29 = vmul.f32 %v2628_v21, %v4614_v45  ;;  %v2672_v45 = vld [vmem:[%s4734_s17] sm:$0xff] }
 0xb7f   :  { %v2665_v35 = vadd.f32 %v2652_v5, %v2641_v29 }
 0xb80   :  { %v2623_v33 = vpop.permute.xlu1 %2622 }
 0xb81   :  { %v2640_v34 = vmul.f32 %v2623_v33, %v4612_v38  ;;  %v2669_v40 = vmax.f32 %v2665_v35, 0.0 }
 0xb84   :  { %v2657_v17 = vpop.permute.xlu0 %2656 }
 0xb85   :  { %v2666_v32 = vadd.f32 %v2657_v17, %v2642_v25 }
 0xb87   :  { %v2670_v37 = vmax.f32 %v2666_v32, 0.0 }
 0xb8c   :  { %v2638_v24 = vpop.permute.xlu0 %2637 }
 0xb8d   :  { %v2643_v31 = vmul.f32 %v2638_v24, %v4624_v57  ;;  %v2679_v57 = vpop.permute.xlu1 %2678 }
 0xb8f   :  { %v2667_v26 = vadd.f32 %v2662_v22, %v2643_v31 }
 0xb91   :  { %v2671_v36 = vmax.f32 %v2667_v26, 0.0 }
 0xb93   :  { %2704 = vmatpush.msrb.mxu0 %v2671_v36 }
 0xb94   :  { %v2647_v39 = vpop.permute.xlu0 %2646 }
 0xb95   :  { %v2664_v41 = vadd.f32 %v2647_v39, %v2640_v34  ;;  %2705 = vmatpush.msrb.mxu0 %v2670_v37 }
 0xb97   :  { %v2668_v51 = vmax.f32 %v2664_v41, 0.0  ;;  %2706 = vmatpush.msrb.mxu0 %v2669_v40 }
 0xb99   :  { %2707 = vmatpush.msrb.mxu0 %v2668_v51 }
 0xb9a   :  { %3192 = vmatmul.msk.f32.vlgmr.msrb.gmra.mxu0 %vm1348_vm6, %v2672_v45 }
 0xba2   :  { %3193 = vmatmul.msk.f32.gmra.mxu0 %vm1348_vm6, %v2673_v46 }
 0xc17   :  { %v2709_v38 = vpop.f32.mrf.mxu0 }
 0xc18   :  { %v2710_v47 = vadd.f32 %v2709_v38, %v2679_v57 }
 0xc1a   :  { %v2715_v15 = vsel %vm2519_vm1, %v2710_v47, -inf }
 0xc1f   :  { %v2712_v42 = vpop.f32.mrf.mxu0 }
 0xc20   :  { %v2713_v43 = vadd.f32 %v2712_v42, %v2684_v27 }
 0xc22   :  { %v2717_v44 = vsel %vm2716_vm15, %v2713_v43, -inf }
 0xc23   :  { %v2718_v18 = vmax.f32 %v2715_v15, %v2717_v44 }
 0xc25   :  { %v2719_v14 = vrot.slane %v2718_v18, 4 }
 0xc27   :  { %v2720_v48 = vmax.f32 %v2718_v18, %v2719_v14 }
 0xc29   :  { %v2721_v12 = vrot.slane %v2720_v48, 2 }
 0xc2b   :  { %v2722_v13 = vmax.f32 %v2720_v48, %v2721_v12 }
 0xc2d   :  { %v2723_v19 = vrot.slane %v2722_v13, 1 }
 0xc2f   :  { %v2724_v49 = vmax.f32 %v2722_v13, %v2723_v19 }
 0xc31   :  { %v2725_v30 = vsub.f32 %v2710_v47, %v2724_v49  ;;  %v2726_v50 = vsub.f32 %v2713_v43, %v2724_v49 }
 0xc33   :  { %v2727_v55 = vmul.f32 1.442695, %v2725_v30  ;;  %v2729_v60 = vmul.f32 1.442695, %v2726_v50 }
 0xc35   :  { %3433 = vpow2.f32 %v2727_v55 }
 0xc36   :  { %3435 = vpow2.f32 %v2729_v60 }
 0xc3b   :  { %v3434_v63 = vpop.eup %3433 }
 0xc3c   :  { %v3436_v58 = vpop.eup %3435  ;;  %v2731_v53 = vsel %vm2519_vm1, %v3434_v63, 0.0 }
 0xc3d   :  { %v2732_v59 = vsel %vm2716_vm15, %v3436_v58, 0.0 }
 0xc3e   :  { %v2733_v8 = vadd.f32 %v2732_v59, %v2731_v53 }
 0xc40   :  { %v2734_v28 = vrot.slane %v2733_v8, 4 }
 0xc42   :  { %v2735_v9 = vadd.f32 %v2734_v28, %v2733_v8 }
 0xc44   :  { %v2736_v52 = vrot.slane %v2735_v9, 2 }
 0xc46   :  { %v2737_v62 = vadd.f32 %v2736_v52, %v2735_v9 }
 0xc48   :  { %v2738_v11 = vrot.slane %v2737_v62, 1 }
 0xc4a   :  { %v2739_v1 = vadd.f32 %v2738_v11, %v2737_v62 }
 0xc4c   :  { %3437 = vrcp.f32 %v2739_v1 }
 0xc52   :  { %v3438_v10 = vpop.eup %3437 }
 0xc53   :  { %v2741_v2 = vmul.f32 %v3438_v10, %v3434_v63  ;;  %v2742_v3 = vmul.f32 %v3438_v10, %v3436_v58 }
 0xc55   :  { %v2743_v54 = vmul.f32 1.442695, %v2741_v2  ;;  %v2745_v61 = vmul.f32 1.442695, %v2742_v3 }
 0xc57   :  { %3439 = vpow2.f32 %v2743_v54 }
 0xc58   :  { %3441 = vpow2.f32 %v2745_v61 }
 0xc5d   :  { %v3440_v7 = vpop.eup %3439 }
 0xc5e   :  { %v3442_v4 = vpop.eup %3441  ;;  %v2747_v0 = vsel %vm2519_vm1, %v3440_v7, 0.0 }
 0xc5f   :  { %v2748_v6 = vsel %vm2716_vm15, %v3442_v4, 0.0 }
 0xc60   :  { %v2749_v56 = vadd.f32 %v2748_v6, %v2747_v0 }
 0xc62   :  { %v2750_v16 = vrot.slane %v2749_v56, 4 }
 0xc64   :  { %v2751_v20 = vadd.f32 %v2750_v16, %v2749_v56 }
 0xc66   :  { %v2752_v21 = vrot.slane %v2751_v20, 2 }
 0xc68   :  { %v2753_v17 = vadd.f32 %v2752_v21, %v2751_v20 }
 0xc6a   :  { %v2754_v22 = vrot.slane %v2753_v17, 1 }
 0xc6c   :  { %v2755_v23 = vadd.f32 %v2754_v22, %v2753_v17 }
 0xc6e   :  { %3443 = vrcp.f32 %v2755_v23  ;;  %v2767_v31 = vand.u32 2147483648, %v2755_v23  ;;  %v2765_v26 = vand.u32 2147483647, %v2755_v23  ;;  %vm2761_vm0 = vweird.f32 %v2755_v23 }
 0xc70   :  { %v2768_v33 = vor.u32 1.1754944e-38, %v2767_v31  ;;  %vm2766_vm3 = vcmp.eq.f32.partialorder %v2765_v26, 8.507059e+37 }
 0xc74   :  { %v3444_v24 = vpop.eup %3443 }
 0xc75   :  { %v2757_v25 = vmul.f32 %v3444_v24, %v2755_v23  ;;  %vm2762_vm6 = vweird.f32 %v3444_v24 }
 0xc76   :  { %vm2763_vm2 = vmor %vm2761_vm0, %vm2762_vm6 }
 0xc77   :  { %v2758_v29 = vsub.f32 1.0, %v2757_v25 }
 0xc79   :  { %v2759_v32 = vmul.f32 %v3444_v24, %v2758_v29 }
 0xc7b   :  { %v2760_v5 = vadd.f32 %v3444_v24, %v2759_v32 }
 0xc7d   :  { %v2764_v35 = vsel %vm2763_vm2, %v3444_v24, %v2760_v5 }
 0xc7e   :  { %v2769_v36 = vsel %vm2766_vm3, %v2768_v33, %v2764_v35 }
 0xc7f   :  { %v2770_v34 = vmul.f32 %v3440_v7, %v2769_v36  ;;  %v2771_v37 = vmul.f32 %v3442_v4, %v2769_v36 }
 0xc81   :  { %2772 = vst.msk [vmem:[%s4735_s19] sm:$0xff] %vm2519_vm1, %v2770_v34 }
 0xc82   :  { %2773 = vst.msk [vmem:[%s4735_s19 + $0x8] sm:$0x3] %vm2716_vm15, %v2771_v37 }

</bundles_post_ra>
